<compile_context>
chip_gen: v5e
topology: v5e:2x2
jax: 0.10.0
libtpu: 0.0.40
codegen_flags: <defaults>
</compile_context>

<pallas_src>
import numpy as np
import jax
import jax.numpy as jnp
from jax.experimental import pallas as pl
from jax.experimental.pallas import tpu as pltpu

INPUT_SIZE = 16
LATENT_SIZE = 8
HIDDEN_SIZES = (32, 64, 128, 256, 512)
_DEC_SIZES = tuple(reversed(HIDDEN_SIZES))          # (512, 256, 128, 64, 32)
N_ENC = len(HIDDEN_SIZES)
N_DEC = len(_DEC_SIZES) - 1
LEAKY_SLOPE = 0.01      # nn.LeakyReLU default negative_slope
BN_EPS = 1e-5           # nn.BatchNorm1d default eps

IN_USED = INPUT_SIZE + 1 + LATENT_SIZE              # x | y | eps = 25 lanes
IN_W = 32                                           # padded packed-input width
OUT_W = INPUT_SIZE + 2 * LATENT_SIZE                # recon | mu | logvar = 32


# ----------------------------------------------------------------------------
# packed row-parameter layout (128-lane aligned static offsets)
# ----------------------------------------------------------------------------
def _pad128(n):
    return ((n + 127) // 128) * 128


_ROW_LAYOUT = []                                    # (name, width), in order
for _i, _h in enumerate(HIDDEN_SIZES):
    _ROW_LAYOUT += [(f"enc_g{_i}", _h), (f"enc_b{_i}", _h)]
_ROW_LAYOUT += [("mu_b", LATENT_SIZE), ("var_b", LATENT_SIZE)]
_ROW_LAYOUT += [("din_wy", HIDDEN_SIZES[-1]), ("din_b", HIDDEN_SIZES[-1])]
for _i in range(N_DEC):
    _ROW_LAYOUT += [(f"dec_g{_i}", _DEC_SIZES[_i + 1]),
                    (f"dec_b{_i}", _DEC_SIZES[_i + 1])]
_ROW_LAYOUT += [("fin_g", _DEC_SIZES[-1]), ("fin_b", _DEC_SIZES[-1])]
_ROW_LAYOUT += [("out_b", INPUT_SIZE)]

_ROW_WIDTH = dict(_ROW_LAYOUT)
_ROW_OFFSET = {}
_off = 0
for _name, _w in _ROW_LAYOUT:
    _ROW_OFFSET[_name] = _off
    _off += _pad128(_w)
ROWS_TOTAL = _off                                   # ~5k fp32 lanes (~20 KiB)

_WEIGHT_NAMES = (
    [f"enc_w{i}" for i in range(N_ENC)]
    + ["mu_w", "var_w", "din_wz"]
    + [f"dec_w{i}" for i in range(N_DEC)]
    + ["fin_w0", "fin_w1"]
)


def _matmul_dims():
    dims = []
    din = INPUT_SIZE + 1
    for h in HIDDEN_SIZES:
        dims.append((din, h))
        din = h
    dims += [(HIDDEN_SIZES[-1], LATENT_SIZE)] * 2           # fc_mu, fc_var
    dims.append((LATENT_SIZE, HIDDEN_SIZES[-1]))            # decoder_input (z part)
    for i in range(N_DEC):
        dims.append((_DEC_SIZES[i], _DEC_SIZES[i + 1]))
    dims.append((_DEC_SIZES[-1], _DEC_SIZES[-1]))           # final block 0
    dims.append((_DEC_SIZES[-1], INPUT_SIZE))               # final block 1
    return dims


_MM_DIMS = _matmul_dims()
_BN_WIDTH_SUM = sum(HIDDEN_SIZES) + sum(_DEC_SIZES[1:]) + _DEC_SIZES[-1]


# ----------------------------------------------------------------------------
# shared math (used by the Pallas kernel AND the pure-JAX reference)
# ----------------------------------------------------------------------------
def _matmul(x, w):
    # bf16 operands on the MXU, fp32 accumulation (all generations support bf16).
    return jnp.dot(x.astype(jnp.bfloat16), w.astype(jnp.bfloat16),
                   preferred_element_type=jnp.float32)


def _bn_lrelu(x, gamma, beta):
    # Training-mode BatchNorm1d (batch stats, biased variance) + LeakyReLU.
    mean = jnp.mean(x, axis=0, keepdims=True)
    var = jnp.mean(jnp.square(x - mean), axis=0, keepdims=True)
    scale = gamma * jax.lax.rsqrt(var + BN_EPS)     # computed once at (1, dout)
    y = (x - mean) * scale + beta
    return jnp.maximum(y, LEAKY_SLOPE * y)          # exact LeakyReLU, 1 VALU op


# ----------------------------------------------------------------------------
# Pallas kernel: full ConditionalVAE.forward hot path
# ----------------------------------------------------------------------------
def cvae_kernel(*refs):
    out_ref = refs[-1]
    inp_ref, rows_ref = refs[0], refs[1]
    w = refs[2:-1]                                  # 14 bf16 weight matrices

    def row(name):
        off = _ROW_OFFSET[name]
        return rows_ref[:, off:off + _ROW_WIDTH[name]]      # (1, width) fp32

    # packed activations: [ x | y | eps | pad ]
    xy = inp_ref[:, 0:INPUT_SIZE + 1]                        # (N, 17)
    y = inp_ref[:, INPUT_SIZE:INPUT_SIZE + 1]                # (N, 1)
    eps = inp_ref[:, INPUT_SIZE + 1:INPUT_SIZE + 1 + LATENT_SIZE]  # (N, 8)

    # ---- encoder: 5x (Linear[no bias] -> BatchNorm1d -> LeakyReLU) ----
    h = xy
    for i in range(N_ENC):
        h = _bn_lrelu(_matmul(h, w[i][...]), row(f"enc_g{i}"), row(f"enc_b{i}"))

    # ---- latent heads ----
    mu = _matmul(h, w[N_ENC][...]) + row("mu_b")
    logvar = _matmul(h, w[N_ENC + 1][...]) + row("var_b")

    # ---- reparameterize: z = eps * exp(0.5*logvar) + mu ----
    z = eps * jnp.exp(0.5 * logvar) + mu

    # ---- decoder_input on concat([z, y]) as a split matmul:
    #      z @ Wz + y * Wy + b  (avoids an in-kernel lane concatenation) ----
    h = _matmul(z, w[N_ENC + 2][...]) + y * row("din_wy") + row("din_b")

    # ---- decoder: 4x (Linear[no bias] -> BatchNorm1d -> LeakyReLU) ----
    for i in range(N_DEC):
        h = _bn_lrelu(_matmul(h, w[N_ENC + 3 + i][...]),
                      row(f"dec_g{i}"), row(f"dec_b{i}"))

    # ---- final layer: Linear[no bias] -> BN -> LeakyReLU -> Linear -> Sigmoid ----
    h = _bn_lrelu(_matmul(h, w[-2][...]), row("fin_g"), row("fin_b"))
    logits = _matmul(h, w[-1][...]) + row("out_b")
    recon = 1.0 / (1.0 + jnp.exp(-logits))

    # ---- single lane-dense output slab: [ recon | mu | logvar ] ----
    out_ref[:, 0:INPUT_SIZE] = recon
    out_ref[:, INPUT_SIZE:INPUT_SIZE + LATENT_SIZE] = mu
    out_ref[:, INPUT_SIZE + LATENT_SIZE:OUT_W] = logvar


# ----------------------------------------------------------------------------
# parameter construction (deterministic PyTorch-like fan-in uniform init).
# Pre-BN linear biases are intentionally omitted (they cancel exactly against
# the batch-mean subtraction of training-mode BatchNorm1d).
# ----------------------------------------------------------------------------
def init_params(key):
    keys = list(jax.random.split(key, 18))
    ki = [0]

    def nk():
        k = keys[ki[0]]
        ki[0] += 1
        return k

    def lin_w(din, dout):
        s = 1.0 / float(np.sqrt(din))
        return jax.random.uniform(nk(), (din, dout), jnp.float32, -s, s)

    def lin_b(din, dout):
        s = 1.0 / float(np.sqrt(din))
        return jax.random.uniform(nk(), (1, dout), jnp.float32, -s, s)

    p = {}
    din = INPUT_SIZE + 1
    for i, h in enumerate(HIDDEN_SIZES):
        p[f"enc_w{i}"] = lin_w(din, h)
        p[f"enc_g{i}"] = jnp.ones((1, h), jnp.float32)
        p[f"enc_b{i}"] = jnp.zeros((1, h), jnp.float32)
        din = h
    p["mu_w"] = lin_w(HIDDEN_SIZES[-1], LATENT_SIZE)
    p["mu_b"] = lin_b(HIDDEN_SIZES[-1], LATENT_SIZE)
    p["var_w"] = lin_w(HIDDEN_SIZES[-1], LATENT_SIZE)
    p["var_b"] = lin_b(HIDDEN_SIZES[-1], LATENT_SIZE)
    w_din = lin_w(LATENT_SIZE + 1, HIDDEN_SIZES[-1])         # decoder_input
    p["din_wz"] = w_din[:LATENT_SIZE, :]                     # (8, 512)
    p["din_wy"] = w_din[LATENT_SIZE:, :]                     # (1, 512)
    p["din_b"] = lin_b(LATENT_SIZE + 1, HIDDEN_SIZES[-1])
    for i in range(N_DEC):
        p[f"dec_w{i}"] = lin_w(_DEC_SIZES[i], _DEC_SIZES[i + 1])
        p[f"dec_g{i}"] = jnp.ones((1, _DEC_SIZES[i + 1]), jnp.float32)
        p[f"dec_b{i}"] = jnp.zeros((1, _DEC_SIZES[i + 1]), jnp.float32)
    p["fin_w0"] = lin_w(_DEC_SIZES[-1], _DEC_SIZES[-1])
    p["fin_g"] = jnp.ones((1, _DEC_SIZES[-1]), jnp.float32)
    p["fin_b"] = jnp.zeros((1, _DEC_SIZES[-1]), jnp.float32)
    p["fin_w1"] = lin_w(_DEC_SIZES[-1], INPUT_SIZE)
    p["out_b"] = lin_b(_DEC_SIZES[-1], INPUT_SIZE)
    return p


def _pack_rows(params):
    pieces = []
    for name, w in _ROW_LAYOUT:
        v = params[name].reshape(1, w).astype(jnp.float32)
        pad = _pad128(w) - w
        if pad:
            v = jnp.pad(v, ((0, 0), (0, pad)))
        pieces.append(v)
    return jnp.concatenate(pieces, axis=1)                   # (1, ROWS_TOTAL)


# ----------------------------------------------------------------------------
# wrapper: packing glue + pallas_call plumbing
# ----------------------------------------------------------------------------
@jax.jit
def cvae_forward(x, y, eps, params):
    n = x.shape[0]
    packed_in = jnp.concatenate(
        [x, y, eps, jnp.zeros((n, IN_W - IN_USED), jnp.float32)], axis=1)
    rows = _pack_rows(params)
    weights = [params[k].astype(jnp.bfloat16) for k in _WEIGHT_NAMES]

    mm = sum(di * do for di, do in _MM_DIMS)
    cost = pl.CostEstimate(
        flops=2 * n * mm,
        transcendentals=n * (LATENT_SIZE + INPUT_SIZE) + _BN_WIDTH_SUM,
        bytes_accessed=2 * mm + 4 * ROWS_TOTAL + 4 * n * (IN_W + OUT_W),
    )

    out = pl.pallas_call(
        cvae_kernel,
        out_shape=jax.ShapeDtypeStruct((n, OUT_W), jnp.float32),
        in_specs=[pl.BlockSpec(memory_space=pltpu.MemorySpace.VMEM)]
        * (2 + len(weights)),
        out_specs=pl.BlockSpec(memory_space=pltpu.MemorySpace.VMEM),
        cost_estimate=cost,
    )(packed_in, rows, *weights)

    recon = out[:, :INPUT_SIZE]
    mu = out[:, INPUT_SIZE:INPUT_SIZE + LATENT_SIZE]
    logvar = out[:, INPUT_SIZE + LATENT_SIZE:]
    # forward() returns [decode(z), input, mu, log_var]
    return recon, x, mu, logvar


# ----------------------------------------------------------------------------
# pure-JAX reference (same math, unpacked parameters -> also checks packing)
# ----------------------------------------------------------------------------
def cvae_reference(x, y, eps, params):
    h = jnp.concatenate([x, y], axis=1)
    for i in range(N_ENC):
        h = _bn_lrelu(_matmul(h, params[f"enc_w{i}"]),
                      params[f"enc_g{i}"], params[f"enc_b{i}"])
    mu = _matmul(h, params["mu_w"]) + params["mu_b"]
    logvar = _matmul(h, params["var_w"]) + params["var_b"]
    z = eps * jnp.exp(0.5 * logvar) + mu
    h = _matmul(z, params["din_wz"]) + y * params["din_wy"] + params["din_b"]
    for i in range(N_DEC):
        h = _bn_lrelu(_matmul(h, params[f"dec_w{i}"]),
                      params[f"dec_g{i}"], params[f"dec_b{i}"])
    h = _bn_lrelu(_matmul(h, params["fin_w0"]), params["fin_g"], params["fin_b"])
    logits = _matmul(h, params["fin_w1"]) + params["out_b"]
    recon = 1.0 / (1.0 + jnp.exp(-logits))
    return recon, mu, logvar


if __name__ == "__main__":
    key = jax.random.PRNGKey(0)
    kx, ky, keps, kp = jax.random.split(key, 4)
    N = 8
    x = jax.random.uniform(kx, (N, INPUT_SIZE), jnp.float32)
    # labels (kwargs['labels']) used as a single conditioning scalar per sample
    y = jax.random.randint(ky, (N, 1), 0, 4).astype(jnp.float32)
    # reparameterization noise (torch.randn_like), sampled in the wrapper glue
    eps = jax.random.normal(keps, (N, LATENT_SIZE), jnp.float32)

    params = init_params(kp)

    recon, x_out, mu, logvar = cvae_forward(x, y, eps, params)
    jax.block_until_ready(recon)

    ref_recon, ref_mu, ref_logvar = cvae_reference(x, y, eps, params)
    np.testing.assert_allclose(np.asarray(recon), np.asarray(ref_recon),
                               rtol=2e-3, atol=2e-3)
    np.testing.assert_allclose(np.asarray(mu), np.asarray(ref_mu),
                               rtol=2e-3, atol=2e-3)
    np.testing.assert_allclose(np.asarray(logvar), np.asarray(ref_logvar),
                               rtol=2e-3, atol=2e-3)
    np.testing.assert_array_equal(np.asarray(x_out), np.asarray(x))
    assert recon.shape == (N, INPUT_SIZE) and mu.shape == (N, LATENT_SIZE)

    print("KERNEL_OK")
</pallas_src>

<mosaic_0001>
module attributes {stable_mosaic.version = 11 : i64} {
  func.func @cvae_kernel(%arg0: memref<8x32xf32, #tpu.memory_space<vmem>>, %arg1: memref<1x5248xf32, #tpu.memory_space<vmem>>, %arg2: memref<17x32xbf16, #tpu.memory_space<vmem>>, %arg3: memref<32x64xbf16, #tpu.memory_space<vmem>>, %arg4: memref<64x128xbf16, #tpu.memory_space<vmem>>, %arg5: memref<128x256xbf16, #tpu.memory_space<vmem>>, %arg6: memref<256x512xbf16, #tpu.memory_space<vmem>>, %arg7: memref<512x8xbf16, #tpu.memory_space<vmem>>, %arg8: memref<512x8xbf16, #tpu.memory_space<vmem>>, %arg9: memref<8x512xbf16, #tpu.memory_space<vmem>>, %arg10: memref<512x256xbf16, #tpu.memory_space<vmem>>, %arg11: memref<256x128xbf16, #tpu.memory_space<vmem>>, %arg12: memref<128x64xbf16, #tpu.memory_space<vmem>>, %arg13: memref<64x32xbf16, #tpu.memory_space<vmem>>, %arg14: memref<32x32xbf16, #tpu.memory_space<vmem>>, %arg15: memref<32x16xbf16, #tpu.memory_space<vmem>>, %arg16: memref<8x32xf32, #tpu.memory_space<vmem>>) attributes {dimension_semantics = [], scalar_prefetch = 0 : i64, scratch_operands = 0 : i64, tpu.core_type = #tpu.core_type<tc>} {
    %c0 = arith.constant 0 : index
    %c0_0 = arith.constant 0 : index
    %0 = vector.load %arg0[%c0, %c0_0] : memref<8x32xf32, #tpu.memory_space<vmem>>, vector<8x17xf32>
    %c0_1 = arith.constant 0 : index
    %c16 = arith.constant 16 : index
    %1 = vector.load %arg0[%c0_1, %c16] : memref<8x32xf32, #tpu.memory_space<vmem>>, vector<8x1xf32>
    %c0_2 = arith.constant 0 : index
    %c17 = arith.constant 17 : index
    %2 = vector.load %arg0[%c0_2, %c17] : memref<8x32xf32, #tpu.memory_space<vmem>>, vector<8x8xf32>
    %c0_3 = arith.constant 0 : index
    %c0_4 = arith.constant 0 : index
    %3 = vector.load %arg2[%c0_3, %c0_4] : memref<17x32xbf16, #tpu.memory_space<vmem>>, vector<17x32xbf16>
    %4 = arith.truncf %0 : vector<8x17xf32> to vector<8x17xbf16>
    %cst = arith.constant dense<0.000000e+00> : vector<8x32xf32>
    %5 = tpu.matmul %4, %3, %cst {dimension_numbers = #tpu.dot_dimension_numbers<[1], [0], [0], [1], [0, 0, 1, 1], [], []>} : vector<8x17xbf16>, vector<17x32xbf16>, vector<8x32xf32> -> vector<8x32xf32>
    %c0_5 = arith.constant 0 : index
    %c0_6 = arith.constant 0 : index
    %6 = vector.load %arg1[%c0_5, %c0_6] : memref<1x5248xf32, #tpu.memory_space<vmem>>, vector<1x32xf32>
    %c0_7 = arith.constant 0 : index
    %c128 = arith.constant 128 : index
    %7 = vector.load %arg1[%c0_7, %c128] : memref<1x5248xf32, #tpu.memory_space<vmem>>, vector<1x32xf32>
    %cst_8 = arith.constant dense<0.000000e+00> : vector<32xf32>
    %8 = vector.multi_reduction <add>, %5, %cst_8 [0] : vector<8x32xf32> to vector<32xf32>
    %9 = vector.shape_cast %8 : vector<32xf32> to vector<1x32xf32>
    %cst_9 = arith.constant 8.000000e+00 : f32
    %10 = vector.broadcast %cst_9 : f32 to vector<1x32xf32>
    %11 = arith.divf %9, %10 : vector<1x32xf32>
    %12 = vector.broadcast %11 : vector<1x32xf32> to vector<8x32xf32>
    %13 = arith.subf %5, %12 : vector<8x32xf32>
    %14 = arith.mulf %13, %13 : vector<8x32xf32>
    %cst_10 = arith.constant dense<0.000000e+00> : vector<32xf32>
    %15 = vector.multi_reduction <add>, %14, %cst_10 [0] : vector<8x32xf32> to vector<32xf32>
    %16 = vector.shape_cast %15 : vector<32xf32> to vector<1x32xf32>
    %cst_11 = arith.constant 8.000000e+00 : f32
    %17 = vector.broadcast %cst_11 : f32 to vector<1x32xf32>
    %18 = arith.divf %16, %17 : vector<1x32xf32>
    %cst_12 = arith.constant 9.99999974E-6 : f32
    %19 = vector.broadcast %cst_12 : f32 to vector<1x32xf32>
    %20 = arith.addf %18, %19 : vector<1x32xf32>
    %21 = math.rsqrt %20 : vector<1x32xf32>
    %22 = arith.mulf %6, %21 : vector<1x32xf32>
    %23 = vector.broadcast %11 : vector<1x32xf32> to vector<8x32xf32>
    %24 = arith.subf %5, %23 : vector<8x32xf32>
    %25 = vector.broadcast %22 : vector<1x32xf32> to vector<8x32xf32>
    %26 = arith.mulf %24, %25 : vector<8x32xf32>
    %27 = vector.broadcast %7 : vector<1x32xf32> to vector<8x32xf32>
    %28 = arith.addf %26, %27 : vector<8x32xf32>
    %cst_13 = arith.constant 0.00999999977 : f32
    %29 = vector.broadcast %cst_13 : f32 to vector<8x32xf32>
    %30 = arith.mulf %29, %28 : vector<8x32xf32>
    %31 = arith.maximumf %28, %30 : vector<8x32xf32>
    %c0_14 = arith.constant 0 : index
    %c0_15 = arith.constant 0 : index
    %32 = vector.load %arg3[%c0_14, %c0_15] : memref<32x64xbf16, #tpu.memory_space<vmem>>, vector<32x64xbf16>
    %33 = arith.truncf %31 : vector<8x32xf32> to vector<8x32xbf16>
    %cst_16 = arith.constant dense<0.000000e+00> : vector<8x64xf32>
    %34 = tpu.matmul %33, %32, %cst_16 {dimension_numbers = #tpu.dot_dimension_numbers<[1], [0], [0], [1], [0, 0, 1, 1], [], []>} : vector<8x32xbf16>, vector<32x64xbf16>, vector<8x64xf32> -> vector<8x64xf32>
    %c0_17 = arith.constant 0 : index
    %c256 = arith.constant 256 : index
    %35 = vector.load %arg1[%c0_17, %c256] : memref<1x5248xf32, #tpu.memory_space<vmem>>, vector<1x64xf32>
    %c0_18 = arith.constant 0 : index
    %c384 = arith.constant 384 : index
    %36 = vector.load %arg1[%c0_18, %c384] : memref<1x5248xf32, #tpu.memory_space<vmem>>, vector<1x64xf32>
    %cst_19 = arith.constant dense<0.000000e+00> : vector<64xf32>
    %37 = vector.multi_reduction <add>, %34, %cst_19 [0] : vector<8x64xf32> to vector<64xf32>
    %38 = vector.shape_cast %37 : vector<64xf32> to vector<1x64xf32>
    %cst_20 = arith.constant 8.000000e+00 : f32
    %39 = vector.broadcast %cst_20 : f32 to vector<1x64xf32>
    %40 = arith.divf %38, %39 : vector<1x64xf32>
    %41 = vector.broadcast %40 : vector<1x64xf32> to vector<8x64xf32>
    %42 = arith.subf %34, %41 : vector<8x64xf32>
    %43 = arith.mulf %42, %42 : vector<8x64xf32>
    %cst_21 = arith.constant dense<0.000000e+00> : vector<64xf32>
    %44 = vector.multi_reduction <add>, %43, %cst_21 [0] : vector<8x64xf32> to vector<64xf32>
    %45 = vector.shape_cast %44 : vector<64xf32> to vector<1x64xf32>
    %cst_22 = arith.constant 8.000000e+00 : f32
    %46 = vector.broadcast %cst_22 : f32 to vector<1x64xf32>
    %47 = arith.divf %45, %46 : vector<1x64xf32>
    %cst_23 = arith.constant 9.99999974E-6 : f32
    %48 = vector.broadcast %cst_23 : f32 to vector<1x64xf32>
    %49 = arith.addf %47, %48 : vector<1x64xf32>
    %50 = math.rsqrt %49 : vector<1x64xf32>
    %51 = arith.mulf %35, %50 : vector<1x64xf32>
    %52 = vector.broadcast %40 : vector<1x64xf32> to vector<8x64xf32>
    %53 = arith.subf %34, %52 : vector<8x64xf32>
    %54 = vector.broadcast %51 : vector<1x64xf32> to vector<8x64xf32>
    %55 = arith.mulf %53, %54 : vector<8x64xf32>
    %56 = vector.broadcast %36 : vector<1x64xf32> to vector<8x64xf32>
    %57 = arith.addf %55, %56 : vector<8x64xf32>
    %cst_24 = arith.constant 0.00999999977 : f32
    %58 = vector.broadcast %cst_24 : f32 to vector<8x64xf32>
    %59 = arith.mulf %58, %57 : vector<8x64xf32>
    %60 = arith.maximumf %57, %59 : vector<8x64xf32>
    %c0_25 = arith.constant 0 : index
    %c0_26 = arith.constant 0 : index
    %61 = vector.load %arg4[%c0_25, %c0_26] : memref<64x128xbf16, #tpu.memory_space<vmem>>, vector<64x128xbf16>
    %62 = arith.truncf %60 : vector<8x64xf32> to vector<8x64xbf16>
    %cst_27 = arith.constant dense<0.000000e+00> : vector<8x128xf32>
    %63 = tpu.matmul %62, %61, %cst_27 {dimension_numbers = #tpu.dot_dimension_numbers<[1], [0], [0], [1], [0, 0, 1, 1], [], []>} : vector<8x64xbf16>, vector<64x128xbf16>, vector<8x128xf32> -> vector<8x128xf32>
    %c0_28 = arith.constant 0 : index
    %c512 = arith.constant 512 : index
    %64 = vector.load %arg1[%c0_28, %c512] : memref<1x5248xf32, #tpu.memory_space<vmem>>, vector<1x128xf32>
    %c0_29 = arith.constant 0 : index
    %c640 = arith.constant 640 : index
    %65 = vector.load %arg1[%c0_29, %c640] : memref<1x5248xf32, #tpu.memory_space<vmem>>, vector<1x128xf32>
    %cst_30 = arith.constant dense<0.000000e+00> : vector<128xf32>
    %66 = vector.multi_reduction <add>, %63, %cst_30 [0] : vector<8x128xf32> to vector<128xf32>
    %67 = vector.shape_cast %66 : vector<128xf32> to vector<1x128xf32>
    %cst_31 = arith.constant 8.000000e+00 : f32
    %68 = vector.broadcast %cst_31 : f32 to vector<1x128xf32>
    %69 = arith.divf %67, %68 : vector<1x128xf32>
    %70 = vector.broadcast %69 : vector<1x128xf32> to vector<8x128xf32>
    %71 = arith.subf %63, %70 : vector<8x128xf32>
    %72 = arith.mulf %71, %71 : vector<8x128xf32>
    %cst_32 = arith.constant dense<0.000000e+00> : vector<128xf32>
    %73 = vector.multi_reduction <add>, %72, %cst_32 [0] : vector<8x128xf32> to vector<128xf32>
    %74 = vector.shape_cast %73 : vector<128xf32> to vector<1x128xf32>
    %cst_33 = arith.constant 8.000000e+00 : f32
    %75 = vector.broadcast %cst_33 : f32 to vector<1x128xf32>
    %76 = arith.divf %74, %75 : vector<1x128xf32>
    %cst_34 = arith.constant 9.99999974E-6 : f32
    %77 = vector.broadcast %cst_34 : f32 to vector<1x128xf32>
    %78 = arith.addf %76, %77 : vector<1x128xf32>
    %79 = math.rsqrt %78 : vector<1x128xf32>
    %80 = arith.mulf %64, %79 : vector<1x128xf32>
    %81 = vector.broadcast %69 : vector<1x128xf32> to vector<8x128xf32>
    %82 = arith.subf %63, %81 : vector<8x128xf32>
    %83 = vector.broadcast %80 : vector<1x128xf32> to vector<8x128xf32>
    %84 = arith.mulf %82, %83 : vector<8x128xf32>
    %85 = vector.broadcast %65 : vector<1x128xf32> to vector<8x128xf32>
    %86 = arith.addf %84, %85 : vector<8x128xf32>
    %cst_35 = arith.constant 0.00999999977 : f32
    %87 = vector.broadcast %cst_35 : f32 to vector<8x128xf32>
    %88 = arith.mulf %87, %86 : vector<8x128xf32>
    %89 = arith.maximumf %86, %88 : vector<8x128xf32>
    %c0_36 = arith.constant 0 : index
    %c0_37 = arith.constant 0 : index
    %90 = vector.load %arg5[%c0_36, %c0_37] : memref<128x256xbf16, #tpu.memory_space<vmem>>, vector<128x256xbf16>
    %91 = arith.truncf %89 : vector<8x128xf32> to vector<8x128xbf16>
    %cst_38 = arith.constant dense<0.000000e+00> : vector<8x256xf32>
    %92 = tpu.matmul %91, %90, %cst_38 {dimension_numbers = #tpu.dot_dimension_numbers<[1], [0], [0], [1], [0, 0, 1, 1], [], []>} : vector<8x128xbf16>, vector<128x256xbf16>, vector<8x256xf32> -> vector<8x256xf32>
    %c0_39 = arith.constant 0 : index
    %c768 = arith.constant 768 : index
    %93 = vector.load %arg1[%c0_39, %c768] : memref<1x5248xf32, #tpu.memory_space<vmem>>, vector<1x256xf32>
    %c0_40 = arith.constant 0 : index
    %c1024 = arith.constant 1024 : index
    %94 = vector.load %arg1[%c0_40, %c1024] : memref<1x5248xf32, #tpu.memory_space<vmem>>, vector<1x256xf32>
    %cst_41 = arith.constant dense<0.000000e+00> : vector<256xf32>
    %95 = vector.multi_reduction <add>, %92, %cst_41 [0] : vector<8x256xf32> to vector<256xf32>
    %96 = vector.shape_cast %95 : vector<256xf32> to vector<1x256xf32>
    %cst_42 = arith.constant 8.000000e+00 : f32
    %97 = vector.broadcast %cst_42 : f32 to vector<1x256xf32>
    %98 = arith.divf %96, %97 : vector<1x256xf32>
    %99 = vector.broadcast %98 : vector<1x256xf32> to vector<8x256xf32>
    %100 = arith.subf %92, %99 : vector<8x256xf32>
    %101 = arith.mulf %100, %100 : vector<8x256xf32>
    %cst_43 = arith.constant dense<0.000000e+00> : vector<256xf32>
    %102 = vector.multi_reduction <add>, %101, %cst_43 [0] : vector<8x256xf32> to vector<256xf32>
    %103 = vector.shape_cast %102 : vector<256xf32> to vector<1x256xf32>
    %cst_44 = arith.constant 8.000000e+00 : f32
    %104 = vector.broadcast %cst_44 : f32 to vector<1x256xf32>
    %105 = arith.divf %103, %104 : vector<1x256xf32>
    %cst_45 = arith.constant 9.99999974E-6 : f32
    %106 = vector.broadcast %cst_45 : f32 to vector<1x256xf32>
    %107 = arith.addf %105, %106 : vector<1x256xf32>
    %108 = math.rsqrt %107 : vector<1x256xf32>
    %109 = arith.mulf %93, %108 : vector<1x256xf32>
    %110 = vector.broadcast %98 : vector<1x256xf32> to vector<8x256xf32>
    %111 = arith.subf %92, %110 : vector<8x256xf32>
    %112 = vector.broadcast %109 : vector<1x256xf32> to vector<8x256xf32>
    %113 = arith.mulf %111, %112 : vector<8x256xf32>
    %114 = vector.broadcast %94 : vector<1x256xf32> to vector<8x256xf32>
    %115 = arith.addf %113, %114 : vector<8x256xf32>
    %cst_46 = arith.constant 0.00999999977 : f32
    %116 = vector.broadcast %cst_46 : f32 to vector<8x256xf32>
    %117 = arith.mulf %116, %115 : vector<8x256xf32>
    %118 = arith.maximumf %115, %117 : vector<8x256xf32>
    %c0_47 = arith.constant 0 : index
    %c0_48 = arith.constant 0 : index
    %119 = vector.load %arg6[%c0_47, %c0_48] : memref<256x512xbf16, #tpu.memory_space<vmem>>, vector<256x512xbf16>
    %120 = arith.truncf %118 : vector<8x256xf32> to vector<8x256xbf16>
    %cst_49 = arith.constant dense<0.000000e+00> : vector<8x512xf32>
    %121 = tpu.matmul %120, %119, %cst_49 {dimension_numbers = #tpu.dot_dimension_numbers<[1], [0], [0], [1], [0, 0, 1, 1], [], []>} : vector<8x256xbf16>, vector<256x512xbf16>, vector<8x512xf32> -> vector<8x512xf32>
    %c0_50 = arith.constant 0 : index
    %c1280 = arith.constant 1280 : index
    %122 = vector.load %arg1[%c0_50, %c1280] : memref<1x5248xf32, #tpu.memory_space<vmem>>, vector<1x512xf32>
    %c0_51 = arith.constant 0 : index
    %c1792 = arith.constant 1792 : index
    %123 = vector.load %arg1[%c0_51, %c1792] : memref<1x5248xf32, #tpu.memory_space<vmem>>, vector<1x512xf32>
    %cst_52 = arith.constant dense<0.000000e+00> : vector<512xf32>
    %124 = vector.multi_reduction <add>, %121, %cst_52 [0] : vector<8x512xf32> to vector<512xf32>
    %125 = vector.shape_cast %124 : vector<512xf32> to vector<1x512xf32>
    %cst_53 = arith.constant 8.000000e+00 : f32
    %126 = vector.broadcast %cst_53 : f32 to vector<1x512xf32>
    %127 = arith.divf %125, %126 : vector<1x512xf32>
    %128 = vector.broadcast %127 : vector<1x512xf32> to vector<8x512xf32>
    %129 = arith.subf %121, %128 : vector<8x512xf32>
    %130 = arith.mulf %129, %129 : vector<8x512xf32>
    %cst_54 = arith.constant dense<0.000000e+00> : vector<512xf32>
    %131 = vector.multi_reduction <add>, %130, %cst_54 [0] : vector<8x512xf32> to vector<512xf32>
    %132 = vector.shape_cast %131 : vector<512xf32> to vector<1x512xf32>
    %cst_55 = arith.constant 8.000000e+00 : f32
    %133 = vector.broadcast %cst_55 : f32 to vector<1x512xf32>
    %134 = arith.divf %132, %133 : vector<1x512xf32>
    %cst_56 = arith.constant 9.99999974E-6 : f32
    %135 = vector.broadcast %cst_56 : f32 to vector<1x512xf32>
    %136 = arith.addf %134, %135 : vector<1x512xf32>
    %137 = math.rsqrt %136 : vector<1x512xf32>
    %138 = arith.mulf %122, %137 : vector<1x512xf32>
    %139 = vector.broadcast %127 : vector<1x512xf32> to vector<8x512xf32>
    %140 = arith.subf %121, %139 : vector<8x512xf32>
    %141 = vector.broadcast %138 : vector<1x512xf32> to vector<8x512xf32>
    %142 = arith.mulf %140, %141 : vector<8x512xf32>
    %143 = vector.broadcast %123 : vector<1x512xf32> to vector<8x512xf32>
    %144 = arith.addf %142, %143 : vector<8x512xf32>
    %cst_57 = arith.constant 0.00999999977 : f32
    %145 = vector.broadcast %cst_57 : f32 to vector<8x512xf32>
    %146 = arith.mulf %145, %144 : vector<8x512xf32>
    %147 = arith.maximumf %144, %146 : vector<8x512xf32>
    %c0_58 = arith.constant 0 : index
    %c0_59 = arith.constant 0 : index
    %148 = vector.load %arg7[%c0_58, %c0_59] : memref<512x8xbf16, #tpu.memory_space<vmem>>, vector<512x8xbf16>
    %149 = arith.truncf %147 : vector<8x512xf32> to vector<8x512xbf16>
    %cst_60 = arith.constant dense<0.000000e+00> : vector<8x8xf32>
    %150 = tpu.matmul %149, %148, %cst_60 {dimension_numbers = #tpu.dot_dimension_numbers<[1], [0], [0], [1], [0, 0, 1, 1], [], []>} : vector<8x512xbf16>, vector<512x8xbf16>, vector<8x8xf32> -> vector<8x8xf32>
    %c0_61 = arith.constant 0 : index
    %c2304 = arith.constant 2304 : index
    %151 = vector.load %arg1[%c0_61, %c2304] : memref<1x5248xf32, #tpu.memory_space<vmem>>, vector<1x8xf32>
    %152 = vector.broadcast %151 : vector<1x8xf32> to vector<8x8xf32>
    %153 = arith.addf %150, %152 : vector<8x8xf32>
    %c0_62 = arith.constant 0 : index
    %c0_63 = arith.constant 0 : index
    %154 = vector.load %arg8[%c0_62, %c0_63] : memref<512x8xbf16, #tpu.memory_space<vmem>>, vector<512x8xbf16>
    %155 = arith.truncf %147 : vector<8x512xf32> to vector<8x512xbf16>
    %cst_64 = arith.constant dense<0.000000e+00> : vector<8x8xf32>
    %156 = tpu.matmul %155, %154, %cst_64 {dimension_numbers = #tpu.dot_dimension_numbers<[1], [0], [0], [1], [0, 0, 1, 1], [], []>} : vector<8x512xbf16>, vector<512x8xbf16>, vector<8x8xf32> -> vector<8x8xf32>
    %c0_65 = arith.constant 0 : index
    %c2432 = arith.constant 2432 : index
    %157 = vector.load %arg1[%c0_65, %c2432] : memref<1x5248xf32, #tpu.memory_space<vmem>>, vector<1x8xf32>
    %158 = vector.broadcast %157 : vector<1x8xf32> to vector<8x8xf32>
    %159 = arith.addf %156, %158 : vector<8x8xf32>
    %cst_66 = arith.constant 5.000000e-01 : f32
    %160 = vector.broadcast %cst_66 : f32 to vector<8x8xf32>
    %161 = arith.mulf %160, %159 : vector<8x8xf32>
    %162 = math.exp %161 : vector<8x8xf32>
    %163 = arith.mulf %2, %162 : vector<8x8xf32>
    %164 = arith.addf %163, %153 : vector<8x8xf32>
    %c0_67 = arith.constant 0 : index
    %c0_68 = arith.constant 0 : index
    %165 = vector.load %arg9[%c0_67, %c0_68] : memref<8x512xbf16, #tpu.memory_space<vmem>>, vector<8x512xbf16>
    %166 = arith.truncf %164 : vector<8x8xf32> to vector<8x8xbf16>
    %cst_69 = arith.constant dense<0.000000e+00> : vector<8x512xf32>
    %167 = tpu.matmul %166, %165, %cst_69 {dimension_numbers = #tpu.dot_dimension_numbers<[1], [0], [0], [1], [0, 0, 1, 1], [], []>} : vector<8x8xbf16>, vector<8x512xbf16>, vector<8x512xf32> -> vector<8x512xf32>
    %c0_70 = arith.constant 0 : index
    %c2560 = arith.constant 2560 : index
    %168 = vector.load %arg1[%c0_70, %c2560] : memref<1x5248xf32, #tpu.memory_space<vmem>>, vector<1x512xf32>
    %169 = vector.broadcast %1 : vector<8x1xf32> to vector<8x512xf32>
    %170 = vector.broadcast %168 : vector<1x512xf32> to vector<8x512xf32>
    %171 = arith.mulf %169, %170 : vector<8x512xf32>
    %172 = arith.addf %167, %171 : vector<8x512xf32>
    %c0_71 = arith.constant 0 : index
    %c3072 = arith.constant 3072 : index
    %173 = vector.load %arg1[%c0_71, %c3072] : memref<1x5248xf32, #tpu.memory_space<vmem>>, vector<1x512xf32>
    %174 = vector.broadcast %173 : vector<1x512xf32> to vector<8x512xf32>
    %175 = arith.addf %172, %174 : vector<8x512xf32>
    %c0_72 = arith.constant 0 : index
    %c0_73 = arith.constant 0 : index
    %176 = vector.load %arg10[%c0_72, %c0_73] : memref<512x256xbf16, #tpu.memory_space<vmem>>, vector<512x256xbf16>
    %177 = arith.truncf %175 : vector<8x512xf32> to vector<8x512xbf16>
    %cst_74 = arith.constant dense<0.000000e+00> : vector<8x256xf32>
    %178 = tpu.matmul %177, %176, %cst_74 {dimension_numbers = #tpu.dot_dimension_numbers<[1], [0], [0], [1], [0, 0, 1, 1], [], []>} : vector<8x512xbf16>, vector<512x256xbf16>, vector<8x256xf32> -> vector<8x256xf32>
    %c0_75 = arith.constant 0 : index
    %c3584 = arith.constant 3584 : index
    %179 = vector.load %arg1[%c0_75, %c3584] : memref<1x5248xf32, #tpu.memory_space<vmem>>, vector<1x256xf32>
    %c0_76 = arith.constant 0 : index
    %c3840 = arith.constant 3840 : index
    %180 = vector.load %arg1[%c0_76, %c3840] : memref<1x5248xf32, #tpu.memory_space<vmem>>, vector<1x256xf32>
    %cst_77 = arith.constant dense<0.000000e+00> : vector<256xf32>
    %181 = vector.multi_reduction <add>, %178, %cst_77 [0] : vector<8x256xf32> to vector<256xf32>
    %182 = vector.shape_cast %181 : vector<256xf32> to vector<1x256xf32>
    %cst_78 = arith.constant 8.000000e+00 : f32
    %183 = vector.broadcast %cst_78 : f32 to vector<1x256xf32>
    %184 = arith.divf %182, %183 : vector<1x256xf32>
    %185 = vector.broadcast %184 : vector<1x256xf32> to vector<8x256xf32>
    %186 = arith.subf %178, %185 : vector<8x256xf32>
    %187 = arith.mulf %186, %186 : vector<8x256xf32>
    %cst_79 = arith.constant dense<0.000000e+00> : vector<256xf32>
    %188 = vector.multi_reduction <add>, %187, %cst_79 [0] : vector<8x256xf32> to vector<256xf32>
    %189 = vector.shape_cast %188 : vector<256xf32> to vector<1x256xf32>
    %cst_80 = arith.constant 8.000000e+00 : f32
    %190 = vector.broadcast %cst_80 : f32 to vector<1x256xf32>
    %191 = arith.divf %189, %190 : vector<1x256xf32>
    %cst_81 = arith.constant 9.99999974E-6 : f32
    %192 = vector.broadcast %cst_81 : f32 to vector<1x256xf32>
    %193 = arith.addf %191, %192 : vector<1x256xf32>
    %194 = math.rsqrt %193 : vector<1x256xf32>
    %195 = arith.mulf %179, %194 : vector<1x256xf32>
    %196 = vector.broadcast %184 : vector<1x256xf32> to vector<8x256xf32>
    %197 = arith.subf %178, %196 : vector<8x256xf32>
    %198 = vector.broadcast %195 : vector<1x256xf32> to vector<8x256xf32>
    %199 = arith.mulf %197, %198 : vector<8x256xf32>
    %200 = vector.broadcast %180 : vector<1x256xf32> to vector<8x256xf32>
    %201 = arith.addf %199, %200 : vector<8x256xf32>
    %cst_82 = arith.constant 0.00999999977 : f32
    %202 = vector.broadcast %cst_82 : f32 to vector<8x256xf32>
    %203 = arith.mulf %202, %201 : vector<8x256xf32>
    %204 = arith.maximumf %201, %203 : vector<8x256xf32>
    %c0_83 = arith.constant 0 : index
    %c0_84 = arith.constant 0 : index
    %205 = vector.load %arg11[%c0_83, %c0_84] : memref<256x128xbf16, #tpu.memory_space<vmem>>, vector<256x128xbf16>
    %206 = arith.truncf %204 : vector<8x256xf32> to vector<8x256xbf16>
    %cst_85 = arith.constant dense<0.000000e+00> : vector<8x128xf32>
    %207 = tpu.matmul %206, %205, %cst_85 {dimension_numbers = #tpu.dot_dimension_numbers<[1], [0], [0], [1], [0, 0, 1, 1], [], []>} : vector<8x256xbf16>, vector<256x128xbf16>, vector<8x128xf32> -> vector<8x128xf32>
    %c0_86 = arith.constant 0 : index
    %c4096 = arith.constant 4096 : index
    %208 = vector.load %arg1[%c0_86, %c4096] : memref<1x5248xf32, #tpu.memory_space<vmem>>, vector<1x128xf32>
    %c0_87 = arith.constant 0 : index
    %c4224 = arith.constant 4224 : index
    %209 = vector.load %arg1[%c0_87, %c4224] : memref<1x5248xf32, #tpu.memory_space<vmem>>, vector<1x128xf32>
    %cst_88 = arith.constant dense<0.000000e+00> : vector<128xf32>
    %210 = vector.multi_reduction <add>, %207, %cst_88 [0] : vector<8x128xf32> to vector<128xf32>
    %211 = vector.shape_cast %210 : vector<128xf32> to vector<1x128xf32>
    %cst_89 = arith.constant 8.000000e+00 : f32
    %212 = vector.broadcast %cst_89 : f32 to vector<1x128xf32>
    %213 = arith.divf %211, %212 : vector<1x128xf32>
    %214 = vector.broadcast %213 : vector<1x128xf32> to vector<8x128xf32>
    %215 = arith.subf %207, %214 : vector<8x128xf32>
    %216 = arith.mulf %215, %215 : vector<8x128xf32>
    %cst_90 = arith.constant dense<0.000000e+00> : vector<128xf32>
    %217 = vector.multi_reduction <add>, %216, %cst_90 [0] : vector<8x128xf32> to vector<128xf32>
    %218 = vector.shape_cast %217 : vector<128xf32> to vector<1x128xf32>
    %cst_91 = arith.constant 8.000000e+00 : f32
    %219 = vector.broadcast %cst_91 : f32 to vector<1x128xf32>
    %220 = arith.divf %218, %219 : vector<1x128xf32>
    %cst_92 = arith.constant 9.99999974E-6 : f32
    %221 = vector.broadcast %cst_92 : f32 to vector<1x128xf32>
    %222 = arith.addf %220, %221 : vector<1x128xf32>
    %223 = math.rsqrt %222 : vector<1x128xf32>
    %224 = arith.mulf %208, %223 : vector<1x128xf32>
    %225 = vector.broadcast %213 : vector<1x128xf32> to vector<8x128xf32>
    %226 = arith.subf %207, %225 : vector<8x128xf32>
    %227 = vector.broadcast %224 : vector<1x128xf32> to vector<8x128xf32>
    %228 = arith.mulf %226, %227 : vector<8x128xf32>
    %229 = vector.broadcast %209 : vector<1x128xf32> to vector<8x128xf32>
    %230 = arith.addf %228, %229 : vector<8x128xf32>
    %cst_93 = arith.constant 0.00999999977 : f32
    %231 = vector.broadcast %cst_93 : f32 to vector<8x128xf32>
    %232 = arith.mulf %231, %230 : vector<8x128xf32>
    %233 = arith.maximumf %230, %232 : vector<8x128xf32>
    %c0_94 = arith.constant 0 : index
    %c0_95 = arith.constant 0 : index
    %234 = vector.load %arg12[%c0_94, %c0_95] : memref<128x64xbf16, #tpu.memory_space<vmem>>, vector<128x64xbf16>
    %235 = arith.truncf %233 : vector<8x128xf32> to vector<8x128xbf16>
    %cst_96 = arith.constant dense<0.000000e+00> : vector<8x64xf32>
    %236 = tpu.matmul %235, %234, %cst_96 {dimension_numbers = #tpu.dot_dimension_numbers<[1], [0], [0], [1], [0, 0, 1, 1], [], []>} : vector<8x128xbf16>, vector<128x64xbf16>, vector<8x64xf32> -> vector<8x64xf32>
    %c0_97 = arith.constant 0 : index
    %c4352 = arith.constant 4352 : index
    %237 = vector.load %arg1[%c0_97, %c4352] : memref<1x5248xf32, #tpu.memory_space<vmem>>, vector<1x64xf32>
    %c0_98 = arith.constant 0 : index
    %c4480 = arith.constant 4480 : index
    %238 = vector.load %arg1[%c0_98, %c4480] : memref<1x5248xf32, #tpu.memory_space<vmem>>, vector<1x64xf32>
    %cst_99 = arith.constant dense<0.000000e+00> : vector<64xf32>
    %239 = vector.multi_reduction <add>, %236, %cst_99 [0] : vector<8x64xf32> to vector<64xf32>
    %240 = vector.shape_cast %239 : vector<64xf32> to vector<1x64xf32>
    %cst_100 = arith.constant 8.000000e+00 : f32
    %241 = vector.broadcast %cst_100 : f32 to vector<1x64xf32>
    %242 = arith.divf %240, %241 : vector<1x64xf32>
    %243 = vector.broadcast %242 : vector<1x64xf32> to vector<8x64xf32>
    %244 = arith.subf %236, %243 : vector<8x64xf32>
    %245 = arith.mulf %244, %244 : vector<8x64xf32>
    %cst_101 = arith.constant dense<0.000000e+00> : vector<64xf32>
    %246 = vector.multi_reduction <add>, %245, %cst_101 [0] : vector<8x64xf32> to vector<64xf32>
    %247 = vector.shape_cast %246 : vector<64xf32> to vector<1x64xf32>
    %cst_102 = arith.constant 8.000000e+00 : f32
    %248 = vector.broadcast %cst_102 : f32 to vector<1x64xf32>
    %249 = arith.divf %247, %248 : vector<1x64xf32>
    %cst_103 = arith.constant 9.99999974E-6 : f32
    %250 = vector.broadcast %cst_103 : f32 to vector<1x64xf32>
    %251 = arith.addf %249, %250 : vector<1x64xf32>
    %252 = math.rsqrt %251 : vector<1x64xf32>
    %253 = arith.mulf %237, %252 : vector<1x64xf32>
    %254 = vector.broadcast %242 : vector<1x64xf32> to vector<8x64xf32>
    %255 = arith.subf %236, %254 : vector<8x64xf32>
    %256 = vector.broadcast %253 : vector<1x64xf32> to vector<8x64xf32>
    %257 = arith.mulf %255, %256 : vector<8x64xf32>
    %258 = vector.broadcast %238 : vector<1x64xf32> to vector<8x64xf32>
    %259 = arith.addf %257, %258 : vector<8x64xf32>
    %cst_104 = arith.constant 0.00999999977 : f32
    %260 = vector.broadcast %cst_104 : f32 to vector<8x64xf32>
    %261 = arith.mulf %260, %259 : vector<8x64xf32>
    %262 = arith.maximumf %259, %261 : vector<8x64xf32>
    %c0_105 = arith.constant 0 : index
    %c0_106 = arith.constant 0 : index
    %263 = vector.load %arg13[%c0_105, %c0_106] : memref<64x32xbf16, #tpu.memory_space<vmem>>, vector<64x32xbf16>
    %264 = arith.truncf %262 : vector<8x64xf32> to vector<8x64xbf16>
    %cst_107 = arith.constant dense<0.000000e+00> : vector<8x32xf32>
    %265 = tpu.matmul %264, %263, %cst_107 {dimension_numbers = #tpu.dot_dimension_numbers<[1], [0], [0], [1], [0, 0, 1, 1], [], []>} : vector<8x64xbf16>, vector<64x32xbf16>, vector<8x32xf32> -> vector<8x32xf32>
    %c0_108 = arith.constant 0 : index
    %c4608 = arith.constant 4608 : index
    %266 = vector.load %arg1[%c0_108, %c4608] : memref<1x5248xf32, #tpu.memory_space<vmem>>, vector<1x32xf32>
    %c0_109 = arith.constant 0 : index
    %c4736 = arith.constant 4736 : index
    %267 = vector.load %arg1[%c0_109, %c4736] : memref<1x5248xf32, #tpu.memory_space<vmem>>, vector<1x32xf32>
    %cst_110 = arith.constant dense<0.000000e+00> : vector<32xf32>
    %268 = vector.multi_reduction <add>, %265, %cst_110 [0] : vector<8x32xf32> to vector<32xf32>
    %269 = vector.shape_cast %268 : vector<32xf32> to vector<1x32xf32>
    %cst_111 = arith.constant 8.000000e+00 : f32
    %270 = vector.broadcast %cst_111 : f32 to vector<1x32xf32>
    %271 = arith.divf %269, %270 : vector<1x32xf32>
    %272 = vector.broadcast %271 : vector<1x32xf32> to vector<8x32xf32>
    %273 = arith.subf %265, %272 : vector<8x32xf32>
    %274 = arith.mulf %273, %273 : vector<8x32xf32>
    %cst_112 = arith.constant dense<0.000000e+00> : vector<32xf32>
    %275 = vector.multi_reduction <add>, %274, %cst_112 [0] : vector<8x32xf32> to vector<32xf32>
    %276 = vector.shape_cast %275 : vector<32xf32> to vector<1x32xf32>
    %cst_113 = arith.constant 8.000000e+00 : f32
    %277 = vector.broadcast %cst_113 : f32 to vector<1x32xf32>
    %278 = arith.divf %276, %277 : vector<1x32xf32>
    %cst_114 = arith.constant 9.99999974E-6 : f32
    %279 = vector.broadcast %cst_114 : f32 to vector<1x32xf32>
    %280 = arith.addf %278, %279 : vector<1x32xf32>
    %281 = math.rsqrt %280 : vector<1x32xf32>
    %282 = arith.mulf %266, %281 : vector<1x32xf32>
    %283 = vector.broadcast %271 : vector<1x32xf32> to vector<8x32xf32>
    %284 = arith.subf %265, %283 : vector<8x32xf32>
    %285 = vector.broadcast %282 : vector<1x32xf32> to vector<8x32xf32>
    %286 = arith.mulf %284, %285 : vector<8x32xf32>
    %287 = vector.broadcast %267 : vector<1x32xf32> to vector<8x32xf32>
    %288 = arith.addf %286, %287 : vector<8x32xf32>
    %cst_115 = arith.constant 0.00999999977 : f32
    %289 = vector.broadcast %cst_115 : f32 to vector<8x32xf32>
    %290 = arith.mulf %289, %288 : vector<8x32xf32>
    %291 = arith.maximumf %288, %290 : vector<8x32xf32>
    %c0_116 = arith.constant 0 : index
    %c0_117 = arith.constant 0 : index
    %292 = vector.load %arg14[%c0_116, %c0_117] : memref<32x32xbf16, #tpu.memory_space<vmem>>, vector<32x32xbf16>
    %293 = arith.truncf %291 : vector<8x32xf32> to vector<8x32xbf16>
    %cst_118 = arith.constant dense<0.000000e+00> : vector<8x32xf32>
    %294 = tpu.matmul %293, %292, %cst_118 {dimension_numbers = #tpu.dot_dimension_numbers<[1], [0], [0], [1], [0, 0, 1, 1], [], []>} : vector<8x32xbf16>, vector<32x32xbf16>, vector<8x32xf32> -> vector<8x32xf32>
    %c0_119 = arith.constant 0 : index
    %c4864 = arith.constant 4864 : index
    %295 = vector.load %arg1[%c0_119, %c4864] : memref<1x5248xf32, #tpu.memory_space<vmem>>, vector<1x32xf32>
    %c0_120 = arith.constant 0 : index
    %c4992 = arith.constant 4992 : index
    %296 = vector.load %arg1[%c0_120, %c4992] : memref<1x5248xf32, #tpu.memory_space<vmem>>, vector<1x32xf32>
    %cst_121 = arith.constant dense<0.000000e+00> : vector<32xf32>
    %297 = vector.multi_reduction <add>, %294, %cst_121 [0] : vector<8x32xf32> to vector<32xf32>
    %298 = vector.shape_cast %297 : vector<32xf32> to vector<1x32xf32>
    %cst_122 = arith.constant 8.000000e+00 : f32
    %299 = vector.broadcast %cst_122 : f32 to vector<1x32xf32>
    %300 = arith.divf %298, %299 : vector<1x32xf32>
    %301 = vector.broadcast %300 : vector<1x32xf32> to vector<8x32xf32>
    %302 = arith.subf %294, %301 : vector<8x32xf32>
    %303 = arith.mulf %302, %302 : vector<8x32xf32>
    %cst_123 = arith.constant dense<0.000000e+00> : vector<32xf32>
    %304 = vector.multi_reduction <add>, %303, %cst_123 [0] : vector<8x32xf32> to vector<32xf32>
    %305 = vector.shape_cast %304 : vector<32xf32> to vector<1x32xf32>
    %cst_124 = arith.constant 8.000000e+00 : f32
    %306 = vector.broadcast %cst_124 : f32 to vector<1x32xf32>
    %307 = arith.divf %305, %306 : vector<1x32xf32>
    %cst_125 = arith.constant 9.99999974E-6 : f32
    %308 = vector.broadcast %cst_125 : f32 to vector<1x32xf32>
    %309 = arith.addf %307, %308 : vector<1x32xf32>
    %310 = math.rsqrt %309 : vector<1x32xf32>
    %311 = arith.mulf %295, %310 : vector<1x32xf32>
    %312 = vector.broadcast %300 : vector<1x32xf32> to vector<8x32xf32>
    %313 = arith.subf %294, %312 : vector<8x32xf32>
    %314 = vector.broadcast %311 : vector<1x32xf32> to vector<8x32xf32>
    %315 = arith.mulf %313, %314 : vector<8x32xf32>
    %316 = vector.broadcast %296 : vector<1x32xf32> to vector<8x32xf32>
    %317 = arith.addf %315, %316 : vector<8x32xf32>
    %cst_126 = arith.constant 0.00999999977 : f32
    %318 = vector.broadcast %cst_126 : f32 to vector<8x32xf32>
    %319 = arith.mulf %318, %317 : vector<8x32xf32>
    %320 = arith.maximumf %317, %319 : vector<8x32xf32>
    %c0_127 = arith.constant 0 : index
    %c0_128 = arith.constant 0 : index
    %321 = vector.load %arg15[%c0_127, %c0_128] : memref<32x16xbf16, #tpu.memory_space<vmem>>, vector<32x16xbf16>
    %322 = arith.truncf %320 : vector<8x32xf32> to vector<8x32xbf16>
    %cst_129 = arith.constant dense<0.000000e+00> : vector<8x16xf32>
    %323 = tpu.matmul %322, %321, %cst_129 {dimension_numbers = #tpu.dot_dimension_numbers<[1], [0], [0], [1], [0, 0, 1, 1], [], []>} : vector<8x32xbf16>, vector<32x16xbf16>, vector<8x16xf32> -> vector<8x16xf32>
    %c0_130 = arith.constant 0 : index
    %c5120 = arith.constant 5120 : index
    %324 = vector.load %arg1[%c0_130, %c5120] : memref<1x5248xf32, #tpu.memory_space<vmem>>, vector<1x16xf32>
    %325 = vector.broadcast %324 : vector<1x16xf32> to vector<8x16xf32>
    %326 = arith.addf %323, %325 : vector<8x16xf32>
    %cst_131 = arith.constant 0.000000e+00 : f32
    %327 = vector.broadcast %cst_131 : f32 to vector<8x16xf32>
    %328 = arith.subf %327, %326 : vector<8x16xf32>
    %329 = math.exp %328 : vector<8x16xf32>
    %cst_132 = arith.constant 1.000000e+00 : f32
    %330 = vector.broadcast %cst_132 : f32 to vector<8x16xf32>
    %331 = arith.addf %330, %329 : vector<8x16xf32>
    %cst_133 = arith.constant 1.000000e+00 : f32
    %332 = vector.broadcast %cst_133 : f32 to vector<8x16xf32>
    %333 = arith.divf %332, %331 : vector<8x16xf32>
    %c0_134 = arith.constant 0 : index
    %c0_135 = arith.constant 0 : index
    %334 = vector.load %arg16[%c0_134, %c0_135] : memref<8x32xf32, #tpu.memory_space<vmem>>, vector<8x16xf32>
    tpu.vector_store %arg16[%c0_134, %c0_135], %333 {strides = array<i32>} : memref<8x32xf32, #tpu.memory_space<vmem>>, vector<8x16xf32>,
    %c0_136 = arith.constant 0 : index
    %c16_137 = arith.constant 16 : index
    %335 = vector.load %arg16[%c0_136, %c16_137] : memref<8x32xf32, #tpu.memory_space<vmem>>, vector<8x8xf32>
    tpu.vector_store %arg16[%c0_136, %c16_137], %153 {strides = array<i32>} : memref<8x32xf32, #tpu.memory_space<vmem>>, vector<8x8xf32>,
    %c0_138 = arith.constant 0 : index
    %c24 = arith.constant 24 : index
    %336 = vector.load %arg16[%c0_138, %c24] : memref<8x32xf32, #tpu.memory_space<vmem>>, vector<8x8xf32>
    tpu.vector_store %arg16[%c0_138, %c24], %159 {strides = array<i32>} : memref<8x32xf32, #tpu.memory_space<vmem>>, vector<8x8xf32>,
    return
  }
}

</mosaic_0001>

<bundles_post_ra>
// kernel: cvae_forward.1
= control target key start
LH: loop header
LB: loop body
LE: loop exit
PB: predicated region body
PF: predicated region fallthrough
CT: control target
= control target key end

     0   :  { %vm72_vm0 = vcmask 1040384   ;;  %v4346_v1 = vmov 0   ;;  %vm68_vm1 = vcmask 138240   ;;  %v4347_v9 = vmov 8.0   ;;  %s4349_s20 = smov 24   ;;  %s4350_s21 = smov 17   ;;  %s5915_s2 = inlined_call_operand.vmem [shape: bf16[17,32], index: 2, kind: input, shape index: {}]   ;;  %s5916_s1 = inlined_call_operand.vmem [shape: f32[1,5248], index: 1, kind: input, shape index: {}]   ;;  %s5917_s0 = inlined_call_operand.vmem [shape: f32[8,32], index: 0, kind: input, shape index: {}]   ;;  %s5918_s3 = inlined_call_operand.vmem [shape: bf16[32,64], index: 3, kind: input, shape index: {}]   ;;  %s5919_s4 = inlined_call_operand.vmem [shape: bf16[64,128], index: 4, kind: input, shape index: {}]   ;;  %s5920_s5 = inlined_call_operand.vmem [shape: bf16[128,256], index: 5, kind: input, shape index: {}]   ;;  %s5921_s6 = inlined_call_operand.vmem [shape: bf16[256,512], index: 6, kind: input, shape index: {}]   ;;  %s5922_s7 = inlined_call_operand.vmem [shape: bf16[512,8], index: 7, kind: input, shape index: {}]   ;;  %s5923_s8 = inlined_call_operand.vmem [shape: bf16[512,8], index: 8, kind: input, shape index: {}]   ;;  %s5924_s9 = inlined_call_operand.vmem [shape: bf16[8,512], index: 9, kind: input, shape index: {}]   ;;  %s5925_s10 = inlined_call_operand.vmem [shape: bf16[512,256], index: 10, kind: input, shape index: {}]   ;;  %s5926_s11 = inlined_call_operand.vmem [shape: bf16[256,128], index: 11, kind: input, shape index: {}]   ;;  %s5927_s12 = inlined_call_operand.vmem [shape: bf16[128,64], index: 12, kind: input, shape index: {}]   ;;  %s5928_s13 = inlined_call_operand.vmem [shape: bf16[64,32], index: 13, kind: input, shape index: {}]   ;;  %s5929_s14 = inlined_call_operand.vmem [shape: bf16[32,32], index: 14, kind: input, shape index: {}]   ;;  %s5930_s15 = inlined_call_operand.vmem [shape: bf16[32,16], index: 15, kind: input, shape index: {}]   ;;  %s5931_s16 = inlined_call_operand.vmem [shape: f32[8,32], index: 16, kind: output, shape index: {}]  }
   0x1   :  { %5933 = sst [smem:[#allocation2_spill]] %s5915_s2  ;;  %v74_v2 = vsel %vm72_vm0, 65535, %v4346_v1  ;;  %v54_v7 = vld [vmem:[%s5917_s0] sm:$0xff]  ;;  %4307 = vrcp.f32 %v4347_v9  ;;  %vm93_vm2 = vcmask 261120   ;;  %v4043_v33 = vld [vmem:[%s5918_s3 + $0x8] sm:$0xff]  ;;  %vm176_vm7 = vcmask 523264  }
   0x2   :  { %s5934_s23 = sld [smem:[#allocation2_spill]]  ;;  %v58_v8 = vpack.c.bf16 %v54_v7, %v54_v7  ;;  %167 = vmatpush.bf16.msra.mxu1 %v4043_v33  ;;  %v4042_v35 = vld [vmem:[%s5918_s3] sm:$0xff]  ;;  %v4046_v7 = vld [vmem:[%s5919_s4 + $0x10] sm:$0xff]  ;;  %s4348_s3 = smov 16  }
   0x3   :  { %v91_v44 = vld [vmem:[%s5916_s1] sm:$0x1]  ;;  %v4297_v49 = vld [vmem:[%s5916_s1 + $0x1] ss:$0 sm:$0xff]  ;;  %s4351_s26 = smov 111  }
   0x6   :  { %168 = vmatpush.bf16.msra.mxu1 %v4042_v35  ;;  %v3132_v35 = vld [vmem:[%s5920_s5 + $0x70] sm:$0xf] }
   0x7   :  { %v4308_v10 = vpop.eup %4307 }
   0x8   :  { %v57_v0 = vld [vmem:[%s5934_s23 + $0x8] sm:$0x1]  ;;  %v4041_v6 = vld [vmem:[%s5934_s23] sm:$0xff]  ;;  %v102_v11 = vmul.f32 8.0, %v4308_v10  ;;  %vm106_vm3 = vweird.f32 %v4308_v10 }
   0x9   :  { %v64_v3 = vunpack.c.l.b16 %v57_v0 }
   0xa   :  { %v103_v12 = vsub.f32 1.0, %v102_v11 }
   0xb   :  { %v66_v4 = vpack.c.b16 %v64_v3, %v64_v3 }
   0xc   :  { %v104_v16 = vmul.f32 %v4308_v10, %v103_v12  ;;  %v4044_v12 = vld [vmem:[%s5919_s4] sm:$0xff] }
   0xd   :  { %v76_v5 = vand.u32 %v74_v2, %v66_v4  ;;  %v4047_v4 = vld [vmem:[%s5919_s4 + $0x18] sm:$0xff] }
   0xe   :  { %v105_v19 = vadd.f32 %v4308_v10, %v104_v16  ;;  %257 = vmatpush.bf16.msra.mxu2 %v4047_v4  ;;  %v3100_v4 = vld [vmem:[%s5920_s5 + $0x30] sm:$0xf] }
   0xf   :  { %84 = vmatpush.bf16.msra.mxu0 %v76_v5 }
  0x10   :  { %v4449_v23 = vsel %vm106_vm3, %v4308_v10, %v105_v19  ;;  %v4045_v10 = vld [vmem:[%s5919_s4 + $0x8] sm:$0xff] }
  0x12   :  { %258 = vmatpush.bf16.msra.mxu2 %v4046_v7 }
  0x13   :  { %85 = vmatpush.bf16.msra.mxu0 %v4041_v6 }
  0x16   :  { %3047 = vmatmul.msk.bf16.vlgmr.msra.gmra.mxu0 %vm68_vm1, %v58_v8  ;;  %259 = vmatpush.bf16.msra.mxu2 %v4045_v10 }
  0x1a   :  { %260 = vmatpush.bf16.msra.mxu2 %v4044_v12  ;;  %v3092_v12 = vld [vmem:[%s5920_s5 + $0x20] sm:$0xf] }
  0x93   :  { %v87_v13 = vpop.f32.mrf.mxu0 }
  0x94   :  { %v94_v14 = vsel %vm93_vm2, %v87_v13, 0.0 }
  0x95   :  { %v95_v15 = vrot.slane %v94_v14, 4 }
  0x97   :  { %v96_v17 = vadd.f32 %v95_v15, %v94_v14 }
  0x99   :  { %v97_v18 = vrot.slane %v96_v17, 2 }
  0x9b   :  { %v98_v20 = vadd.f32 %v97_v18, %v96_v17  ;;  %v89_v21 = vpop.f32.mrf.mxu0 }
  0x9c   :  { %v174_v21 = vld [vmem:[%s5916_s1 + $0x2] sm:$0x1] }
  0x9d   :  { %v99_v22 = vrot.slane %v98_v20, 1 }
  0x9f   :  { %v100_v24 = vadd.f32 %v99_v22, %v98_v20 }
  0xa1   :  { %v108_v25 = vmul.f32 %v4449_v23, %v100_v24 }
  0xa3   :  { %v109_v26 = vsub.f32 %v87_v13, %v108_v25 }
  0xa5   :  { %v110_v27 = vmul.f32 %v109_v26, %v109_v26 }
  0xa7   :  { %v111_v28 = vsel %vm93_vm2, %v110_v27, 0.0  ;;  %v4298_v27 = vld [vmem:[%s5916_s1 + $0x3] ss:$0 sm:$0xff] }
  0xa8   :  { %v112_v29 = vrot.slane %v111_v28, 4 }
  0xaa   :  { %v113_v30 = vadd.f32 %v112_v29, %v111_v28 }
  0xac   :  { %v114_v31 = vrot.slane %v113_v30, 2 }
  0xae   :  { %v115_v32 = vadd.f32 %v114_v31, %v113_v30 }
  0xb0   :  { %v116_v34 = vrot.slane %v115_v32, 1 }
  0xb2   :  { %v117_v36 = vadd.f32 %v116_v34, %v115_v32 }
  0xb4   :  { %v118_v37 = vmul.f32 %v117_v36, %v4449_v23  ;;  %v4063_v36 = vld [vmem:[%s5920_s5 + $0x74] sm:$0xf0] }
  0xb6   :  { %v119_v38 = vadd.f32 1e-05, %v118_v37  ;;  %v3133_v37 = vor.u32 %v4063_v36, %v3132_v35 }
  0xb8   :  { %4309 = vrsqrt.f32 %v119_v38  ;;  %vm126_vm5 = vweird.f32 %v119_v38  ;;  %403 = vmatpush.bf16.msra.mxu3 %v3133_v37 }
  0xbe   :  { %v4310_v39 = vpop.eup %4309 }
  0xbf   :  { %v121_v40 = vmul.f32 %v4310_v39, %v119_v38  ;;  %vm127_vm4 = vweird.f32 %v4310_v39  ;;  %v4062_v38 = vld [vmem:[%s5920_s5 + $0x74] sm:$0xf] }
  0xc0   :  { %vm128_vm6 = vmor %vm126_vm5, %vm127_vm4 }
  0xc1   :  { %v122_v41 = vmul.f32 %v4310_v39, %v121_v40 }
  0xc3   :  { %v123_v42 = vmul.f32 0.5, %v122_v41 }
  0xc5   :  { %v124_v43 = vsub.f32 1.5, %v123_v42 }
  0xc7   :  { %v125_v45 = vmul.f32 %v4310_v39, %v124_v43  ;;  %v3124_v43 = vld [vmem:[%s5920_s5 + $0x60] sm:$0xf] }
  0xc9   :  { %v129_v46 = vsel %vm128_vm6, %v4310_v39, %v125_v45  ;;  %v3134_v39 = vld [vmem:[%s5920_s5 + $0x78] sm:$0xf0] }
  0xca   :  { %v130_v47 = vmul.f32 %v129_v46, %v91_v44  ;;  %v3137_v41 = vor.u32 %v4062_v38, %v3134_v39  ;;  %v4061_v44 = vld [vmem:[%s5920_s5 + $0x64] sm:$0xf0]  ;;  %v4060_v46 = vld [vmem:[%s5920_s5 + $0x64] sm:$0xf] }
  0xcb   :  { %v3125_v45 = vor.u32 %v4061_v44, %v3124_v43 }
  0xcc   :  { %v132_v48 = vperm.slane %v130_v47, 0  ;;  %416 = vmatpush.bf16.msrb.mxu0 %v3137_v41  ;;  %v3126_v47 = vld [vmem:[%s5920_s5 + $0x68] sm:$0xf0] }
  0xcd   :  { %404 = vmatpush.bf16.msra.mxu3 %v3125_v45 }
  0xce   :  { %v134_v50 = vmul.f32 %v132_v48, %v109_v26 }
  0xd0   :  { %v138_v51 = vadd.f32 %v4297_v49, %v134_v50  ;;  %v3129_v49 = vor.u32 %v4060_v46, %v3126_v47  ;;  %v4299_v47 = vld [vmem:[%s5916_s1 + $0x5] ss:$0 sm:$0xff] }
  0xd2   :  { %v139_v52 = vmul.f32 0.01, %v138_v51  ;;  %417 = vmatpush.bf16.msrb.mxu0 %v3129_v49 }
  0xd4   :  { %v140_v53 = vmax.f32 %v138_v51, %v139_v52  ;;  %v3116_v52 = vld [vmem:[%s5920_s5 + $0x50] sm:$0xf] }
  0xd6   :  { %v145_v54 = vpack.c.bf16 %v140_v53, %v140_v53  ;;  %v4059_v53 = vld [vmem:[%s5920_s5 + $0x54] sm:$0xf0] }
  0xd8   :  { %3056 = vmatmul.msk.bf16.vlgmr.msra.gmra.mxu1 %vm93_vm2, %v145_v54  ;;  %v3117_v54 = vor.u32 %v4059_v53, %v3116_v52  ;;  %v3252_v53 = vld [vmem:[%s5921_s6 + $0xe0] sm:$0xf] }
  0xda   :  { %405 = vmatpush.bf16.msra.mxu3 %v3117_v54  ;;  %v4094_v54 = vld [vmem:[%s5921_s6 + $0xec] sm:$0xf0] }
 0x155   :  { %v170_v55 = vpop.f32.mrf.mxu1 }
 0x156   :  { %v177_v56 = vsel %vm176_vm7, %v170_v55, 0.0 }
 0x157   :  { %v178_v57 = vrot.slane %v177_v56, 4 }
 0x159   :  { %v179_v58 = vadd.f32 %v178_v57, %v177_v56  ;;  %v3118_v56 = vld [vmem:[%s5920_s5 + $0x58] sm:$0xf0] }
 0x15b   :  { %v180_v59 = vrot.slane %v179_v58, 2 }
 0x15d   :  { %v181_v60 = vadd.f32 %v180_v59, %v179_v58  ;;  %v172_v61 = vpop.f32.mrf.mxu1 }
 0x15e   :  { %v4057_v61 = vld [vmem:[%s5920_s5 + $0x44] sm:$0xf0] }
 0x15f   :  { %v182_v62 = vrot.slane %v181_v60, 1 }
 0x161   :  { %v183_v63 = vadd.f32 %v182_v62, %v181_v60  ;;  %v3108_v60 = vld [vmem:[%s5920_s5 + $0x40] sm:$0xf]  ;;  %v4056_v62 = vld [vmem:[%s5920_s5 + $0x44] sm:$0xf] }
 0x163   :  { %v184_v0 = vmul.f32 %v183_v63, %v4449_v23  ;;  %v3109_v63 = vor.u32 %v4057_v61, %v3108_v60 }
 0x165   :  { %v185_v1 = vsub.f32 %v170_v55, %v184_v0  ;;  %v4058_v55 = vld [vmem:[%s5920_s5 + $0x54] sm:$0xf]  ;;  %v3110_v0 = vld [vmem:[%s5920_s5 + $0x48] sm:$0xf0]  ;;  %406 = vmatpush.bf16.msra.mxu3 %v3109_v63 }
 0x166   :  { %v3121_v58 = vor.u32 %v4058_v55, %v3118_v56  ;;  %v3380_v55 = vld [vmem:[%s5921_s6 + $0x1e0] sm:$0xf]  ;;  %v3253_v56 = vor.u32 %v4094_v54, %v3252_v53  ;;  %v3382_v63 = vld [vmem:[%s5921_s6 + $0x1f0] sm:$0xf0]  ;;  %v4110_v54 = vld [vmem:[%s5921_s6 + $0x16c] sm:$0xf0] }
 0x167   :  { %v186_v2 = vmul.f32 %v185_v1, %v185_v1  ;;  %v3316_v53 = vld [vmem:[%s5921_s6 + $0x160] sm:$0xf] }
 0x168   :  { %418 = vmatpush.bf16.msrb.mxu0 %v3121_v58  ;;  %v4092_v58 = vld [vmem:[%s5921_s6 + $0xe4] sm:$0xf]  ;;  %895 = vmatpush.bf16.msrb.mxu1 %v3253_v56 }
 0x169   :  { %v187_v3 = vsel %vm176_vm7, %v186_v2, 0.0  ;;  %v3113_v2 = vor.u32 %v4056_v62, %v3110_v0  ;;  %v4124_v62 = vld [vmem:[%s5921_s6 + $0x1e4] sm:$0xf] }
 0x16a   :  { %v188_v5 = vrot.slane %v187_v3, 4  ;;  %v3385_v0 = vor.u32 %v4124_v62, %v3382_v63 }
 0x16c   :  { %v189_v6 = vadd.f32 %v188_v5, %v187_v3  ;;  %419 = vmatpush.bf16.msrb.mxu0 %v3113_v2  ;;  %v4055_v5 = vld [vmem:[%s5920_s5 + $0x34] sm:$0xf0]  ;;  %v4090_v2 = vld [vmem:[%s5921_s6 + $0xcc] sm:$0xf0] }
 0x16d   :  { %v3101_v7 = vor.u32 %v4055_v5, %v3100_v4 }
 0x16e   :  { %v190_v8 = vrot.slane %v189_v6, 2 }
 0x16f   :  { %407 = vmatpush.bf16.msra.mxu3 %v3101_v7  ;;  %v4088_v7 = vld [vmem:[%s5921_s6 + $0xc4] sm:$0xf] }
 0x170   :  { %v191_v9 = vadd.f32 %v190_v8, %v189_v6  ;;  %v4054_v6 = vld [vmem:[%s5920_s5 + $0x34] sm:$0xf]  ;;  %v3102_v8 = vld [vmem:[%s5920_s5 + $0x38] sm:$0xf0] }
 0x171   :  { %v3105_v10 = vor.u32 %v4054_v6, %v3102_v8  ;;  %v4122_v6 = vld [vmem:[%s5921_s6 + $0x1cc] sm:$0xf0]  ;;  %v3238_v8 = vld [vmem:[%s5921_s6 + $0xd0] sm:$0xf0] }
 0x172   :  { %v192_v11 = vrot.slane %v191_v9, 1 }
 0x173   :  { %420 = vmatpush.bf16.msrb.mxu0 %v3105_v10 }
 0x174   :  { %v193_v13 = vadd.f32 %v192_v11, %v191_v9 }
 0x176   :  { %v194_v14 = vmul.f32 %v193_v13, %v4449_v23  ;;  %v4053_v13 = vld [vmem:[%s5920_s5 + $0x24] sm:$0xf0] }
 0x178   :  { %v195_v15 = vadd.f32 1e-05, %v194_v14  ;;  %v4052_v14 = vld [vmem:[%s5920_s5 + $0x24] sm:$0xf] }
 0x17a   :  { %4311 = vrsqrt.f32 %v195_v15  ;;  %vm202_vm9 = vweird.f32 %v195_v15 }
 0x180   :  { %v4312_v16 = vpop.eup %4311 }
 0x181   :  { %v197_v17 = vmul.f32 %v4312_v16, %v195_v15  ;;  %vm203_vm8 = vweird.f32 %v4312_v16  ;;  %v3093_v15 = vor.u32 %v4053_v13, %v3092_v12  ;;  %v4120_v12 = vld [vmem:[%s5921_s6 + $0x1c4] sm:$0xf]  ;;  %v3366_v13 = vld [vmem:[%s5921_s6 + $0x1d0] sm:$0xf0] }
 0x182   :  { %vm204_vm10 = vmor %vm202_vm9, %vm203_vm8 }
 0x183   :  { %v198_v18 = vmul.f32 %v4312_v16, %v197_v17  ;;  %408 = vmatpush.bf16.msra.mxu3 %v3093_v15 }
 0x185   :  { %v199_v19 = vmul.f32 0.5, %v198_v18 }
 0x187   :  { %v200_v20 = vsub.f32 1.5, %v199_v19 }
 0x189   :  { %v201_v22 = vmul.f32 %v4312_v16, %v200_v20  ;;  %v3084_v20 = vld [vmem:[%s5920_s5 + $0x10] sm:$0xf] }
 0x18b   :  { %v205_v24 = vsel %vm204_vm10, %v4312_v16, %v201_v22  ;;  %v3094_v16 = vld [vmem:[%s5920_s5 + $0x28] sm:$0xf0]  ;;  %v4050_v22 = vld [vmem:[%s5920_s5 + $0x14] sm:$0xf] }
 0x18c   :  { %v206_v25 = vmul.f32 %v205_v24, %v174_v21  ;;  %v3097_v18 = vor.u32 %v4052_v14, %v3094_v16  ;;  %v4051_v21 = vld [vmem:[%s5920_s5 + $0x14] sm:$0xf0]  ;;  %v3369_v14 = vor.u32 %v4120_v12, %v3366_v13  ;;  %v3220_v16 = vld [vmem:[%s5921_s6 + $0xa0] sm:$0xf] }
 0x18d   :  { %v3085_v24 = vor.u32 %v4051_v21, %v3084_v20  ;;  %v4118_v20 = vld [vmem:[%s5921_s6 + $0x1ac] sm:$0xf0]  ;;  %v4084_v21 = vld [vmem:[%s5921_s6 + $0xa4] sm:$0xf] }
 0x18e   :  { %v208_v26 = vperm.slane %v206_v25, 0  ;;  %421 = vmatpush.bf16.msrb.mxu0 %v3097_v18  ;;  %v3086_v25 = vld [vmem:[%s5920_s5 + $0x18] sm:$0xf0]  ;;  %v3348_v18 = vld [vmem:[%s5921_s6 + $0x1a0] sm:$0xf] }
 0x18f   :  { %409 = vmatpush.bf16.msra.mxu3 %v3085_v24 }
 0x190   :  { %v210_v28 = vmul.f32 %v208_v26, %v185_v1  ;;  %v3076_v26 = vld [vmem:[%s5920_s5] sm:$0xf] }
 0x192   :  { %v214_v29 = vadd.f32 %v4298_v27, %v210_v28  ;;  %v4049_v27 = vld [vmem:[%s5920_s5 + $0x4] sm:$0xf0] }
 0x194   :  { %v215_v30 = vmul.f32 0.01, %v214_v29 }
 0x196   :  { %v216_v31 = vmax.f32 %v214_v29, %v215_v30  ;;  %v3089_v29 = vor.u32 %v4050_v22, %v3086_v25  ;;  %v4048_v30 = vld [vmem:[%s5920_s5 + $0x4] sm:$0xf]  ;;  %v3222_v22 = vld [vmem:[%s5921_s6 + $0xb0] sm:$0xf0]  ;;  %v3349_v25 = vor.u32 %v4118_v20, %v3348_v18  ;;  %v4070_v20 = vld [vmem:[%s5921_s6 + $0x2c] sm:$0xf0] }
 0x198   :  { %v225_v32 = vpack.c.bf16 %v216_v31, %v216_v31  ;;  %v3078_v31 = vld [vmem:[%s5920_s5 + $0x8] sm:$0xf0]  ;;  %422 = vmatpush.bf16.msrb.mxu0 %v3089_v29 }
 0x19a   :  { %3073 = vmatmul.msk.bf16.vlgmr.msra.gmra.mxu2 %vm176_vm7, %v225_v32  ;;  %v3077_v32 = vor.u32 %v4049_v27, %v3076_v26  ;;  %v3225_v26 = vor.u32 %v4084_v21, %v3222_v22  ;;  %v4116_v27 = vld [vmem:[%s5921_s6 + $0x1a4] sm:$0xf]  ;;  %v3284_v22 = vld [vmem:[%s5921_s6 + $0x120] sm:$0xf] }
 0x19c   :  { %410 = vmatpush.bf16.msra.mxu3 %v3077_v32 }
 0x21d   :  { %v262_v33 = vpop.f32.mrf.mxu2 }
 0x21e   :  { %v268_v34 = vrot.slane %v262_v33, 4 }
 0x220   :  { %v269_v40 = vadd.f32 %v268_v34, %v262_v33  ;;  %v3081_v34 = vor.u32 %v4048_v30, %v3078_v31 }
 0x222   :  { %v270_v42 = vrot.slane %v269_v40, 2  ;;  %423 = vmatpush.bf16.msrb.mxu0 %v3081_v34  ;;  %v4082_v34 = vld [vmem:[%s5921_s6 + $0x8c] sm:$0xf0] }
 0x224   :  { %v271_v48 = vadd.f32 %v270_v42, %v269_v40  ;;  %v266_v42 = vld [vmem:[%s5916_s1 + $0x4] sm:$0x1] }
 0x225   :  { %v264_v50 = vpop.f32.mrf.mxu2 }
 0x226   :  { %v272_v51 = vrot.slane %v271_v48, 1  ;;  %934 = vmatpush.bf16.msra.mxu0 %v3385_v0 }
 0x228   :  { %v273_v57 = vadd.f32 %v272_v51, %v271_v48 }
 0x22a   :  { %v274_v59 = vmul.f32 %v273_v57, %v4449_v23  ;;  %v4126_v57 = vld [vmem:[%s5921_s6 + $0x1ec] sm:$0xf0]  ;;  %935 = vmatpush.bf16.msra.mxu0 %v3369_v14  ;;  %v4104_v14 = vld [vmem:[%s5921_s6 + $0x144] sm:$0xf] }
 0x22b   :  { %v3381_v60 = vor.u32 %v4126_v57, %v3380_v55  ;;  %v4076_v55 = vld [vmem:[%s5921_s6 + $0x64] sm:$0xf] }
 0x22c   :  { %v275_v1 = vsub.f32 %v262_v33, %v274_v59  ;;  %v3254_v59 = vld [vmem:[%s5921_s6 + $0xf0] sm:$0xf0] }
 0x22d   :  { %v3257_v61 = vor.u32 %v4092_v58, %v3254_v59  ;;  %908 = vmatpush.bf16.msrb.mxu2 %v3381_v60  ;;  %v3317_v58 = vor.u32 %v4110_v54, %v3316_v53  ;;  %v3190_v59 = vld [vmem:[%s5921_s6 + $0x70] sm:$0xf0]  ;;  %v4108_v60 = vld [vmem:[%s5921_s6 + $0x164] sm:$0xf] }
 0x22e   :  { %v276_v3 = vmul.f32 %v275_v1, %v275_v1  ;;  %v3193_v63 = vor.u32 %v4076_v55, %v3190_v59  ;;  %v3388_v55 = vld [vmem:[%s5921_s6 + $0x1e8] sm:$0xf]  ;;  %v3262_v59 = vld [vmem:[%s5921_s6 + $0xf8] sm:$0xf0] }
 0x22f   :  { %921 = vmatpush.bf16.msrb.mxu3 %v3257_v61  ;;  %v3318_v61 = vld [vmem:[%s5921_s6 + $0x170] sm:$0xf0] }
 0x230   :  { %v277_v9 = vrot.slane %v276_v3, 4  ;;  %v3321_v0 = vor.u32 %v4108_v60, %v3318_v61  ;;  %v4125_v60 = vld [vmem:[%s5921_s6 + $0x1ec] sm:$0xf] }
 0x232   :  { %v278_v11 = vadd.f32 %v277_v9, %v276_v3  ;;  %v3364_v3 = vld [vmem:[%s5921_s6 + $0x1c0] sm:$0xf] }
 0x233   :  { %v3365_v10 = vor.u32 %v4122_v6, %v3364_v3  ;;  %v3172_v3 = vld [vmem:[%s5921_s6 + $0x40] sm:$0xf] }
 0x234   :  { %v279_v17 = vrot.slane %v278_v11, 2 }
 0x235   :  { %909 = vmatpush.bf16.msrb.mxu2 %v3365_v10  ;;  %v4072_v10 = vld [vmem:[%s5921_s6 + $0x44] sm:$0xf] }
 0x236   :  { %v280_v19 = vadd.f32 %v279_v17, %v278_v11  ;;  %v3241_v11 = vor.u32 %v4088_v7, %v3238_v8  ;;  %v4086_v17 = vld [vmem:[%s5921_s6 + $0xac] sm:$0xf0]  ;;  %v3300_v7 = vld [vmem:[%s5921_s6 + $0x140] sm:$0xf] }
 0x238   :  { %v281_v28 = vrot.slane %v280_v19, 1  ;;  %922 = vmatpush.bf16.msrb.mxu3 %v3241_v11  ;;  %v3174_v11 = vld [vmem:[%s5921_s6 + $0x50] sm:$0xf0] }
 0x239   :  { %910 = vmatpush.bf16.msrb.mxu2 %v3349_v25  ;;  %v3177_v13 = vor.u32 %v4072_v10, %v3174_v11  ;;  %v4068_v25 = vld [vmem:[%s5921_s6 + $0x24] sm:$0xf]  ;;  %v4089_v11 = vld [vmem:[%s5921_s6 + $0xcc] sm:$0xf] }
 0x23a   :  { %v282_v33 = vadd.f32 %v281_v28, %v280_v19  ;;  %v3221_v19 = vor.u32 %v4086_v17, %v3220_v16  ;;  %v3350_v28 = vld [vmem:[%s5921_s6 + $0x1b0] sm:$0xf0] }
 0x23b   :  { %v3353_v30 = vor.u32 %v4116_v27, %v3350_v28 }
 0x23c   :  { %v283_v35 = vmul.f32 %v282_v33, %v4449_v23  ;;  %923 = vmatpush.bf16.msrb.mxu3 %v3225_v26  ;;  %v3204_v33 = vld [vmem:[%s5921_s6 + $0x80] sm:$0xf] }
 0x23d   :  { %936 = vmatpush.bf16.msra.mxu0 %v3353_v30  ;;  %v3158_v30 = vld [vmem:[%s5921_s6 + $0x30] sm:$0xf0] }
 0x23e   :  { %v284_v36 = vadd.f32 1e-05, %v283_v35 }
 0x240   :  { %4313 = vrsqrt.f32 %v284_v36  ;;  %vm291_vm12 = vweird.f32 %v284_v36 }
 0x246   :  { %v4314_v37 = vpop.eup %4313 }
 0x247   :  { %v286_v38 = vmul.f32 %v4314_v37, %v284_v36  ;;  %vm292_vm11 = vweird.f32 %v4314_v37  ;;  %v3205_v36 = vor.u32 %v4082_v34, %v3204_v33  ;;  %v3161_v33 = vor.u32 %v4068_v25, %v3158_v30  ;;  %v4085_v25 = vld [vmem:[%s5921_s6 + $0xac] sm:$0xf]  ;;  %v3230_v30 = vld [vmem:[%s5921_s6 + $0xb8] sm:$0xf0] }
 0x248   :  { %vm293_vm13 = vmor %vm291_vm12, %vm292_vm11 }
 0x249   :  { %v287_v39 = vmul.f32 %v4314_v37, %v286_v38  ;;  %v4114_v38 = vld [vmem:[%s5921_s6 + $0x18c] sm:$0xf0] }
 0x24b   :  { %v288_v40 = vmul.f32 0.5, %v287_v39  ;;  %v4080_v39 = vld [vmem:[%s5921_s6 + $0x84] sm:$0xf] }
 0x24d   :  { %v289_v41 = vsub.f32 1.5, %v288_v40 }
 0x24f   :  { %v290_v43 = vmul.f32 %v4314_v37, %v289_v41 }
 0x251   :  { %v294_v44 = vsel %vm293_vm13, %v4314_v37, %v290_v43  ;;  %v3332_v37 = vld [vmem:[%s5921_s6 + $0x180] sm:$0xf]  ;;  %v3206_v43 = vld [vmem:[%s5921_s6 + $0x90] sm:$0xf0] }
 0x252   :  { %v295_v45 = vmul.f32 %v294_v44, %v266_v42  ;;  %v3333_v42 = vor.u32 %v4114_v38, %v3332_v37  ;;  %v4112_v44 = vld [vmem:[%s5921_s6 + $0x184] sm:$0xf]  ;;  %v4066_v37 = vld [vmem:[%s5921_s6 + $0xc] sm:$0xf0] }
 0x254   :  { %v297_v46 = vperm.slane %v295_v45, 0  ;;  %v3209_v45 = vor.u32 %v4080_v39, %v3206_v43  ;;  %911 = vmatpush.bf16.msrb.mxu2 %v3333_v42  ;;  %v3268_v39 = vld [vmem:[%s5921_s6 + $0x100] sm:$0xf] }
 0x256   :  { %v299_v48 = vmul.f32 %v297_v46, %v275_v1  ;;  %v3236_v1 = vld [vmem:[%s5921_s6 + $0xc0] sm:$0xf]  ;;  %v3334_v46 = vld [vmem:[%s5921_s6 + $0x190] sm:$0xf0]  ;;  %924 = vmatpush.bf16.msrb.mxu3 %v3209_v45 }
 0x257   :  { %v3237_v5 = vor.u32 %v4090_v2, %v3236_v1  ;;  %v3142_v45 = vld [vmem:[%s5921_s6 + $0x10] sm:$0xf0] }
 0x258   :  { %v303_v49 = vadd.f32 %v4299_v47, %v299_v48  ;;  %912 = vmatpush.bf16.msrb.mxu2 %v3317_v58  ;;  %v4093_v58 = vld [vmem:[%s5921_s6 + $0xec] sm:$0xf] }
 0x259   :  { %896 = vmatpush.bf16.msrb.mxu1 %v3237_v5  ;;  %v4074_v5 = vld [vmem:[%s5921_s6 + $0x4c] sm:$0xf0] }
 0x25a   :  { %v304_v50 = vmul.f32 0.01, %v303_v49  ;;  %925 = vmatpush.bf16.msrb.mxu3 %v3193_v63  ;;  %v3173_v6 = vor.u32 %v4074_v5, %v3172_v3  ;;  %v3265_v63 = vor.u32 %v4093_v58, %v3262_v59  ;;  %v4091_v5 = vld [vmem:[%s5921_s6 + $0xd4] sm:$0xf0]  ;;  %v4109_v59 = vld [vmem:[%s5921_s6 + $0x16c] sm:$0xf] }
 0x25c   :  { %v305_v51 = vmax.f32 %v303_v49, %v304_v50  ;;  %v3337_v49 = vor.u32 %v4112_v44, %v3334_v46  ;;  %v3188_v50 = vld [vmem:[%s5921_s6 + $0x60] sm:$0xf]  ;;  %v4096_v46 = vld [vmem:[%s5921_s6 + $0x104] sm:$0xf] }
 0x25d   :  { %897 = vmatpush.bf16.msrb.mxu1 %v3221_v19  ;;  %v3156_v19 = vld [vmem:[%s5921_s6 + $0x20] sm:$0xf] }
 0x25e   :  { %v322_v52 = vpack.c.bf16 %v305_v51, %v305_v51  ;;  %v4078_v51 = vld [vmem:[%s5921_s6 + $0x6c] sm:$0xf0]  ;;  %937 = vmatpush.bf16.msra.mxu0 %v3337_v49  ;;  %926 = vmatpush.bf16.msrb.mxu3 %v3177_v13  ;;  %v3157_v21 = vor.u32 %v4070_v20, %v3156_v19  ;;  %v3260_v49 = vld [vmem:[%s5921_s6 + $0xe8] sm:$0xf]  ;;  %v4121_v13 = vld [vmem:[%s5921_s6 + $0x1cc] sm:$0xf] }
 0x25f   :  { %v4087_v20 = vld [vmem:[%s5921_s6 + $0xb4] sm:$0xf0] }
 0x260   :  { %411 = vmatmul.bf16.vlgmr.msra.gmra.mxu3 %v322_v52  ;;  %424 = vmatmul.bf16.vlgmr.msrb.gmra.mxu0 %v322_v52  ;;  %v3189_v52 = vor.u32 %v4078_v51, %v3188_v50  ;;  %v4095_v50 = vld [vmem:[%s5921_s6 + $0xf4] sm:$0xf0] }
 0x261   :  { %898 = vmatpush.bf16.msrb.mxu1 %v3205_v36  ;;  %v3140_v36 = vld [vmem:[%s5921_s6] sm:$0xf]  ;;  %v3261_v54 = vor.u32 %v4095_v50, %v3260_v49  ;;  %v3196_v49 = vld [vmem:[%s5921_s6 + $0x68] sm:$0xf]  ;;  %v4079_v50 = vld [vmem:[%s5921_s6 + $0x74] sm:$0xf0] }
 0x262   :  { %938 = vmatpush.bf16.msra.mxu0 %v3321_v0  ;;  %927 = vmatpush.bf16.msrb.mxu3 %v3161_v33  ;;  %v3141_v38 = vor.u32 %v4066_v37, %v3140_v36  ;;  %v3390_v0 = vld [vmem:[%s5921_s6 + $0x1f8] sm:$0xf0]  ;;  %v3233_v33 = vor.u32 %v4085_v25, %v3230_v30  ;;  %v3340_v36 = vld [vmem:[%s5921_s6 + $0x188] sm:$0xf]  ;;  %v4101_v25 = vld [vmem:[%s5921_s6 + $0x12c] sm:$0xf] }
 0x263   :  { %v3393_v3 = vor.u32 %v4125_v60, %v3390_v0  ;;  %v3326_v60 = vld [vmem:[%s5921_s6 + $0x178] sm:$0xf0]  ;;  %v4075_v0 = vld [vmem:[%s5921_s6 + $0x54] sm:$0xf0] }
 0x265   :  { %899 = vmatpush.bf16.msrb.mxu1 %v3189_v52 }
 0x269   :  { %900 = vmatpush.bf16.msrb.mxu1 %v3173_v6  ;;  %v3372_v6 = vld [vmem:[%s5921_s6 + $0x1c8] sm:$0xf] }
 0x26d   :  { %901 = vmatpush.bf16.msrb.mxu1 %v3157_v21 }
 0x271   :  { %902 = vmatpush.bf16.msrb.mxu1 %v3141_v38 }
 0x275   :  { %947 = vmatpush.bf16.msra.mxu1 %v3261_v54  ;;  %v4111_v54 = vld [vmem:[%s5921_s6 + $0x174] sm:$0xf0] }
 0x2dd   :  { %v4627_v4 = vpop.f32.mrf.mxu0 }
 0x2de   :  { %v437_v9 = vrot.slane %v4627_v4, 4 }
 0x2e0   :  { %v438_v15 = vadd.f32 %v437_v9, %v4627_v4  ;;  %v4106_v9 = vld [vmem:[%s5921_s6 + $0x14c] sm:$0xf0] }
 0x2e1   :  { %v3301_v12 = vor.u32 %v4106_v9, %v3300_v7  ;;  %v4123_v7 = vld [vmem:[%s5921_s6 + $0x1d4] sm:$0xf0] }
 0x2e2   :  { %v439_v24 = vrot.slane %v438_v15, 2  ;;  %v3373_v10 = vor.u32 %v4123_v7, %v3372_v6  ;;  %v4073_v6 = vld [vmem:[%s5921_s6 + $0x4c] sm:$0xf]  ;;  %v3182_v7 = vld [vmem:[%s5921_s6 + $0x58] sm:$0xf0] }
 0x2e3   :  { %v4670_v29 = vpop.f32.mrf.mxu3  ;;  %913 = vmatpush.bf16.msrb.mxu2 %v3301_v12  ;;  %v3246_v12 = vld [vmem:[%s5921_s6 + $0xd8] sm:$0xf0] }
 0x2e4   :  { %v440_v31 = vadd.f32 %v439_v24, %v438_v15  ;;  %v431_v32 = vrot.slane %v4670_v29, 4  ;;  %v3302_v15 = vld [vmem:[%s5921_s6 + $0x150] sm:$0xf0]  ;;  %v4102_v24 = vld [vmem:[%s5921_s6 + $0x12c] sm:$0xf0] }
 0x2e5   :  { %v427_v35 = vpop.f32.mrf.mxu0  ;;  %v3305_v18 = vor.u32 %v4104_v14, %v3302_v15  ;;  %v3285_v28 = vor.u32 %v4102_v24, %v3284_v22  ;;  %v3249_v14 = vor.u32 %v4089_v11, %v3246_v12  ;;  %v3374_v15 = vld [vmem:[%s5921_s6 + $0x1d8] sm:$0xf0]  ;;  %v3356_v22 = vld [vmem:[%s5921_s6 + $0x1a8] sm:$0xf]  ;;  %v4119_v24 = vld [vmem:[%s5921_s6 + $0x1b4] sm:$0xf0]  ;;  %v3185_v12 = vor.u32 %v4073_v6, %v3182_v7 }
 0x2e6   :  { %v441_v40 = vrot.slane %v440_v31, 1  ;;  %v432_v41 = vadd.f32 %v431_v32, %v4670_v29  ;;  %v3286_v32 = vld [vmem:[%s5921_s6 + $0x130] sm:$0xf0]  ;;  %v3377_v19 = vor.u32 %v4121_v13, %v3374_v15  ;;  %v3164_v13 = vld [vmem:[%s5921_s6 + $0x28] sm:$0xf] }
 0x2e7   :  { %939 = vmatpush.bf16.msra.mxu0 %v3305_v18  ;;  %914 = vmatpush.bf16.msrb.mxu2 %v3285_v28  ;;  %v3357_v28 = vor.u32 %v4119_v24, %v3356_v22  ;;  %v3292_v15 = vld [vmem:[%s5921_s6 + $0x128] sm:$0xf]  ;;  %v3166_v24 = vld [vmem:[%s5921_s6 + $0x38] sm:$0xf0] }
 0x2e8   :  { %v442_v47 = vadd.f32 %v441_v40, %v440_v31  ;;  %v433_v48 = vrot.slane %v432_v41, 2  ;;  %v4100_v31 = vld [vmem:[%s5921_s6 + $0x124] sm:$0xf]  ;;  %v4098_v40 = vld [vmem:[%s5921_s6 + $0x10c] sm:$0xf0] }
 0x2e9   :  { %v3289_v34 = vor.u32 %v4100_v31, %v3286_v32  ;;  %v3269_v44 = vor.u32 %v4098_v40, %v3268_v39  ;;  %v4117_v31 = vld [vmem:[%s5921_s6 + $0x1ac] sm:$0xf]  ;;  %v3358_v32 = vld [vmem:[%s5921_s6 + $0x1b8] sm:$0xf0]  ;;  %v4115_v39 = vld [vmem:[%s5921_s6 + $0x194] sm:$0xf0] }
 0x2ea   :  { %v444_v56 = vmul.f32 %v442_v47, %v4449_v23  ;;  %v434_v57 = vadd.f32 %v433_v48, %v432_v41  ;;  %v4064_v41 = vld [vmem:[%s5921_s6 + $0x4] sm:$0xf]  ;;  %v3270_v48 = vld [vmem:[%s5921_s6 + $0x110] sm:$0xf0]  ;;  %v4081_v40 = vld [vmem:[%s5921_s6 + $0x8c] sm:$0xf] }
 0x2eb   :  { %v414_v62 = vpop.f32.mrf.mxu3  ;;  %940 = vmatpush.bf16.msra.mxu0 %v3289_v34  ;;  %v3145_v47 = vor.u32 %v4064_v41, %v3142_v45  ;;  %v3273_v53 = vor.u32 %v4096_v46, %v3270_v48  ;;  %915 = vmatpush.bf16.msrb.mxu2 %v3269_v44  ;;  %v3361_v34 = vor.u32 %v4117_v31, %v3358_v32  ;;  %v3214_v41 = vld [vmem:[%s5921_s6 + $0x98] sm:$0xf0]  ;;  %v3148_v32 = vld [vmem:[%s5921_s6 + $0x8] sm:$0xf] }
 0x2ec   :  { %v4724_v1 = vsub.f32 %v4627_v4, %v444_v56  ;;  %v435_v2 = vrot.slane %v434_v57, 1  ;;  %v4127_v56 = vld [vmem:[%s5921_s6 + $0x1f4] sm:$0xf0]  ;;  %v3342_v44 = vld [vmem:[%s5921_s6 + $0x198] sm:$0xf0]  ;;  %v3217_v46 = vor.u32 %v4081_v40, %v3214_v41  ;;  %v4150_v40 = vld [vmem:[%s5922_s7 + $0xb0] sm:$0xff] }
 0x2ed   :  { %928 = vmatpush.bf16.msrb.mxu3 %v3145_v47  ;;  %v3294_v31 = vld [vmem:[%s5921_s6 + $0x138] sm:$0xf0] }
 0x2ee   :  { %v448_v4 = vmul.f32 %v4724_v1, %v4724_v1  ;;  %v436_v8 = vadd.f32 %v435_v2, %v434_v57  ;;  %v3389_v57 = vor.u32 %v4127_v56, %v3388_v55  ;;  %v3244_v2 = vld [vmem:[%s5921_s6 + $0xc8] sm:$0xf]  ;;  %v4077_v55 = vld [vmem:[%s5921_s6 + $0x6c] sm:$0xf]  ;;  %v3198_v56 = vld [vmem:[%s5921_s6 + $0x78] sm:$0xf0] }
 0x2ef   :  { %941 = vmatpush.bf16.msra.mxu0 %v3273_v53  ;;  %v3245_v9 = vor.u32 %v4091_v5, %v3244_v2  ;;  %v3197_v53 = vor.u32 %v4079_v50, %v3196_v49  ;;  %v3201_v58 = vor.u32 %v4077_v55, %v3198_v56  ;;  %v3308_v2 = vld [vmem:[%s5921_s6 + $0x148] sm:$0xf]  ;;  %v4107_v5 = vld [vmem:[%s5921_s6 + $0x154] sm:$0xf0] }
 0x2f0   :  { %v455_v16 = vrot.slane %v448_v4, 4  ;;  %v443_v17 = vmul.f32 %v436_v8, %v4449_v23  ;;  %960 = vmatpush.bf16.msra.mxu2 %v3389_v57 }
 0x2f1   :  { %973 = vmatpush.bf16.msra.mxu3 %v3265_v63  ;;  %948 = vmatpush.bf16.msra.mxu1 %v3245_v9  ;;  %v3180_v63 = vld [vmem:[%s5921_s6 + $0x48] sm:$0xf]  ;;  %v4105_v9 = vld [vmem:[%s5921_s6 + $0x14c] sm:$0xf] }
 0x2f2   :  { %v456_v26 = vadd.f32 %v455_v16, %v448_v4  ;;  %v4769_v27 = vsub.f32 %v4670_v29, %v443_v17  ;;  %v3228_v16 = vld [vmem:[%s5921_s6 + $0xa8] sm:$0xf] }
 0x2f3   :  { %986 = vmatpush.bf16.msrb.mxu0 %v3393_v3  ;;  %v3229_v21 = vor.u32 %v4087_v20, %v3228_v16  ;;  %v3181_v3 = vor.u32 %v4075_v0, %v3180_v63  ;;  %v4103_v20 = vld [vmem:[%s5921_s6 + $0x134] sm:$0xf0] }
 0x2f4   :  { %v457_v35 = vrot.slane %v456_v26, 2  ;;  %v447_v29 = vmul.f32 %v4769_v27, %v4769_v27  ;;  %961 = vmatpush.bf16.msra.mxu2 %v3373_v10  ;;  %v3310_v10 = vld [vmem:[%s5921_s6 + $0x158] sm:$0xf0]  ;;  %v3293_v30 = vor.u32 %v4103_v20, %v3292_v15 }
 0x2f5   :  { %974 = vmatpush.bf16.msra.mxu3 %v3249_v14  ;;  %949 = vmatpush.bf16.msra.mxu1 %v3229_v21  ;;  %v4071_v14 = vld [vmem:[%s5921_s6 + $0x34] sm:$0xf0]  ;;  %v4069_v21 = vld [vmem:[%s5921_s6 + $0x2c] sm:$0xf] }
 0x2f6   :  { %v458_v42 = vadd.f32 %v457_v35, %v456_v26  ;;  %v449_v43 = vrot.slane %v447_v29, 4  ;;  %v3212_v35 = vld [vmem:[%s5921_s6 + $0x88] sm:$0xf]  ;;  %v3165_v22 = vor.u32 %v4071_v14, %v3164_v13 }
 0x2f7   :  { %987 = vmatpush.bf16.msrb.mxu0 %v3377_v19  ;;  %v3313_v19 = vor.u32 %v4105_v9, %v3310_v10 }
 0x2f8   :  { %v459_v51 = vrot.slane %v458_v42, 1  ;;  %v450_v52 = vadd.f32 %v449_v43, %v447_v29  ;;  %v4083_v29 = vld [vmem:[%s5921_s6 + $0x94] sm:$0xf0]  ;;  %962 = vmatpush.bf16.msra.mxu2 %v3357_v28  ;;  %v4113_v43 = vld [vmem:[%s5921_s6 + $0x18c] sm:$0xf] }
 0x2f9   :  { %v3213_v38 = vor.u32 %v4083_v29, %v3212_v35  ;;  %975 = vmatpush.bf16.msra.mxu3 %v3233_v33  ;;  %v3345_v47 = vor.u32 %v4113_v43, %v3342_v44  ;;  %v4067_v33 = vld [vmem:[%s5921_s6 + $0x14] sm:$0xf0]  ;;  %v3276_v35 = vld [vmem:[%s5921_s6 + $0x108] sm:$0xf] }
 0x2fa   :  { %v460_v61 = vadd.f32 %v459_v51, %v458_v42  ;;  %v451_v62 = vrot.slane %v450_v52, 2  ;;  %v3341_v42 = vor.u32 %v4115_v39, %v3340_v36  ;;  %v3324_v51 = vld [vmem:[%s5921_s6 + $0x168] sm:$0xf]  ;;  %v4099_v29 = vld [vmem:[%s5921_s6 + $0x114] sm:$0xf0]  ;;  %v3149_v41 = vor.u32 %v4067_v33, %v3148_v32 }
 0x2fb   :  { %988 = vmatpush.bf16.msrb.mxu0 %v3361_v34  ;;  %950 = vmatpush.bf16.msra.mxu1 %v3213_v38  ;;  %v3325_v57 = vor.u32 %v4111_v54, %v3324_v51  ;;  %v3169_v34 = vor.u32 %v4069_v21, %v3166_v24  ;;  %v4065_v38 = vld [vmem:[%s5921_s6 + $0xc] sm:$0xf]  ;;  %v3150_v39 = vld [vmem:[%s5921_s6 + $0x18] sm:$0xf0]  ;;  %v429_v51 = vld [vmem:[%s5916_s1 + $0x6] sm:$0x3] }
 0x2fc   :  { %v462_v4 = vmul.f32 %v460_v61, %v4449_v23  ;;  %v452_v8 = vadd.f32 %v451_v62, %v450_v52  ;;  %963 = vmatpush.bf16.msra.mxu2 %v3341_v42  ;;  %v3329_v62 = vor.u32 %v4109_v59, %v3326_v60  ;;  %v3278_v42 = vld [vmem:[%s5921_s6 + $0x118] sm:$0xf0] }
 0x2fd   :  { %976 = vmatpush.bf16.msra.mxu3 %v3217_v46  ;;  %v3277_v46 = vor.u32 %v4099_v29, %v3276_v35  ;;  %v4151_v32 = vld [vmem:[%s5922_s7 + $0xb8] sm:$0xff] }
 0x2fe   :  { %v4858_v17 = vadd.f32 1e-05, %v462_v4  ;;  %v453_v18 = vrot.slane %v452_v8, 1 }
 0x2ff   :  { %989 = vmatpush.bf16.msrb.mxu0 %v3345_v47  ;;  %951 = vmatpush.bf16.msra.mxu1 %v3197_v53  ;;  %v3153_v47 = vor.u32 %v4065_v38, %v3150_v39  ;;  %v4134_v38 = vld [vmem:[%s5922_s7 + $0x30] sm:$0xff] }
 0x300   :  { %4315 = vrsqrt.f32 %v4858_v17  ;;  %v454_v26 = vadd.f32 %v453_v18, %v452_v8  ;;  %964 = vmatpush.bf16.msra.mxu2 %v3325_v57  ;;  %v3309_v8 = vor.u32 %v4107_v5, %v3308_v2  ;;  %vm481_vm15 = vweird.f32 %v4858_v17  ;;  %v4142_v39 = vld [vmem:[%s5922_s7 + $0x70] sm:$0xff] }
 0x301   :  { %977 = vmatpush.bf16.msra.mxu3 %v3201_v58 }
 0x302   :  { %v461_v37 = vmul.f32 %v454_v26, %v4449_v23 }
 0x303   :  { %990 = vmatpush.bf16.msrb.mxu0 %v3329_v62  ;;  %952 = vmatpush.bf16.msra.mxu1 %v3181_v3 }
 0x304   :  { %v4907_v45 = vadd.f32 1e-05, %v461_v37  ;;  %965 = vmatpush.bf16.msra.mxu2 %v3309_v8  ;;  %v3297_v37 = vor.u32 %v4101_v25, %v3294_v31  ;;  %v4143_v31 = vld [vmem:[%s5922_s7 + $0x78] sm:$0xff] }
 0x305   :  { %978 = vmatpush.bf16.msra.mxu3 %v3185_v12 }
 0x306   :  { %v4909_v48 = vpop.eup %4315  ;;  %4317 = vrsqrt.f32 %v4907_v45  ;;  %vm471_vm4 = vweird.f32 %v4907_v45 }
 0x307   :  { %v476_v52 = vmul.f32 %v4909_v48, %v4858_v17  ;;  %vm482_vm14 = vweird.f32 %v4909_v48  ;;  %991 = vmatpush.bf16.msrb.mxu0 %v3313_v19  ;;  %953 = vmatpush.bf16.msra.mxu1 %v3165_v22  ;;  %v4097_v17 = vld [vmem:[%s5921_s6 + $0x10c] sm:$0xf] }
 0x308   :  { %vm5011_vm1 = vmor %vm481_vm15, %vm482_vm14  ;;  %966 = vmatpush.bf16.msra.mxu2 %v3293_v30  ;;  %v3281_v50 = vor.u32 %v4097_v17, %v3278_v42  ;;  %v4135_v30 = vld [vmem:[%s5922_s7 + $0x38] sm:$0xff] }
 0x309   :  { %v477_v61 = vmul.f32 %v4909_v48, %v476_v52  ;;  %979 = vmatpush.bf16.msra.mxu3 %v3169_v34  ;;  %v4159_v34 = vld [vmem:[%s5922_s7 + $0xf8] sm:$0xff] }
 0x30b   :  { %v478_v4 = vmul.f32 0.5, %v477_v61  ;;  %992 = vmatpush.bf16.msrb.mxu0 %v3297_v37  ;;  %954 = vmatpush.bf16.msra.mxu1 %v3149_v41 }
 0x30c   :  { %v4318_v11 = vpop.eup %4317  ;;  %967 = vmatpush.bf16.msra.mxu2 %v3277_v46 }
 0x30d   :  { %v479_v16 = vsub.f32 1.5, %v478_v4  ;;  %v466_v18 = vmul.f32 %v4318_v11, %v4907_v45  ;;  %vm472_vm3 = vweird.f32 %v4318_v11  ;;  %980 = vmatpush.bf16.msra.mxu3 %v3153_v47 }
 0x30e   :  { %vm473_vm5 = vmor %vm471_vm4, %vm472_vm3  ;;  %vm1117_vm4 = vcmask 1042434  }
 0x30f   :  { %v467_v26 = vmul.f32 %v4318_v11, %v466_v18  ;;  %v480_v28 = vmul.f32 %v4909_v48, %v479_v16  ;;  %993 = vmatpush.bf16.msrb.mxu0 %v3281_v50 }
 0x311   :  { %v468_v36 = vmul.f32 0.5, %v467_v26  ;;  %v484_v44 = vsel %vm5011_vm1, %v4909_v48, %v480_v28  ;;  %v430_v48 = vld [vmem:[%s5916_s1 + $0x8] sm:$0x3] }
 0x312   :  { %v487_v52 = vrot.slane %v484_v44, 7  ;;  %v499_v57 = vperm.slane %v430_v48, 0  ;;  %v500_v58 = vperm.slane %v430_v48, 1  ;;  %v4133_v48 = vld [vmem:[%s5922_s7 + $0x28] sm:$0xff] }
 0x313   :  { %v469_v43 = vsub.f32 1.5, %v468_v36 }
 0x315   :  { %v470_v49 = vmul.f32 %v4318_v11, %v469_v43  ;;  %v4158_v43 = vld [vmem:[%s5922_s7 + $0xf0] sm:$0xff] }
 0x317   :  { %v474_v53 = vsel %vm473_vm5, %v4318_v11, %v470_v49 }
 0x318   :  { %v488_v54 = vsel %vm72_vm0, %v474_v53, %v487_v52 }
 0x319   :  { %v490_v55 = vmul.f32 %v488_v54, %v429_v51  ;;  %v4141_v54 = vld [vmem:[%s5922_s7 + $0x68] sm:$0xff] }
 0x31b   :  { %v492_v45 = vperm.slane %v490_v55, 0  ;;  %v493_v56 = vperm.slane %v490_v55, 1  ;;  %v4149_v55 = vld [vmem:[%s5922_s7 + $0xa8] sm:$0xff] }
 0x31d   :  { %v496_v59 = vmul.f32 %v492_v45, %v4769_v27  ;;  %v497_v60 = vmul.f32 %v493_v56, %v4724_v1 }
 0x31f   :  { %v503_v61 = vadd.f32 %v499_v57, %v496_v59  ;;  %v504_v62 = vadd.f32 %v500_v58, %v497_v60  ;;  %v4157_v57 = vld [vmem:[%s5922_s7 + $0xe8] sm:$0xff] }
 0x321   :  { %v505_v63 = vmul.f32 0.01, %v503_v61  ;;  %v506_v0 = vmul.f32 0.01, %v504_v62 }
 0x323   :  { %v507_v2 = vmax.f32 %v503_v61, %v505_v63  ;;  %v508_v3 = vmax.f32 %v504_v62, %v506_v0 }
 0x325   :  { %v573_v5 = vpack.c.bf16 %v507_v2, %v507_v2  ;;  %v574_v6 = vpack.c.bf16 %v508_v3, %v508_v3  ;;  %v4132_v2 = vld [vmem:[%s5922_s7 + $0x20] sm:$0xff] }
 0x326   :  { %v4140_v3 = vld [vmem:[%s5922_s7 + $0x60] sm:$0xff] }
 0x327   :  { %903 = vmatmul.bf16.vlgmr.msrb.gmra.mxu1 %v573_v5  ;;  %916 = vmatmul.bf16.vlgmr.msrb.gmra.mxu2 %v574_v6 }
 0x328   :  { %929 = vmatmul.bf16.vlgmr.msrb.gmra.mxu3 %v573_v5  ;;  %942 = vmatmul.bf16.vlgmr.msra.gmra.mxu0 %v574_v6 }
 0x329   :  { %1421 = vmatpush.bf16.msrb.mxu1 %v4135_v30  ;;  %1434 = vmatpush.bf16.msrb.mxu2 %v4143_v31  ;;  %v4138_v30 = vld [vmem:[%s5922_s7 + $0x50] sm:$0xff] }
 0x32a   :  { %1447 = vmatpush.bf16.msrb.mxu3 %v4151_v32  ;;  %1460 = vmatpush.bf16.msra.mxu0 %v4159_v34  ;;  %v4146_v31 = vld [vmem:[%s5922_s7 + $0x90] sm:$0xff] }
 0x32d   :  { %1422 = vmatpush.bf16.msrb.mxu1 %v4134_v38  ;;  %1435 = vmatpush.bf16.msrb.mxu2 %v4142_v39  ;;  %v4129_v39 = vld [vmem:[%s5922_s7 + $0x8] sm:$0xff] }
 0x32e   :  { %1448 = vmatpush.bf16.msrb.mxu3 %v4150_v40  ;;  %1461 = vmatpush.bf16.msra.mxu0 %v4158_v43  ;;  %v4137_v40 = vld [vmem:[%s5922_s7 + $0x48] sm:$0xff] }
 0x32f   :  { %v4153_v43 = vld [vmem:[%s5922_s7 + $0xc8] sm:$0xff] }
 0x331   :  { %1423 = vmatpush.bf16.msrb.mxu1 %v4133_v48  ;;  %1436 = vmatpush.bf16.msrb.mxu2 %v4141_v54  ;;  %v4152_v54 = vld [vmem:[%s5922_s7 + $0xc0] sm:$0xff] }
 0x332   :  { %1449 = vmatpush.bf16.msrb.mxu3 %v4149_v55  ;;  %1462 = vmatpush.bf16.msra.mxu0 %v4157_v57  ;;  %v4167_v55 = vld [vmem:[%s5923_s8 + $0x38] sm:$0xff] }
 0x333   :  { %v4183_v57 = vld [vmem:[%s5923_s8 + $0xb8] sm:$0xff] }
 0x335   :  { %1424 = vmatpush.bf16.msrb.mxu1 %v4132_v2  ;;  %1437 = vmatpush.bf16.msrb.mxu2 %v4140_v3  ;;  %v4182_v3 = vld [vmem:[%s5923_s8 + $0xb0] sm:$0xff] }
 0x337   :  { %955 = vmatmul.bf16.vlgmr.msra.gmra.mxu1 %v573_v5  ;;  %968 = vmatmul.bf16.vlgmr.msra.gmra.mxu2 %v574_v6 }
 0x338   :  { %981 = vmatmul.bf16.vlgmr.msra.gmra.mxu3 %v573_v5  ;;  %994 = vmatmul.bf16.vlgmr.msrb.gmra.mxu0 %v574_v6  ;;  %v4148_v5 = vld [vmem:[%s5922_s7 + $0xa0] sm:$0xff] }
 0x339   :  { %1450 = vmatpush.bf16.msrb.mxu3 %v4148_v5  ;;  %v4190_v5 = vld [vmem:[%s5923_s8 + $0xf0] sm:$0xff] }
 0x3a4   :  { %v904_v7 = vpop.f32.mrf.mxu1 }
 0x3a5   :  { %v943_v27 = vpop.f32.mrf.mxu0 }
 0x3aa   :  { %v917_v4 = vpop.f32.mrf.mxu2 }
 0x3ab   :  { %v918_v1 = vadd.f32 %v917_v4, %v904_v7  ;;  %v930_v8 = vpop.f32.mrf.mxu3  ;;  %v4156_v4 = vld [vmem:[%s5922_s7 + $0xe0] sm:$0xff] }
 0x3ac   :  { %v944_v9 = vadd.f32 %v943_v27, %v930_v8  ;;  %v906_v10 = vpop.f32.mrf.mxu1  ;;  %1463 = vmatpush.bf16.msra.mxu0 %v4156_v4 }
 0x3ad   :  { %v1001_v11 = vrot.slane %v918_v1, 4  ;;  %v945_v12 = vpop.f32.mrf.mxu0 }
 0x3ae   :  { %v1007_v13 = vrot.slane %v944_v9, 4 }
 0x3af   :  { %v1002_v14 = vadd.f32 %v1001_v11, %v918_v1 }
 0x3b0   :  { %v1008_v15 = vadd.f32 %v1007_v13, %v944_v9  ;;  %v4131_v13 = vld [vmem:[%s5922_s7 + $0x18] sm:$0xff] }
 0x3b1   :  { %v1003_v16 = vrot.slane %v1002_v14, 2  ;;  %1425 = vmatpush.bf16.msrb.mxu1 %v4131_v13 }
 0x3b2   :  { %v1009_v18 = vrot.slane %v1008_v15, 2  ;;  %v919_v19 = vpop.f32.mrf.mxu2 }
 0x3b3   :  { %v1004_v20 = vadd.f32 %v1003_v16, %v1002_v14  ;;  %v932_v21 = vpop.f32.mrf.mxu3  ;;  %v4139_v14 = vld [vmem:[%s5922_s7 + $0x58] sm:$0xff] }
 0x3b4   :  { %v1010_v22 = vadd.f32 %v1009_v18, %v1008_v15  ;;  %v956_v24 = vpop.f32.mrf.mxu1  ;;  %v4147_v15 = vld [vmem:[%s5922_s7 + $0x98] sm:$0xff]  ;;  %1438 = vmatpush.bf16.msrb.mxu2 %v4139_v14 }
 0x3b5   :  { %v1005_v25 = vrot.slane %v1004_v20, 1  ;;  %v995_v26 = vpop.f32.mrf.mxu0  ;;  %v4155_v19 = vld [vmem:[%s5922_s7 + $0xd8] sm:$0xff]  ;;  %1451 = vmatpush.bf16.msrb.mxu3 %v4147_v15 }
 0x3b6   :  { %v1011_v28 = vrot.slane %v1010_v22, 1  ;;  %1464 = vmatpush.bf16.msra.mxu0 %v4155_v19 }
 0x3b7   :  { %v1006_v33 = vadd.f32 %v1005_v25, %v1004_v20 }
 0x3b8   :  { %v1012_v35 = vadd.f32 %v1011_v28, %v1010_v22  ;;  %v4130_v28 = vld [vmem:[%s5922_s7 + $0x10] sm:$0xff]  ;;  %1439 = vmatpush.bf16.msrb.mxu2 %v4138_v30 }
 0x3b9   :  { %v1025_v29 = vmul.f32 %v1006_v33, %v4449_v23  ;;  %v4154_v33 = vld [vmem:[%s5922_s7 + $0xd0] sm:$0xff]  ;;  %1426 = vmatpush.bf16.msrb.mxu1 %v4130_v28  ;;  %1452 = vmatpush.bf16.msrb.mxu3 %v4146_v31  ;;  %v4179_v28 = vld [vmem:[%s5923_s8 + $0x98] sm:$0xff] }
 0x3ba   :  { %v1026_v36 = vmul.f32 %v1012_v35, %v4449_v23  ;;  %v969_v37 = vpop.f32.mrf.mxu2  ;;  %1465 = vmatpush.bf16.msra.mxu0 %v4154_v33  ;;  %v4187_v33 = vld [vmem:[%s5923_s8 + $0xd8] sm:$0xff] }
 0x3bb   :  { %v5057_v41 = vsub.f32 %v918_v1, %v1025_v29  ;;  %v5059_v17 = vadd.f32 %v969_v37, %v956_v24  ;;  %v982_v42 = vpop.f32.mrf.mxu3 }
 0x3bc   :  { %v5064_v44 = vsub.f32 %v944_v9, %v1026_v36  ;;  %v5066_v46 = vadd.f32 %v995_v26, %v982_v42  ;;  %v958_v47 = vpop.f32.mrf.mxu1  ;;  %1440 = vmatpush.bf16.msrb.mxu2 %v4137_v40 }
 0x3bd   :  { %v1033_v49 = vmul.f32 %v5057_v41, %v5057_v41  ;;  %v1013_v50 = vrot.slane %v5059_v17, 4  ;;  %v997_v51 = vpop.f32.mrf.mxu0  ;;  %1427 = vmatpush.bf16.msrb.mxu1 %v4129_v39 }
 0x3be   :  { %v1034_v52 = vmul.f32 %v5064_v44, %v5064_v44  ;;  %v1019_v53 = vrot.slane %v5066_v46, 4  ;;  %1466 = vmatpush.bf16.msra.mxu0 %v4153_v43  ;;  %v4128_v51 = vld [vmem:[%s5922_s7] sm:$0xff] }
 0x3bf   :  { %v1037_v45 = vrot.slane %v1033_v49, 4  ;;  %v1014_v56 = vadd.f32 %v1013_v50, %v5059_v17 }
 0x3c0   :  { %v1043_v58 = vrot.slane %v1034_v52, 4  ;;  %v1020_v59 = vadd.f32 %v1019_v53, %v5066_v46  ;;  %v4144_v53 = vld [vmem:[%s5922_s7 + $0x80] sm:$0xff] }
 0x3c1   :  { %v1038_v60 = vadd.f32 %v1037_v45, %v1033_v49  ;;  %v1015_v61 = vrot.slane %v1014_v56, 2  ;;  %v4175_v45 = vld [vmem:[%s5923_s8 + $0x78] sm:$0xff]  ;;  %1428 = vmatpush.bf16.msrb.mxu1 %v4128_v51  ;;  %v4161_v51 = vld [vmem:[%s5923_s8 + $0x8] sm:$0xff] }
 0x3c2   :  { %v1044_v62 = vadd.f32 %v1043_v58, %v1034_v52  ;;  %v1021_v63 = vrot.slane %v1020_v59, 2  ;;  %v971_v0 = vpop.f32.mrf.mxu2  ;;  %v4136_v52 = vld [vmem:[%s5922_s7 + $0x40] sm:$0xff]  ;;  %v4191_v58 = vld [vmem:[%s5923_s8 + $0xf8] sm:$0xff]  ;;  %1467 = vmatpush.bf16.msra.mxu0 %v4152_v54  ;;  %v4177_v54 = vld [vmem:[%s5923_s8 + $0x88] sm:$0xff] }
 0x3c3   :  { %v1039_v6 = vrot.slane %v1038_v60, 2  ;;  %v1016_v7 = vadd.f32 %v1015_v61, %v1014_v56  ;;  %v984_v27 = vpop.f32.mrf.mxu3  ;;  %1441 = vmatpush.bf16.msrb.mxu2 %v4136_v52  ;;  %v4174_v0 = vld [vmem:[%s5923_s8 + $0x70] sm:$0xff]  ;;  %v4169_v52 = vld [vmem:[%s5923_s8 + $0x48] sm:$0xff] }
 0x3c4   :  { %v1045_v1 = vrot.slane %v1044_v62, 2  ;;  %v1022_v8 = vadd.f32 %v1021_v63, %v1020_v59  ;;  %v4166_v63 = vld [vmem:[%s5923_s8 + $0x30] sm:$0xff] }
 0x3c5   :  { %v1040_v9 = vadd.f32 %v1039_v6, %v1038_v60  ;;  %v1017_v10 = vrot.slane %v1016_v7, 1  ;;  %1733 = vmatpush.bf16.msra.mxu1 %v4167_v55  ;;  %v4185_v55 = vld [vmem:[%s5923_s8 + $0xc8] sm:$0xff] }
 0x3c6   :  { %v1046_v11 = vadd.f32 %v1045_v1, %v1044_v62  ;;  %v1023_v12 = vrot.slane %v1022_v8, 1  ;;  %1772 = vmatpush.bf16.msrb.mxu0 %v4191_v58  ;;  %v4165_v1 = vld [vmem:[%s5923_s8 + $0x28] sm:$0xff] }
 0x3c7   :  { %v1041_v16 = vrot.slane %v1040_v9, 1  ;;  %v1018_v18 = vadd.f32 %v1017_v10, %v1016_v7  ;;  %1746 = vmatpush.bf16.msra.mxu2 %v4175_v45 }
 0x3c8   :  { %v1047_v20 = vrot.slane %v1046_v11, 1  ;;  %v1024_v21 = vadd.f32 %v1023_v12, %v1022_v8  ;;  %v4173_v8 = vld [vmem:[%s5923_s8 + $0x68] sm:$0xff] }
 0x3c9   :  { %v1027_v22 = vmul.f32 %v1018_v18, %v4449_v23  ;;  %v1042_v24 = vadd.f32 %v1041_v16, %v1040_v9  ;;  %1734 = vmatpush.bf16.msra.mxu1 %v4166_v63  ;;  %v4181_v9 = vld [vmem:[%s5923_s8 + $0xa8] sm:$0xff]  ;;  %v4164_v16 = vld [vmem:[%s5923_s8 + $0x20] sm:$0xff] }
 0x3ca   :  { %v1048_v25 = vadd.f32 %v1047_v20, %v1046_v11  ;;  %v1028_v26 = vmul.f32 %v1024_v21, %v4449_v23  ;;  %1773 = vmatpush.bf16.msrb.mxu0 %v4190_v5  ;;  %v4189_v12 = vld [vmem:[%s5923_s8 + $0xe8] sm:$0xff]  ;;  %v4172_v18 = vld [vmem:[%s5923_s8 + $0x60] sm:$0xff] }
 0x3cb   :  { %v5124_v32 = vsub.f32 %v5059_v17, %v1027_v22  ;;  %v1061_v36 = vmul.f32 %v1042_v24, %v4449_v23  ;;  %v4145_v17 = vld [vmem:[%s5922_s7 + $0x88] sm:$0xff]  ;;  %1747 = vmatpush.bf16.msra.mxu2 %v4174_v0  ;;  %v4180_v20 = vld [vmem:[%s5923_s8 + $0xa0] sm:$0xff] }
 0x3cc   :  { %v1062_v34 = vmul.f32 %v1048_v25, %v4449_v23  ;;  %v5131_v35 = vsub.f32 %v5066_v46, %v1028_v26  ;;  %1453 = vmatpush.bf16.msrb.mxu3 %v4145_v17  ;;  %v4188_v21 = vld [vmem:[%s5923_s8 + $0xe0] sm:$0xff]  ;;  %v4163_v25 = vld [vmem:[%s5923_s8 + $0x18] sm:$0xff]  ;;  %v4178_v17 = vld [vmem:[%s5923_s8 + $0x90] sm:$0xff] }
 0x3cd   :  { %v1035_v29 = vmul.f32 %v5124_v32, %v5124_v32  ;;  %v5153_v49 = vadd.f32 1e-05, %v1061_v36  ;;  %1735 = vmatpush.bf16.msra.mxu1 %v4165_v1  ;;  %v4171_v26 = vld [vmem:[%s5923_s8 + $0x58] sm:$0xff]  ;;  %v4162_v36 = vld [vmem:[%s5923_s8 + $0x10] sm:$0xff]  ;;  %v4176_v63 = vld [vmem:[%s5923_s8 + $0x80] sm:$0xff] }
 0x3ce   :  { %v5136_v37 = vadd.f32 1e-05, %v1062_v34  ;;  %v1036_v38 = vmul.f32 %v5131_v35, %v5131_v35  ;;  %1774 = vmatpush.bf16.msrb.mxu0 %v4189_v12  ;;  %v4184_v0 = vld [vmem:[%s5923_s8 + $0xc0] sm:$0xff] }
 0x3cf   :  { %v1049_v42 = vrot.slane %v1035_v29, 4  ;;  %1748 = vmatpush.bf16.msra.mxu2 %v4173_v8  ;;  %vm1075_vm3 = vweird.f32 %v5153_v49 }
 0x3d0   :  { %4319 = vrsqrt.f32 %v5136_v37  ;;  %v1055_v46 = vrot.slane %v1036_v38, 4  ;;  %1454 = vmatpush.bf16.msrb.mxu3 %v4144_v53  ;;  %vm1085_vm8 = vweird.f32 %v5136_v37 }
 0x3d1   :  { %v1050_v47 = vadd.f32 %v1049_v42, %v1035_v29  ;;  %4321 = vrsqrt.f32 %v5153_v49  ;;  %1736 = vmatpush.bf16.msra.mxu1 %v4164_v16  ;;  %v4186_v42 = vld [vmem:[%s5923_s8 + $0xd0] sm:$0xff] }
 0x3d2   :  { %v1056_v50 = vadd.f32 %v1055_v46, %v1036_v38  ;;  %1775 = vmatpush.bf16.msrb.mxu0 %v4188_v21  ;;  %v4170_v38 = vld [vmem:[%s5923_s8 + $0x50] sm:$0xff] }
 0x3d3   :  { %v1051_v48 = vrot.slane %v1050_v47, 2  ;;  %1749 = vmatpush.bf16.msra.mxu2 %v4172_v18 }
 0x3d4   :  { %v1057_v56 = vrot.slane %v1056_v50, 2  ;;  %1759 = vmatpush.bf16.msra.mxu3 %v4183_v57 }
 0x3d5   :  { %v1052_v59 = vadd.f32 %v1051_v48, %v1050_v47  ;;  %1737 = vmatpush.bf16.msra.mxu1 %v4163_v25 }
 0x3d6   :  { %v5179_v60 = vpop.eup %4319  ;;  %v1058_v61 = vadd.f32 %v1057_v56, %v1056_v50  ;;  %1776 = vmatpush.bf16.msrb.mxu0 %v4187_v33 }
 0x3d7   :  { %v1053_v62 = vrot.slane %v1052_v59, 1  ;;  %v1080_v6 = vmul.f32 %v5179_v60, %v5136_v37  ;;  %v5206_v10 = vpop.eup %4321  ;;  %1750 = vmatpush.bf16.msra.mxu2 %v4171_v26  ;;  %vm1086_vm6 = vweird.f32 %v5179_v60 }
 0x3d8   :  { %v1059_v2 = vrot.slane %v1058_v61, 1  ;;  %1760 = vmatpush.bf16.msra.mxu3 %v4182_v3  ;;  %v1070_v19 = vmul.f32 %v5206_v10, %v5153_v49  ;;  %vm5275_vm9 = vmor %vm1085_vm8, %vm1086_vm6  ;;  %vm1076_vm13 = vweird.f32 %v5206_v10  ;;  %vm1119_vm6 = vcmask 1041408   ;;  %v1000_v49 = vld [vmem:[%s5916_s1 + $0xe] sm:$0xf] }
 0x3d9   :  { %v1054_v7 = vadd.f32 %v1053_v62, %v1052_v59  ;;  %v1081_v13 = vmul.f32 %v5179_v60, %v1080_v6  ;;  %1738 = vmatpush.bf16.msra.mxu1 %v4162_v36  ;;  %v4160_v59 = vld [vmem:[%s5923_s8] sm:$0xff]  ;;  %vm1077_vm5 = vmor %vm1075_vm3, %vm1076_vm13  ;;  %v1140_v12 = vperm.slane %v1000_v49, 3  ;;  %vm1837_vm8 = vcmask 1043456  }
 0x3da   :  { %v1060_v27 = vadd.f32 %v1059_v2, %v1058_v61  ;;  %v1071_v24 = vmul.f32 %v5206_v10, %v1070_v19  ;;  %1777 = vmatpush.bf16.msrb.mxu0 %v4186_v42  ;;  %v4168_v61 = vld [vmem:[%s5923_s8 + $0x40] sm:$0xff] }
 0x3db   :  { %v1063_v4 = vmul.f32 %v1054_v7, %v4449_v23  ;;  %v1082_v22 = vmul.f32 0.5, %v1081_v13  ;;  %1751 = vmatpush.bf16.msra.mxu2 %v4170_v38  ;;  %v1137_v13 = vperm.slane %v1000_v49, 0 }
 0x3dc   :  { %v1064_v11 = vmul.f32 %v1060_v27, %v4449_v23  ;;  %1761 = vmatpush.bf16.msra.mxu3 %v4181_v9  ;;  %v1072_v39 = vmul.f32 0.5, %v1071_v24  ;;  %v999_v27 = vld [vmem:[%s5916_s1 + $0xa] sm:$0xf] }
 0x3dd   :  { %v5213_v14 = vadd.f32 1e-05, %v1063_v4  ;;  %v1083_v31 = vsub.f32 1.5, %v1082_v22  ;;  %1739 = vmatpush.bf16.msra.mxu1 %v4161_v51 }
 0x3de   :  { %v5215_v15 = vadd.f32 1e-05, %v1064_v11  ;;  %v1073_v53 = vsub.f32 1.5, %v1072_v39  ;;  %1778 = vmatpush.bf16.msrb.mxu0 %v4185_v55 }
 0x3df   :  { %4323 = vrsqrt.f32 %v5213_v14  ;;  %v1084_v46 = vmul.f32 %v5179_v60, %v1083_v31  ;;  %vm1095_vm12 = vweird.f32 %v5213_v14  ;;  %1752 = vmatpush.bf16.msra.mxu2 %v4169_v52 }
 0x3e0   :  { %4325 = vrsqrt.f32 %v5215_v15  ;;  %1762 = vmatpush.bf16.msra.mxu3 %v4180_v20  ;;  %v1074_v62 = vmul.f32 %v5206_v10, %v1073_v53  ;;  %vm1105_vm15 = vweird.f32 %v5215_v15 }
 0x3e1   :  { %v1088_v37 = vsel %vm5275_vm9, %v5179_v60, %v1084_v46  ;;  %1740 = vmatpush.bf16.msra.mxu1 %v4160_v59  ;;  %vm1833_vm9 = vcmask 64512  }
 0x3e2   :  { %v1113_v2 = vrot.slane %v1088_v37, 7  ;;  %v1078_v4 = vsel %vm1077_vm5, %v5206_v10, %v1074_v62  ;;  %1779 = vmatpush.bf16.msrb.mxu0 %v4184_v0  ;;  %v4301_v37 = vld [vmem:[%s5916_s1 + $0x13] ss:$0 sm:$0xff] }
 0x3e3   :  { %1753 = vmatpush.bf16.msra.mxu2 %v4168_v61 }
 0x3e4   :  { %1763 = vmatpush.bf16.msra.mxu3 %v4179_v28  ;;  %v1116_v1 = vsel %vm72_vm0, %v1078_v4, %v1113_v2  ;;  %v1798_v4 = vld [vmem:[%s5924_s9] sm:$0xff] }
 0x3e5   :  { %v4324_v30 = vpop.eup %4323 }
 0x3e6   :  { %v4326_v34 = vpop.eup %4325  ;;  %v1090_v29 = vmul.f32 %v4324_v30, %v5213_v14  ;;  %vm1096_vm10 = vweird.f32 %v4324_v30  ;;  %v1138_v14 = vperm.slane %v1000_v49, 1 }
 0x3e7   :  { %v1100_v40 = vmul.f32 %v4326_v34, %v5215_v15  ;;  %vm1106_vm11 = vweird.f32 %v4326_v34  ;;  %vm1097_vm14 = vmor %vm1095_vm12, %vm1096_vm10  ;;  %v1139_v15 = vperm.slane %v1000_v49, 2  ;;  %v1826_v49 = vunpack.c.h.b16 %v1798_v4 }
 0x3e8   :  { %v1091_v43 = vmul.f32 %v4324_v30, %v1090_v29  ;;  %1764 = vmatpush.bf16.msra.mxu3 %v4178_v17  ;;  %vm1107_vm1 = vmor %vm1105_vm15, %vm1106_vm11 }
 0x3e9   :  { %v1101_v47 = vmul.f32 %v4326_v34, %v1100_v40 }
 0x3ea   :  { %v1092_v50 = vmul.f32 0.5, %v1091_v43 }
 0x3eb   :  { %v1102_v48 = vmul.f32 0.5, %v1101_v47 }
 0x3ec   :  { %v1093_v56 = vsub.f32 1.5, %v1092_v50  ;;  %1765 = vmatpush.bf16.msra.mxu3 %v4177_v54 }
 0x3ed   :  { %v1103_v57 = vsub.f32 1.5, %v1102_v48 }
 0x3ee   :  { %v1094_v58 = vmul.f32 %v4324_v30, %v1093_v56 }
 0x3ef   :  { %v1104_v60 = vmul.f32 %v4326_v34, %v1103_v57 }
 0x3f0   :  { %v1098_v3 = vsel %vm1097_vm14, %v4324_v30, %v1094_v58  ;;  %1766 = vmatpush.bf16.msra.mxu3 %v4176_v63 }
 0x3f1   :  { %v1114_v5 = vrot.slane %v1098_v3, 6  ;;  %v1108_v6 = vsel %vm1107_vm1, %v4326_v34, %v1104_v60 }
 0x3f2   :  { %v1115_v7 = vrot.slane %v1108_v6, 5 }
 0x3f4   :  { %v1118_v8 = vsel %vm1117_vm4, %v1114_v5, %v1115_v7 }
 0x3f5   :  { %v1120_v9 = vsel %vm1119_vm6, %v1116_v1, %v1118_v8  ;;  %v1825_v1 = vunpack.c.l.b16 %v1798_v4  ;;  %v1830_v8 = vpack.c.b16 %v1826_v49, %v1826_v49 }
 0x3f6   :  { %v1122_v11 = vmul.f32 %v1120_v9, %v999_v27 }
 0x3f7   :  { %v1829_v9 = vpack.c.b16 %v1825_v1, %v1825_v1  ;;  %v3824_v1 = vld [vmem:[%s5925_s10 + $0x150] sm:$0xf] }
 0x3f8   :  { %v1127_v16 = vperm.slane %v1122_v11, 3  ;;  %v1124_v18 = vperm.slane %v1122_v11, 0  ;;  %v1125_v19 = vperm.slane %v1122_v11, 1  ;;  %v1126_v20 = vperm.slane %v1122_v11, 2 }
 0x3f9   :  { %v1842_v11 = vsel %vm1837_vm8, %v1830_v8, 0  ;;  %v4235_v8 = vld [vmem:[%s5925_s10 + $0x154] sm:$0xf0] }
 0x3fa   :  { %v1135_v10 = vmul.f32 %v1127_v16, %v5131_v35  ;;  %v1132_v21 = vmul.f32 %v1124_v18, %v5057_v41  ;;  %v1133_v22 = vmul.f32 %v1125_v19, %v5064_v44  ;;  %v1134_v24 = vmul.f32 %v1126_v20, %v5124_v32  ;;  %v4300_v32 = vld [vmem:[%s5916_s1 + $0x12] ss:$0 sm:$0xff]  ;;  %v1799_v20 = vld [vmem:[%s5924_s9 + $0x8] sm:$0xff] }
 0x3fc   :  { %v1148_v25 = vadd.f32 %v1140_v12, %v1135_v10  ;;  %v1145_v26 = vadd.f32 %v1137_v13, %v1132_v21  ;;  %v1146_v28 = vadd.f32 %v1138_v14, %v1133_v22  ;;  %v1147_v30 = vadd.f32 %v1139_v15, %v1134_v24  ;;  %v4345_v14 = vld [vmem:[%s5917_s0] sm:$0xff] }
 0x3fd   :  { %v1839_v12 = vsel %vm1837_vm8, %v1829_v9, 0  ;;  %v1828_v10 = vunpack.c.h.b16 %v1799_v20  ;;  %v4352_v21 = vmov 16   ;;  %v1827_v22 = vunpack.c.l.b16 %v1799_v20  ;;  %v3736_v9 = vld [vmem:[%s5925_s10 + $0xa0] sm:$0xf] }
 0x3fe   :  { %v1149_v31 = vmul.f32 0.01, %v1145_v26  ;;  %v1150_v33 = vmul.f32 0.01, %v1146_v28  ;;  %v1151_v34 = vmul.f32 0.01, %v1147_v30  ;;  %4295 = vset.pattern.permute.xlu1 %v4352_v21  ;;  %4296 = vset.pattern.permute.xlu0 %v4352_v21 }
 0x3ff   :  { %v1152_v29 = vmul.f32 0.01, %v1148_v25  ;;  %v1832_v24 = vpack.c.b16 %v1828_v10, %v1828_v10  ;;  %v3816_v10 = vld [vmem:[%s5925_s10 + $0x140] sm:$0xf]  ;;  %v4233_v21 = vld [vmem:[%s5925_s10 + $0x144] sm:$0xf0] }
 0x400   :  { %v1153_v36 = vmax.f32 %v1145_v26, %v1149_v31  ;;  %v1154_v38 = vmax.f32 %v1146_v28, %v1150_v33  ;;  %v1155_v39 = vmax.f32 %v1147_v30, %v1151_v34  ;;  %v3712_v30 = vld [vmem:[%s5925_s10 + $0x70] sm:$0xf]  ;;  %v4207_v31 = vld [vmem:[%s5925_s10 + $0x74] sm:$0xf0]  ;;  %v3704_v33 = vld [vmem:[%s5925_s10 + $0x60] sm:$0xf] }
 0x401   :  { %v1156_v40 = vmax.f32 %v1148_v25, %v1152_v29  ;;  %v1831_v25 = vpack.c.b16 %v1827_v22, %v1827_v22  ;;  %v1848_v26 = vsel %vm1837_vm8, %v1832_v24, 0  ;;  %v3713_v34 = vor.u32 %v4207_v31, %v3712_v30  ;;  %v4205_v29 = vld [vmem:[%s5925_s10 + $0x64] sm:$0xf0]  ;;  %v3728_v22 = vld [vmem:[%s5925_s10 + $0x90] sm:$0xf] }
 0x402   :  { %v1221_v17 = vpack.c.bf16 %v1153_v36, %v1153_v36  ;;  %v1222_v35 = vpack.c.bf16 %v1154_v38, %v1154_v38  ;;  %v1223_v42 = vpack.c.bf16 %v1155_v39, %v1155_v39  ;;  %v3776_v36 = vld [vmem:[%s5925_s10 + $0xf0] sm:$0xf]  ;;  %v4223_v38 = vld [vmem:[%s5925_s10 + $0xf4] sm:$0xf0]  ;;  %v4249_v30 = vld [vmem:[%s5925_s10 + $0x1c4] sm:$0xf0] }
 0x403   :  { %v1224_v41 = vpack.c.bf16 %v1156_v40, %v1156_v40  ;;  %v1845_v28 = vsel %vm1837_vm8, %v1831_v25, 0  ;;  %v3777_v39 = vor.u32 %v4223_v38, %v3776_v36  ;;  %v3768_v40 = vld [vmem:[%s5925_s10 + $0xe0] sm:$0xf]  ;;  %v4211_v24 = vld [vmem:[%s5925_s10 + $0x94] sm:$0xf0] }
 0x404   :  { %1429 = vmatmul.bf16.vlgmr.msrb.gmra.mxu1 %v1221_v17  ;;  %1442 = vmatmul.bf16.vlgmr.msrb.gmra.mxu2 %v1222_v35  ;;  %v3656_v31 = vld [vmem:[%s5925_s10] sm:$0xf]  ;;  %v3729_v36 = vor.u32 %v4211_v24, %v3728_v22  ;;  %v3714_v38 = vld [vmem:[%s5925_s10 + $0x78] sm:$0xf0]  ;;  %v3754_v22 = vld [vmem:[%s5925_s10 + $0xc8] sm:$0xf0] }
 0x405   :  { %1455 = vmatmul.bf16.vlgmr.msrb.gmra.mxu3 %v1223_v42  ;;  %1468 = vmatmul.bf16.vlgmr.msra.gmra.mxu0 %v1224_v41 }
 0x406   :  { %1870 = vmatpush.bf16.msrb.mxu2 %v1842_v11  ;;  %1857 = vmatpush.bf16.msrb.mxu1 %v1839_v12  ;;  %v4213_v11 = vld [vmem:[%s5925_s10 + $0xa4] sm:$0xf0] }
 0x407   :  { %2304 = vmatpush.bf16.msrb.mxu3 %v3713_v34  ;;  %2317 = vmatpush.bf16.msra.mxu0 %v3777_v39  ;;  %v3737_v20 = vor.u32 %v4213_v11, %v3736_v9  ;;  %v3817_v34 = vor.u32 %v4233_v21, %v3816_v10  ;;  %v3808_v39 = vld [vmem:[%s5925_s10 + $0x130] sm:$0xf]  ;;  %v3784_v9 = vld [vmem:[%s5925_s10 + $0x100] sm:$0xf]  ;;  %v4225_v11 = vld [vmem:[%s5925_s10 + $0x104] sm:$0xf0] }
 0x408   :  { %v4243_v10 = vld [vmem:[%s5925_s10 + $0x194] sm:$0xf0]  ;;  %v4216_v21 = vld [vmem:[%s5925_s10 + $0xc4] sm:$0xf] }
 0x414   :  { %1741 = vmatmul.bf16.vlgmr.msra.gmra.mxu1 %v1221_v17  ;;  %1754 = vmatmul.bf16.vlgmr.msra.gmra.mxu2 %v1222_v35  ;;  %v3705_v17 = vor.u32 %v4205_v29, %v3704_v33  ;;  %v4221_v35 = vld [vmem:[%s5925_s10 + $0xe4] sm:$0xf0]  ;;  %v4206_v29 = vld [vmem:[%s5925_s10 + $0x74] sm:$0xf] }
 0x415   :  { %1767 = vmatmul.bf16.vlgmr.msra.gmra.mxu3 %v1223_v42  ;;  %1780 = vmatmul.bf16.vlgmr.msrb.gmra.mxu0 %v1224_v41  ;;  %v3696_v42 = vld [vmem:[%s5925_s10 + $0x50] sm:$0xf]  ;;  %v4203_v41 = vld [vmem:[%s5925_s10 + $0x54] sm:$0xf0]  ;;  %v4193_v33 = vld [vmem:[%s5925_s10 + $0x4] sm:$0xf0] }
 0x416   :  { %1896 = vmatpush.bf16.msra.mxu2 %v1848_v26  ;;  %1883 = vmatpush.bf16.msra.mxu1 %v1845_v28  ;;  %v3880_v28 = vld [vmem:[%s5925_s10 + $0x1c0] sm:$0xf] }
 0x417   :  { %2305 = vmatpush.bf16.msrb.mxu3 %v3705_v17  ;;  %v3881_v17 = vor.u32 %v4249_v30, %v3880_v28  ;;  %v3674_v28 = vld [vmem:[%s5925_s10 + $0x28] sm:$0xf0]  ;;  %v4236_v30 = vld [vmem:[%s5925_s10 + $0x164] sm:$0xf] }
 0x481   :  { %v1430_v44 = vpop.f32.mrf.mxu1 }
 0x482   :  { %v1469_v43 = vpop.f32.mrf.mxu0  ;;  %v1431_v46 = vadd.f32 %v4300_v32, %v1430_v44  ;;  %v3769_v44 = vor.u32 %v4221_v35, %v3768_v40  ;;  %v3760_v32 = vld [vmem:[%s5925_s10 + $0xd0] sm:$0xf]  ;;  %v4231_v40 = vld [vmem:[%s5925_s10 + $0x134] sm:$0xf0]  ;;  %v3657_v35 = vor.u32 %v4193_v33, %v3656_v31  ;;  %v3834_v33 = vld [vmem:[%s5925_s10 + $0x168] sm:$0xf0] }
 0x484   :  { %2318 = vmatpush.bf16.msra.mxu0 %v3769_v44  ;;  %v4222_v44 = vld [vmem:[%s5925_s10 + $0xf4] sm:$0xf] }
 0x487   :  { %v1443_v47 = vpop.f32.mrf.mxu2 }
 0x488   :  { %v1444_v50 = vadd.f32 %v1443_v47, %v1431_v46  ;;  %v1456_v51 = vpop.f32.mrf.mxu3  ;;  %v3697_v46 = vor.u32 %v4203_v41, %v3696_v42  ;;  %v3688_v47 = vld [vmem:[%s5925_s10 + $0x40] sm:$0xf]  ;;  %v4209_v41 = vld [vmem:[%s5925_s10 + $0x84] sm:$0xf0] }
 0x489   :  { %v1432_v52 = vpop.f32.mrf.mxu1  ;;  %v3720_v42 = vld [vmem:[%s5925_s10 + $0x80] sm:$0xf] }
 0x48a   :  { %v1457_v53 = vadd.f32 %v1456_v51, %v1444_v50  ;;  %v1471_v48 = vpop.f32.mrf.mxu0  ;;  %v4201_v50 = vld [vmem:[%s5925_s10 + $0x44] sm:$0xf0]  ;;  %v3840_v52 = vld [vmem:[%s5925_s10 + $0x170] sm:$0xf]  ;;  %2306 = vmatpush.bf16.msrb.mxu3 %v3697_v46  ;;  %v3809_v46 = vor.u32 %v4231_v40, %v3808_v39  ;;  %v4214_v39 = vld [vmem:[%s5925_s10 + $0xb4] sm:$0xf] }
 0x48b   :  { %v3752_v48 = vld [vmem:[%s5925_s10 + $0xc0] sm:$0xf]  ;;  %v3746_v40 = vld [vmem:[%s5925_s10 + $0xb8] sm:$0xf0] }
 0x48c   :  { %v1470_v54 = vadd.f32 %v1469_v43, %v1457_v53  ;;  %v4219_v43 = vld [vmem:[%s5925_s10 + $0xd4] sm:$0xf0] }
 0x48d   :  { %v3761_v51 = vor.u32 %v4219_v43, %v3760_v32  ;;  %v4239_v53 = vld [vmem:[%s5925_s10 + $0x174] sm:$0xf0]  ;;  %v3778_v32 = vld [vmem:[%s5925_s10 + $0xf8] sm:$0xf0]  ;;  %v3717_v43 = vor.u32 %v4206_v29, %v3714_v38  ;;  %v4241_v29 = vld [vmem:[%s5925_s10 + $0x184] sm:$0xf0] }
 0x48e   :  { %3028 = vrot.lane.b32.xlu2 %v1470_v54, %s4348_s3 }
 0x48f   :  { %v1445_v55 = vpop.f32.mrf.mxu2  ;;  %2319 = vmatpush.bf16.msra.mxu0 %v3761_v51  ;;  %v3721_v51 = vor.u32 %v4209_v41, %v3720_v42  ;;  %v3906_v42 = vld [vmem:[%s5925_s10 + $0x1f8] sm:$0xf0] }
 0x490   :  { %v1458_v45 = vpop.f32.mrf.mxu3  ;;  %v3689_v55 = vor.u32 %v4201_v50, %v3688_v47  ;;  %v4204_v47 = vld [vmem:[%s5925_s10 + $0x64] sm:$0xf]  ;;  %v3706_v50 = vld [vmem:[%s5925_s10 + $0x68] sm:$0xf0] }
 0x491   :  { %v1742_v56 = vpop.f32.mrf.mxu1  ;;  %v3904_v45 = vld [vmem:[%s5925_s10 + $0x1f0] sm:$0xf] }
 0x492   :  { %v1781_v57 = vpop.f32.mrf.mxu0  ;;  %v1743_v58 = vadd.f32 %v4301_v37, %v1742_v56  ;;  %v4255_v56 = vld [vmem:[%s5925_s10 + $0x1f4] sm:$0xf0]  ;;  %v3680_v37 = vld [vmem:[%s5925_s10 + $0x30] sm:$0xf]  ;;  %2307 = vmatpush.bf16.msrb.mxu3 %v3689_v55 }
 0x497   :  { %v1755_v59 = vpop.f32.mrf.mxu2 }
 0x498   :  { %v1756_v61 = vadd.f32 %v1755_v59, %v1743_v58  ;;  %v1768_v62 = vpop.f32.mrf.mxu3  ;;  %v3841_v58 = vor.u32 %v4239_v53, %v3840_v52  ;;  %v3781_v52 = vor.u32 %v4222_v44, %v3778_v32  ;;  %v3709_v53 = vor.u32 %v4204_v47, %v3706_v50  ;;  %v4194_v44 = vld [vmem:[%s5925_s10 + $0x14] sm:$0xf]  ;;  %v3666_v32 = vld [vmem:[%s5925_s10 + $0x18] sm:$0xf0] }
 0x499   :  { %v1744_v60 = vpop.f32.mrf.mxu1  ;;  %v3826_v47 = vld [vmem:[%s5925_s10 + $0x158] sm:$0xf0] }
 0x49a   :  { %v1769_v63 = vadd.f32 %v1768_v62, %v1756_v61  ;;  %v1783_v0 = vpop.f32.mrf.mxu0  ;;  %v3832_v61 = vld [vmem:[%s5925_s10 + $0x160] sm:$0xf]  ;;  %v4237_v62 = vld [vmem:[%s5925_s10 + $0x164] sm:$0xf0]  ;;  %v3744_v60 = vld [vmem:[%s5925_s10 + $0xb0] sm:$0xf] }
 0x49b   :  { %v3905_v0 = vor.u32 %v4255_v56, %v3904_v45  ;;  %v3833_v4 = vor.u32 %v4237_v62, %v3832_v61  ;;  %v4202_v45 = vld [vmem:[%s5925_s10 + $0x54] sm:$0xf]  ;;  %v3698_v56 = vld [vmem:[%s5925_s10 + $0x58] sm:$0xf0]  ;;  %v4220_v61 = vld [vmem:[%s5925_s10 + $0xe4] sm:$0xf] }
 0x49c   :  { %v1782_v2 = vadd.f32 %v1781_v57, %v1769_v63  ;;  %v4199_v57 = vld [vmem:[%s5925_s10 + $0x34] sm:$0xf0]  ;;  %v3770_v62 = vld [vmem:[%s5925_s10 + $0xe8] sm:$0xf0] }
 0x49d   :  { %v4215_v63 = vld [vmem:[%s5925_s10 + $0xb4] sm:$0xf0] }
 0x49e   :  { %v1785_v3 = vmul.f32 0.5, %v1782_v2  ;;  %3034 = vrot.lane.b32.xlu2 %v1782_v2, %s4349_s20  ;;  %v3745_v49 = vor.u32 %v4215_v63, %v3744_v60  ;;  %v3773_v60 = vor.u32 %v4220_v61, %v3770_v62  ;;  %v3792_v63 = vld [vmem:[%s5925_s10 + $0x110] sm:$0xf]  ;;  %v4210_v61 = vld [vmem:[%s5925_s10 + $0x94] sm:$0xf] }
 0x49f   :  { %v1757_v5 = vpop.f32.mrf.mxu2  ;;  %v3730_v62 = vld [vmem:[%s5925_s10 + $0x98] sm:$0xf0] }
 0x4a0   :  { %v1786_v6 = vmul.f32 1.442695, %v1785_v3  ;;  %v1770_v7 = vpop.f32.mrf.mxu3  ;;  %v3681_v3 = vor.u32 %v4199_v57, %v3680_v37  ;;  %v3896_v5 = vld [vmem:[%s5925_s10 + $0x1e0] sm:$0xf]  ;;  %v3701_v37 = vor.u32 %v4202_v45, %v3698_v56  ;;  %v3872_v57 = vld [vmem:[%s5925_s10 + $0x1b0] sm:$0xf] }
 0x4a1   :  { %v3672_v7 = vld [vmem:[%s5925_s10 + $0x20] sm:$0xf]  ;;  %v4192_v45 = vld [vmem:[%s5925_s10 + $0x4] sm:$0xf]  ;;  %v3658_v56 = vld [vmem:[%s5925_s10 + $0x8] sm:$0xf0] }
 0x4a2   :  { %4327 = vpow2.f32 %v1786_v6  ;;  %v4253_v6 = vld [vmem:[%s5925_s10 + $0x1e4] sm:$0xf0]  ;;  %2308 = vmatpush.bf16.msrb.mxu3 %v3681_v3  ;;  %v4200_v3 = vld [vmem:[%s5925_s10 + $0x44] sm:$0xf] }
 0x4a3   :  { %v3897_v12 = vor.u32 %v4253_v6, %v3896_v5  ;;  %v3690_v5 = vld [vmem:[%s5925_s10 + $0x48] sm:$0xf0] }
 0x4a4   :  { %v3693_v6 = vor.u32 %v4200_v3, %v3690_v5  ;;  %v4230_v5 = vld [vmem:[%s5925_s10 + $0x134] sm:$0xf] }
 0x4a8   :  { %v4328_v27 = vpop.eup %4327 }
 0x4a9   :  { %1789 = vrot.lane.b32.xlu0 %v4328_v27, %s4350_s21  ;;  %v4197_v27 = vld [vmem:[%s5925_s10 + $0x24] sm:$0xf0] }
 0x4b1   :  { %1794 = vrot.lane.b32.xlu0 %v1470_v54, %s4350_s21  ;;  %v4217_v54 = vld [vmem:[%s5925_s10 + $0xc4] sm:$0xf0] }
 0x4b2   :  { %v3753_v59 = vor.u32 %v4217_v54, %v3752_v48  ;;  %v3800_v48 = vld [vmem:[%s5925_s10 + $0x120] sm:$0xf]  ;;  %v4229_v54 = vld [vmem:[%s5925_s10 + $0x124] sm:$0xf0] }
 0x4b3   :  { %v3801_v55 = vor.u32 %v4229_v54, %v3800_v48  ;;  %v3898_v54 = vld [vmem:[%s5925_s10 + $0x1e8] sm:$0xf0] }
 0x4b4   :  { %2320 = vmatpush.bf16.msra.mxu0 %v3753_v59 }
 0x4b8   :  { %2321 = vmatpush.bf16.msra.mxu0 %v3745_v49  ;;  %v4218_v49 = vld [vmem:[%s5925_s10 + $0xd4] sm:$0xf] }
 0x4bc   :  { %2322 = vmatpush.bf16.msra.mxu0 %v3737_v20 }
 0x4c0   :  { %2323 = vmatpush.bf16.msra.mxu0 %v3729_v36  ;;  %v3837_v36 = vor.u32 %v4236_v30, %v3834_v33  ;;  %v3866_v30 = vld [vmem:[%s5925_s10 + $0x1a8] sm:$0xf0] }
 0x4c1   :  { %v3786_v33 = vld [vmem:[%s5925_s10 + $0x108] sm:$0xf0] }
 0x4c4   :  { %2324 = vmatpush.bf16.msra.mxu0 %v3721_v51  ;;  %v4212_v51 = vld [vmem:[%s5925_s10 + $0xa4] sm:$0xf] }
 0x4c8   :  { %2369 = vmatpush.bf16.msrb.mxu0 %v3781_v52  ;;  %v3738_v52 = vld [vmem:[%s5925_s10 + $0xa8] sm:$0xf0] }
 0x4c9   :  { %v3741_v48 = vor.u32 %v4212_v51, %v3738_v52 }
 0x4cc   :  { %2370 = vmatpush.bf16.msrb.mxu0 %v3773_v60  ;;  %v4250_v60 = vld [vmem:[%s5925_s10 + $0x1d4] sm:$0xf] }
 0x51b   :  { %v1790_v13 = vpop.permute.xlu0 %1789 }
 0x51c   :  { %v1792_v15 = vmul.f32 %v4345_v14, %v1790_v13  ;;  %v3673_v13 = vor.u32 %v4197_v27, %v3672_v7  ;;  %v3864_v7 = vld [vmem:[%s5925_s10 + $0x1a0] sm:$0xf]  ;;  %v4245_v27 = vld [vmem:[%s5925_s10 + $0x1a4] sm:$0xf0] }
 0x51e   :  { %2309 = vmatpush.bf16.msrb.mxu3 %v3673_v13  ;;  %v4198_v13 = vld [vmem:[%s5925_s10 + $0x34] sm:$0xf] }
 0x523   :  { %v1795_v16 = vpop.permute.xlu0 %1794 }
 0x524   :  { %v1797_v18 = vadd.f32 %v1795_v16, %v1792_v15  ;;  %v4251_v15 = vld [vmem:[%s5925_s10 + $0x1d4] sm:$0xf0]  ;;  %v3664_v16 = vld [vmem:[%s5925_s10 + $0x10] sm:$0xf] }
 0x526   :  { %v1800_v19 = vpack.c.bf16 %v1797_v18, %v1797_v18  ;;  %v4195_v18 = vld [vmem:[%s5925_s10 + $0x14] sm:$0xf0] }
 0x527   :  { %v3665_v26 = vor.u32 %v4195_v18, %v3664_v16  ;;  %v3842_v18 = vld [vmem:[%s5925_s10 + $0x178] sm:$0xf0] }
 0x528   :  { %1821 = vrot.lane.b32.xlu1 %v1800_v19, %s4351_s26  ;;  %v3825_v19 = vor.u32 %v4235_v8, %v3824_v1  ;;  %v3762_v1 = vld [vmem:[%s5925_s10 + $0xd8] sm:$0xf0] }
 0x529   :  { %2310 = vmatpush.bf16.msrb.mxu3 %v3665_v26  ;;  %v3765_v8 = vor.u32 %v4218_v49, %v3762_v1  ;;  %v4196_v26 = vld [vmem:[%s5925_s10 + $0x24] sm:$0xf] }
 0x52a   :  { %v3677_v31 = vor.u32 %v4196_v26, %v3674_v28  ;;  %v4248_v49 = vld [vmem:[%s5925_s10 + $0x1c4] sm:$0xf] }
 0x52b   :  { %2371 = vmatpush.bf16.msrb.mxu0 %v3765_v8  ;;  %v4244_v26 = vld [vmem:[%s5925_s10 + $0x1a4] sm:$0xf] }
 0x52d   :  { %2311 = vmatpush.bf16.msrb.mxu3 %v3657_v35  ;;  %v3749_v35 = vor.u32 %v4214_v39, %v3746_v40  ;;  %v3858_v39 = vld [vmem:[%s5925_s10 + $0x198] sm:$0xf0] }
 0x530   :  { %1804 = vperm.xlu1 %4295, %v4345_v14   ;;  %v3888_v14 = vld [vmem:[%s5925_s10 + $0x1d0] sm:$0xf] }
 0x531   :  { %v3889_v25 = vor.u32 %v4251_v15, %v3888_v14  ;;  %2356 = vmatpush.bf16.msra.mxu3 %v3717_v43  ;;  %v3682_v14 = vld [vmem:[%s5925_s10 + $0x38] sm:$0xf0]  ;;  %v4238_v15 = vld [vmem:[%s5925_s10 + $0x174] sm:$0xf]  ;;  %v3669_v43 = vor.u32 %v4194_v44, %v3666_v32 }
 0x532   :  { %v3685_v16 = vor.u32 %v4198_v13, %v3682_v14  ;;  %v3845_v20 = vor.u32 %v4238_v15, %v3842_v18  ;;  %v4228_v14 = vld [vmem:[%s5925_s10 + $0x124] sm:$0xf]  ;;  %v3802_v15 = vld [vmem:[%s5925_s10 + $0x128] sm:$0xf0]  ;;  %v4246_v18 = vld [vmem:[%s5925_s10 + $0x1b4] sm:$0xf] }
 0x535   :  { %2357 = vmatpush.bf16.msra.mxu3 %v3709_v53  ;;  %v4252_v53 = vld [vmem:[%s5925_s10 + $0x1e4] sm:$0xf] }
 0x539   :  { %2358 = vmatpush.bf16.msra.mxu3 %v3701_v37  ;;  %v4232_v37 = vld [vmem:[%s5925_s10 + $0x144] sm:$0xf] }
 0x53d   :  { %2359 = vmatpush.bf16.msra.mxu3 %v3693_v6  ;;  %v3810_v6 = vld [vmem:[%s5925_s10 + $0x138] sm:$0xf0] }
 0x541   :  { %2360 = vmatpush.bf16.msra.mxu3 %v3685_v16  ;;  %v3805_v16 = vor.u32 %v4228_v14, %v3802_v15 }
 0x545   :  { %2361 = vmatpush.bf16.msra.mxu3 %v3677_v31  ;;  %v4224_v31 = vld [vmem:[%s5925_s10 + $0x104] sm:$0xf] }
 0x546   :  { %v3789_v40 = vor.u32 %v4224_v31, %v3786_v33 }
 0x549   :  { %2362 = vmatpush.bf16.msra.mxu3 %v3669_v43 }
 0x59a   :  { %v5411_v2 = vpop.permute.xlu1 %1821 }
 0x59b   :  { %3650 = vmatmul.msk.bf16.vlgmr.msrb.gmra.mxu1 %vm1833_vm9, %v5411_v2  ;;  %3651 = vmatmul.msk.bf16.vlgmr.msrb.gmra.mxu2 %vm1833_vm9, %v5411_v2 }
 0x59c   :  { %2330 = vmatpush.bf16.msrb.mxu1 %v3841_v58  ;;  %2343 = vmatpush.bf16.msrb.mxu2 %v3905_v0  ;;  %v4247_v58 = vld [vmem:[%s5925_s10 + $0x1b4] sm:$0xf0] }
 0x59d   :  { %v3873_v59 = vor.u32 %v4247_v58, %v3872_v57  ;;  %v4227_v0 = vld [vmem:[%s5925_s10 + $0x114] sm:$0xf0]  ;;  %v3661_v57 = vor.u32 %v4192_v45, %v3658_v56  ;;  %v3818_v58 = vld [vmem:[%s5925_s10 + $0x148] sm:$0xf0] }
 0x59f   :  { %2363 = vmatpush.bf16.msra.mxu3 %v3661_v57 }
 0x5a0   :  { %2331 = vmatpush.bf16.msrb.mxu1 %v3833_v4  ;;  %2344 = vmatpush.bf16.msrb.mxu2 %v3897_v12  ;;  %v3865_v4 = vor.u32 %v4245_v27, %v3864_v7  ;;  %v3785_v12 = vor.u32 %v4225_v11, %v3784_v9  ;;  %v3813_v7 = vor.u32 %v4230_v5, %v3810_v6  ;;  %v4208_v27 = vld [vmem:[%s5925_s10 + $0x84] sm:$0xf]  ;;  %v3882_v9 = vld [vmem:[%s5925_s10 + $0x1c8] sm:$0xf0] }
 0x5a1   :  { %v3885_v13 = vor.u32 %v4248_v49, %v3882_v9 }
 0x5a2   :  { %v1805_v11 = vpop.permute.xlu1 %1804 }
 0x5a4   :  { %2332 = vmatpush.bf16.msrb.mxu1 %v3825_v19  ;;  %2345 = vmatpush.bf16.msrb.mxu2 %v3889_v25  ;;  %v3856_v19 = vld [vmem:[%s5925_s10 + $0x190] sm:$0xf]  ;;  %v3757_v25 = vor.u32 %v4216_v21, %v3754_v22 }
 0x5a5   :  { %v3857_v24 = vor.u32 %v4243_v10, %v3856_v19  ;;  %v3874_v19 = vld [vmem:[%s5925_s10 + $0x1b8] sm:$0xf0] }
 0x5a6   :  { %2372 = vmatpush.bf16.msrb.mxu0 %v3757_v25  ;;  %v3877_v22 = vor.u32 %v4246_v18, %v3874_v19  ;;  %v3794_v25 = vld [vmem:[%s5925_s10 + $0x118] sm:$0xf0] }
 0x5a8   :  { %2333 = vmatpush.bf16.msrb.mxu1 %v3817_v34  ;;  %2346 = vmatpush.bf16.msrb.mxu2 %v3881_v17  ;;  %v3848_v34 = vld [vmem:[%s5925_s10 + $0x180] sm:$0xf]  ;;  %v4254_v17 = vld [vmem:[%s5925_s10 + $0x1f4] sm:$0xf] }
 0x5a9   :  { %v3849_v38 = vor.u32 %v4241_v29, %v3848_v34  ;;  %v3909_v41 = vor.u32 %v4254_v17, %v3906_v42  ;;  %v3869_v29 = vor.u32 %v4244_v26, %v3866_v30 }
 0x5aa   :  { %2373 = vmatpush.bf16.msrb.mxu0 %v3749_v35 }
 0x5ab   :  { %3652 = vmatmul.msk.bf16.vlgmr.msra.gmra.mxu1 %vm1833_vm9, %v5411_v2  ;;  %3653 = vmatmul.msk.bf16.vlgmr.msra.gmra.mxu2 %vm1833_vm9, %v5411_v2  ;;  %v3793_v2 = vor.u32 %v4227_v0, %v3792_v63  ;;  %v3733_v63 = vor.u32 %v4210_v61, %v3730_v62  ;;  %v3890_v0 = vld [vmem:[%s5925_s10 + $0x1d8] sm:$0xf0] }
 0x5ac   :  { %2334 = vmatpush.bf16.msrb.mxu1 %v3809_v46  ;;  %2347 = vmatpush.bf16.msrb.mxu2 %v3873_v59  ;;  %v4234_v46 = vld [vmem:[%s5925_s10 + $0x154] sm:$0xf]  ;;  %v3821_v59 = vor.u32 %v4232_v37, %v3818_v58  ;;  %v3893_v3 = vor.u32 %v4250_v60, %v3890_v0 }
 0x5ad   :  { %v3829_v50 = vor.u32 %v4234_v46, %v3826_v47  ;;  %v4240_v46 = vld [vmem:[%s5925_s10 + $0x184] sm:$0xf]  ;;  %v3850_v47 = vld [vmem:[%s5925_s10 + $0x188] sm:$0xf0] }
 0x5ae   :  { %2374 = vmatpush.bf16.msrb.mxu0 %v3741_v48  ;;  %v3853_v51 = vor.u32 %v4240_v46, %v3850_v47 }
 0x5b0   :  { %2335 = vmatpush.bf16.msrb.mxu1 %v3801_v55  ;;  %2348 = vmatpush.bf16.msrb.mxu2 %v3865_v4  ;;  %v3901_v55 = vor.u32 %v4252_v53, %v3898_v54  ;;  %v3722_v4 = vld [vmem:[%s5925_s10 + $0x88] sm:$0xf0] }
 0x5b1   :  { %v3725_v8 = vor.u32 %v4208_v27, %v3722_v4 }
 0x5b2   :  { %2375 = vmatpush.bf16.msrb.mxu0 %v3733_v63 }
 0x5b4   :  { %2336 = vmatpush.bf16.msrb.mxu1 %v3793_v2  ;;  %2349 = vmatpush.bf16.msrb.mxu2 %v3857_v24  ;;  %v5670_v2 = vld [vmem:[%s5916_s1 + $0x14] sm:$0xf] }
 0x5b5   :  { %v1808_v1 = vperm.slane %v5670_v2, 0  ;;  %v1809_v21 = vperm.slane %v5670_v2, 1  ;;  %v4226_v24 = vld [vmem:[%s5925_s10 + $0x114] sm:$0xf]  ;;  %v1810_v53 = vperm.slane %v5670_v2, 2  ;;  %v1811_v57 = vperm.slane %v5670_v2, 3 }
 0x5b6   :  { %2376 = vmatpush.bf16.msrb.mxu0 %v3725_v8  ;;  %v3797_v28 = vor.u32 %v4226_v24, %v3794_v25 }
 0x5b7   :  { %v1817_v35 = vmul.f32 %v1809_v21, %v1805_v11  ;;  %v1818_v54 = vmul.f32 %v1810_v53, %v1805_v11  ;;  %v1819_v61 = vmul.f32 %v1811_v57, %v1805_v11 }
 0x5b8   :  { %2337 = vmatpush.bf16.msrb.mxu1 %v3785_v12  ;;  %2350 = vmatpush.bf16.msrb.mxu2 %v3849_v38  ;;  %v5694_v12 = vld [vmem:[%s5916_s1 + $0x18] sm:$0xf]  ;;  %v4242_v38 = vld [vmem:[%s5925_s10 + $0x194] sm:$0xf] }
 0x5b9   :  { %v1904_v10 = vperm.slane %v5694_v12, 0  ;;  %v3861_v42 = vor.u32 %v4242_v38, %v3858_v39  ;;  %v1905_v44 = vperm.slane %v5694_v12, 1  ;;  %v1906_v45 = vperm.slane %v5694_v12, 2 }
 0x5ba   :  { %v1907_v62 = vperm.slane %v5694_v12, 3 }
 0x5bc   :  { %2382 = vmatpush.bf16.msra.mxu1 %v3845_v20  ;;  %2395 = vmatpush.bf16.msra.mxu2 %v3909_v41  ;;  %v1816_v20 = vmul.f32 %v1808_v1, %v1805_v11 }
 0x5c0   :  { %2383 = vmatpush.bf16.msra.mxu1 %v3837_v36  ;;  %2396 = vmatpush.bf16.msra.mxu2 %v3901_v55 }
 0x5c4   :  { %2384 = vmatpush.bf16.msra.mxu1 %v3829_v50  ;;  %2397 = vmatpush.bf16.msra.mxu2 %v3893_v3 }
 0x5c8   :  { %2385 = vmatpush.bf16.msra.mxu1 %v3821_v59  ;;  %2398 = vmatpush.bf16.msra.mxu2 %v3885_v13 }
 0x5cc   :  { %2386 = vmatpush.bf16.msra.mxu1 %v3813_v7  ;;  %2399 = vmatpush.bf16.msra.mxu2 %v3877_v22 }
 0x5d0   :  { %2387 = vmatpush.bf16.msra.mxu1 %v3805_v16  ;;  %2400 = vmatpush.bf16.msra.mxu2 %v3869_v29 }
 0x5d4   :  { %2388 = vmatpush.bf16.msra.mxu1 %v3797_v28  ;;  %2401 = vmatpush.bf16.msra.mxu2 %v3861_v42 }
 0x5d8   :  { %2389 = vmatpush.bf16.msra.mxu1 %v3789_v40  ;;  %2402 = vmatpush.bf16.msra.mxu2 %v3853_v51  ;;  %v4270_v51 = vld [vmem:[%s5926_s11 + $0x70] sm:$0xff] }
 0x618   :  { %v1859_v34 = vpop.f32.mrf.mxu1 }
 0x619   :  { %v1860_v36 = vadd.f32 %v1859_v34, %v1816_v20 }
 0x61b   :  { %v1912_v17 = vadd.f32 %v1904_v10, %v1860_v36 }
 0x61d   :  { %v1980_v41 = vpack.c.bf16 %v1912_v17, %v1912_v17 }
 0x61e   :  { %v1872_v32 = vpop.f32.mrf.mxu2 }
 0x61f   :  { %v1873_v43 = vadd.f32 %v1872_v32, %v1817_v35  ;;  %2312 = vmatmul.bf16.vlgmr.msrb.gmra.mxu3 %v1980_v41 }
 0x620   :  { %v1861_v50 = vpop.f32.mrf.mxu1 }
 0x621   :  { %v1913_v52 = vadd.f32 %v1905_v44, %v1873_v43  ;;  %v4271_v44 = vld [vmem:[%s5926_s11 + $0x78] sm:$0xff]  ;;  %v4262_v50 = vld [vmem:[%s5926_s11 + $0x30] sm:$0xff] }
 0x623   :  { %v1981_v48 = vpack.c.bf16 %v1913_v52, %v1913_v52 }
 0x625   :  { %2325 = vmatmul.bf16.vlgmr.msra.gmra.mxu0 %v1981_v48 }
 0x626   :  { %v1874_v55 = vpop.f32.mrf.mxu2  ;;  %2631 = vmatpush.bf16.msra.mxu0 %v4271_v44 }
 0x627   :  { %v4261_v55 = vld [vmem:[%s5926_s11 + $0x28] sm:$0xff] }
 0x628   :  { %v1885_v56 = vpop.f32.mrf.mxu1 }
 0x629   :  { %v1886_v37 = vadd.f32 %v1885_v56, %v1818_v54 }
 0x62a   :  { %2632 = vmatpush.bf16.msra.mxu0 %v4270_v51 }
 0x62b   :  { %v1914_v58 = vadd.f32 %v1906_v45, %v1886_v37  ;;  %v4269_v45 = vld [vmem:[%s5926_s11 + $0x68] sm:$0xff] }
 0x62d   :  { %v1982_v59 = vpack.c.bf16 %v1914_v58, %v1914_v58  ;;  %v4260_v58 = vld [vmem:[%s5926_s11 + $0x20] sm:$0xff] }
 0x62e   :  { %v1898_v60 = vpop.f32.mrf.mxu2  ;;  %2633 = vmatpush.bf16.msra.mxu0 %v4269_v45 }
 0x62f   :  { %v1899_v63 = vadd.f32 %v1898_v60, %v1819_v61  ;;  %2338 = vmatmul.bf16.vlgmr.msrb.gmra.mxu1 %v1982_v59  ;;  %2364 = vmatmul.bf16.vlgmr.msra.gmra.mxu3 %v1980_v41  ;;  %v4263_v41 = vld [vmem:[%s5926_s11 + $0x38] sm:$0xff] }
 0x630   :  { %v1887_v0 = vpop.f32.mrf.mxu1  ;;  %2618 = vmatpush.bf16.msrb.mxu3 %v4263_v41 }
 0x631   :  { %v1915_v3 = vadd.f32 %v1907_v62, %v1899_v63  ;;  %v4259_v63 = vld [vmem:[%s5926_s11 + $0x18] sm:$0xff] }
 0x632   :  { %v4267_v0 = vld [vmem:[%s5926_s11 + $0x58] sm:$0xff] }
 0x633   :  { %v1983_v5 = vpack.c.bf16 %v1915_v3, %v1915_v3 }
 0x634   :  { %2619 = vmatpush.bf16.msrb.mxu3 %v4262_v50 }
 0x635   :  { %2351 = vmatmul.bf16.vlgmr.msrb.gmra.mxu2 %v1983_v5  ;;  %2377 = vmatmul.bf16.vlgmr.msrb.gmra.mxu0 %v1981_v48 }
 0x636   :  { %v1900_v6 = vpop.f32.mrf.mxu2 }
 0x637   :  { %v4258_v6 = vld [vmem:[%s5926_s11 + $0x10] sm:$0xff] }
 0x638   :  { %2620 = vmatpush.bf16.msrb.mxu3 %v4261_v55 }
 0x63c   :  { %2621 = vmatpush.bf16.msrb.mxu3 %v4260_v58 }
 0x63f   :  { %2390 = vmatmul.bf16.vlgmr.msra.gmra.mxu1 %v1982_v59  ;;  %v4268_v59 = vld [vmem:[%s5926_s11 + $0x60] sm:$0xff] }
 0x640   :  { %2634 = vmatpush.bf16.msra.mxu0 %v4268_v59  ;;  %2622 = vmatpush.bf16.msrb.mxu3 %v4259_v63  ;;  %v4276_v63 = vld [vmem:[%s5927_s12 + $0x20] sm:$0xff] }
 0x644   :  { %2635 = vmatpush.bf16.msra.mxu0 %v4267_v0  ;;  %2623 = vmatpush.bf16.msrb.mxu3 %v4258_v6 }
 0x645   :  { %2403 = vmatmul.bf16.vlgmr.msra.gmra.mxu2 %v1983_v5 }
 0x6a2   :  { %v2313_v7 = vpop.f32.mrf.mxu3  ;;  %v2326_v27 = vpop.f32.mrf.mxu0 }
 0x6a3   :  { %v2327_v11 = vadd.f32 %v2326_v27, %v2313_v7  ;;  %v4266_v7 = vld [vmem:[%s5926_s11 + $0x50] sm:$0xff] }
 0x6a4   :  { %2636 = vmatpush.bf16.msra.mxu0 %v4266_v7 }
 0x6aa   :  { %v2315_v2 = vpop.f32.mrf.mxu3  ;;  %v2328_v4 = vpop.f32.mrf.mxu0 }
 0x6ab   :  { %v4257_v4 = vld [vmem:[%s5926_s11 + $0x8] sm:$0xff] }
 0x6ac   :  { %v2339_v49 = vpop.f32.mrf.mxu1  ;;  %2624 = vmatpush.bf16.msrb.mxu3 %v4257_v4 }
 0x6ad   :  { %v2340_v12 = vadd.f32 %v2339_v49, %v2327_v11  ;;  %v4265_v49 = vld [vmem:[%s5926_s11 + $0x48] sm:$0xff]  ;;  %v4264_v11 = vld [vmem:[%s5926_s11 + $0x40] sm:$0xff] }
 0x6ae   :  { %2637 = vmatpush.bf16.msra.mxu0 %v4265_v49  ;;  %v4273_v49 = vld [vmem:[%s5927_s12 + $0x8] sm:$0xff] }
 0x6b2   :  { %v2365_v1 = vpop.f32.mrf.mxu3  ;;  %v2378_v8 = vpop.f32.mrf.mxu0  ;;  %2638 = vmatpush.bf16.msra.mxu0 %v4264_v11 }
 0x6b3   :  { %v2379_v26 = vadd.f32 %v2378_v8, %v2365_v1 }
 0x6b4   :  { %v2341_v9 = vpop.f32.mrf.mxu1 }
 0x6b5   :  { %v4256_v9 = vld [vmem:[%s5926_s11] sm:$0xff] }
 0x6b6   :  { %2625 = vmatpush.bf16.msrb.mxu3 %v4256_v9 }
 0x6b8   :  { %v2352_v13 = vpop.f32.mrf.mxu2 }
 0x6b9   :  { %v2353_v14 = vadd.f32 %v2352_v13, %v2340_v12 }
 0x6ba   :  { %v2367_v15 = vpop.f32.mrf.mxu3  ;;  %v2380_v16 = vpop.f32.mrf.mxu0 }
 0x6bb   :  { %v2410_v18 = vrot.slane %v2353_v14, 4 }
 0x6bc   :  { %v2391_v19 = vpop.f32.mrf.mxu1 }
 0x6bd   :  { %v2411_v20 = vadd.f32 %v2410_v18, %v2353_v14  ;;  %v2392_v31 = vadd.f32 %v2391_v19, %v2379_v26  ;;  %v2408_v26 = vld [vmem:[%s5916_s1 + $0x1c] sm:$0x3] }
 0x6bf   :  { %v2412_v10 = vrot.slane %v2411_v20, 2 }
 0x6c0   :  { %v2354_v21 = vpop.f32.mrf.mxu2 }
 0x6c1   :  { %v2413_v22 = vadd.f32 %v2412_v10, %v2411_v20 }
 0x6c3   :  { %v2414_v24 = vrot.slane %v2413_v22, 1 }
 0x6c4   :  { %v2393_v25 = vpop.f32.mrf.mxu1 }
 0x6c5   :  { %v2415_v28 = vadd.f32 %v2414_v24, %v2413_v22 }
 0x6c7   :  { %v2422_v30 = vmul.f32 %v2415_v28, %v4449_v23 }
 0x6c8   :  { %v2404_v33 = vpop.f32.mrf.mxu2 }
 0x6c9   :  { %v5746_v34 = vsub.f32 %v2353_v14, %v2422_v30  ;;  %v2405_v29 = vadd.f32 %v2404_v33, %v2392_v31  ;;  %v2409_v31 = vld [vmem:[%s5916_s1 + $0x1e] sm:$0x3] }
 0x6cb   :  { %v2426_v36 = vmul.f32 %v5746_v34, %v5746_v34  ;;  %v2416_v38 = vrot.slane %v2405_v29, 4 }
 0x6cd   :  { %v2428_v39 = vrot.slane %v2426_v36, 4  ;;  %v2417_v40 = vadd.f32 %v2416_v38, %v2405_v29 }
 0x6cf   :  { %v2429_v17 = vadd.f32 %v2428_v39, %v2426_v36  ;;  %v2418_v35 = vrot.slane %v2417_v40, 2  ;;  %v2479_v39 = vperm.slane %v2409_v31, 1 }
 0x6d0   :  { %v2406_v42 = vpop.f32.mrf.mxu2 }
 0x6d1   :  { %v2430_v32 = vrot.slane %v2429_v17, 2  ;;  %v2419_v43 = vadd.f32 %v2418_v35, %v2417_v40  ;;  %v2478_v40 = vperm.slane %v2409_v31, 0 }
 0x6d3   :  { %v2431_v46 = vadd.f32 %v2430_v32, %v2429_v17  ;;  %v2420_v47 = vrot.slane %v2419_v43, 1 }
 0x6d5   :  { %v2432_v52 = vrot.slane %v2431_v46, 1  ;;  %v2421_v53 = vadd.f32 %v2420_v47, %v2419_v43 }
 0x6d7   :  { %v2433_v48 = vadd.f32 %v2432_v52, %v2431_v46  ;;  %v2423_v54 = vmul.f32 %v2421_v53, %v4449_v23 }
 0x6d9   :  { %v5769_v56 = vsub.f32 %v2405_v29, %v2423_v54  ;;  %v2440_v37 = vmul.f32 %v2433_v48, %v4449_v23 }
 0x6db   :  { %v2427_v57 = vmul.f32 %v5769_v56, %v5769_v56  ;;  %v2442_v62 = vadd.f32 1e-05, %v2440_v37 }
 0x6dd   :  { %v2434_v61 = vrot.slane %v2427_v57, 4  ;;  %4329 = vrsqrt.f32 %v2442_v62  ;;  %vm2450_vm14 = vweird.f32 %v2442_v62 }
 0x6df   :  { %v2435_v60 = vadd.f32 %v2434_v61, %v2427_v57  ;;  %v4278_v57 = vld [vmem:[%s5927_s12 + $0x30] sm:$0xff]  ;;  %v4277_v61 = vld [vmem:[%s5927_s12 + $0x28] sm:$0xff] }
 0x6e1   :  { %v2436_v3 = vrot.slane %v2435_v60, 2 }
 0x6e3   :  { %v2437_v5 = vadd.f32 %v2436_v3, %v2435_v60  ;;  %v4330_v1 = vpop.eup %4329 }
 0x6e4   :  { %v2445_v13 = vmul.f32 %v4330_v1, %v2442_v62  ;;  %vm2451_vm11 = vweird.f32 %v4330_v1 }
 0x6e5   :  { %v2438_v27 = vrot.slane %v2437_v5, 1  ;;  %vm2452_vm15 = vmor %vm2450_vm14, %vm2451_vm11 }
 0x6e6   :  { %v2446_v14 = vmul.f32 %v4330_v1, %v2445_v13 }
 0x6e7   :  { %v2439_v2 = vadd.f32 %v2438_v27, %v2437_v5  ;;  %v4275_v5 = vld [vmem:[%s5927_s12 + $0x18] sm:$0xff]  ;;  %v4274_v27 = vld [vmem:[%s5927_s12 + $0x10] sm:$0xff] }
 0x6e8   :  { %v2447_v16 = vmul.f32 0.5, %v2446_v14 }
 0x6e9   :  { %v2441_v8 = vmul.f32 %v2439_v2, %v4449_v23 }
 0x6ea   :  { %v2448_v20 = vsub.f32 1.5, %v2447_v16 }
 0x6eb   :  { %v2443_v12 = vadd.f32 1e-05, %v2441_v8  ;;  %v4272_v8 = vld [vmem:[%s5927_s12] sm:$0xff] }
 0x6ec   :  { %v2449_v22 = vmul.f32 %v4330_v1, %v2448_v20 }
 0x6ed   :  { %4331 = vrsqrt.f32 %v2443_v12  ;;  %vm2460_vm12 = vweird.f32 %v2443_v12 }
 0x6ee   :  { %v2453_v30 = vsel %vm2452_vm15, %v4330_v1, %v2449_v22  ;;  %v4302_v22 = vld [vmem:[%s5916_s1 + $0x21] ss:$0 sm:$0xff]  ;;  %vm3026_vm15 = vcmask 130048  }
 0x6f3   :  { %v4332_v15 = vpop.eup %4331 }
 0x6f4   :  { %v2455_v18 = vmul.f32 %v4332_v15, %v2443_v12  ;;  %vm2461_vm10 = vweird.f32 %v4332_v15 }
 0x6f5   :  { %vm2462_vm13 = vmor %vm2460_vm12, %vm2461_vm10 }
 0x6f6   :  { %v2456_v19 = vmul.f32 %v4332_v15, %v2455_v18  ;;  %v2644_v18 = vld [vmem:[%s5916_s1 + $0x20] sm:$0x1] }
 0x6f8   :  { %v2457_v10 = vmul.f32 0.5, %v2456_v19 }
 0x6fa   :  { %v2458_v21 = vsub.f32 1.5, %v2457_v10 }
 0x6fc   :  { %v2459_v24 = vmul.f32 %v4332_v15, %v2458_v21 }
 0x6fe   :  { %v2463_v25 = vsel %vm2462_vm13, %v4332_v15, %v2459_v24 }
 0x6ff   :  { %v2466_v28 = vrot.slane %v2463_v25, 7 }
 0x701   :  { %v2467_v33 = vsel %vm72_vm0, %v2453_v30, %v2466_v28 }
 0x702   :  { %v2469_v29 = vmul.f32 %v2467_v33, %v2408_v26 }
 0x704   :  { %v2471_v36 = vperm.slane %v2469_v29, 0  ;;  %v2472_v38 = vperm.slane %v2469_v29, 1 }
 0x706   :  { %v2476_v17 = vmul.f32 %v2472_v38, %v5769_v56  ;;  %v2475_v35 = vmul.f32 %v2471_v36, %v5746_v34  ;;  %v4279_v34 = vld [vmem:[%s5927_s12 + $0x38] sm:$0xff] }
 0x707   :  { %2749 = vmatpush.bf16.msrb.mxu1 %v4279_v34  ;;  %v4280_v34 = vld [vmem:[%s5928_s13] sm:$0xff] }
 0x708   :  { %v2483_v42 = vadd.f32 %v2479_v39, %v2476_v17  ;;  %v2482_v41 = vadd.f32 %v2478_v40, %v2475_v35 }
 0x70a   :  { %v2484_v44 = vmul.f32 0.01, %v2482_v41  ;;  %v2485_v32 = vmul.f32 0.01, %v2483_v42 }
 0x70b   :  { %2750 = vmatpush.bf16.msrb.mxu1 %v4278_v57 }
 0x70c   :  { %v2486_v43 = vmax.f32 %v2482_v41, %v2484_v44  ;;  %v2487_v46 = vmax.f32 %v2483_v42, %v2485_v32 }
 0x70e   :  { %v2520_v47 = vpack.c.bf16 %v2486_v43, %v2486_v43  ;;  %v2521_v50 = vpack.c.bf16 %v2487_v46, %v2487_v46  ;;  %v4283_v46 = vld [vmem:[%s5928_s13 + $0x18] sm:$0xff] }
 0x70f   :  { %2751 = vmatpush.bf16.msrb.mxu1 %v4277_v61  ;;  %2844 = vmatpush.bf16.msrb.mxu2 %v4283_v46  ;;  %v2762_v61 = vld [vmem:[%s5916_s1 + $0x22] sm:$0x1] }
 0x710   :  { %2626 = vmatmul.bf16.vlgmr.msrb.gmra.mxu3 %v2520_v47  ;;  %2639 = vmatmul.bf16.vlgmr.msra.gmra.mxu0 %v2521_v50 }
 0x713   :  { %2752 = vmatpush.bf16.msrb.mxu1 %v4276_v63 }
 0x717   :  { %2753 = vmatpush.bf16.msrb.mxu1 %v4275_v5 }
 0x71b   :  { %2754 = vmatpush.bf16.msrb.mxu1 %v4274_v27 }
 0x71f   :  { %2755 = vmatpush.bf16.msrb.mxu1 %v4273_v49 }
 0x723   :  { %2756 = vmatpush.bf16.msrb.mxu1 %v4272_v8 }
 0x78d   :  { %v2640_v51 = vpop.f32.mrf.mxu0 }
 0x793   :  { %v2627_v52 = vpop.f32.mrf.mxu3 }
 0x794   :  { %v2641_v53 = vadd.f32 %v2640_v51, %v2627_v52  ;;  %v4282_v51 = vld [vmem:[%s5928_s13 + $0x10] sm:$0xff] }
 0x795   :  { %v2642_v48 = vpop.f32.mrf.mxu0  ;;  %2845 = vmatpush.bf16.msrb.mxu2 %v4282_v51 }
 0x796   :  { %v2646_v54 = vrot.slane %v2641_v53, 4  ;;  %v4281_v48 = vld [vmem:[%s5928_s13 + $0x8] sm:$0xff] }
 0x798   :  { %v2647_v55 = vadd.f32 %v2646_v54, %v2641_v53 }
 0x799   :  { %2846 = vmatpush.bf16.msrb.mxu2 %v4281_v48 }
 0x79a   :  { %v2648_v45 = vrot.slane %v2647_v55, 2 }
 0x79b   :  { %v2629_v56 = vpop.f32.mrf.mxu3 }
 0x79c   :  { %v2649_v37 = vadd.f32 %v2648_v45, %v2647_v55 }
 0x79d   :  { %2847 = vmatpush.bf16.msrb.mxu2 %v4280_v34 }
 0x79e   :  { %v2650_v58 = vrot.slane %v2649_v37, 1 }
 0x7a0   :  { %v2651_v59 = vadd.f32 %v2650_v58, %v2649_v37 }
 0x7a2   :  { %v2652_v62 = vmul.f32 %v2651_v59, %v4449_v23 }
 0x7a4   :  { %v2653_v60 = vsub.f32 %v2641_v53, %v2652_v62 }
 0x7a6   :  { %v2654_v0 = vmul.f32 %v2653_v60, %v2653_v60 }
 0x7a8   :  { %v2655_v3 = vrot.slane %v2654_v0, 4 }
 0x7aa   :  { %v2656_v6 = vadd.f32 %v2655_v3, %v2654_v0  ;;  %v4303_v3 = vld [vmem:[%s5916_s1 + $0x23] ss:$0 sm:$0xff] }
 0x7ac   :  { %v2657_v7 = vrot.slane %v2656_v6, 2 }
 0x7ae   :  { %v2658_v2 = vadd.f32 %v2657_v7, %v2656_v6 }
 0x7b0   :  { %v2659_v4 = vrot.slane %v2658_v2, 1 }
 0x7b2   :  { %v2660_v1 = vadd.f32 %v2659_v4, %v2658_v2 }
 0x7b4   :  { %v2661_v9 = vmul.f32 %v2660_v1, %v4449_v23 }
 0x7b6   :  { %v2662_v11 = vadd.f32 1e-05, %v2661_v9 }
 0x7b8   :  { %4333 = vrsqrt.f32 %v2662_v11  ;;  %vm2669_vm1 = vweird.f32 %v2662_v11 }
 0x7be   :  { %v4334_v12 = vpop.eup %4333 }
 0x7bf   :  { %v2664_v13 = vmul.f32 %v4334_v12, %v2662_v11  ;;  %vm2670_vm0 = vweird.f32 %v4334_v12 }
 0x7c0   :  { %vm2671_vm3 = vmor %vm2669_vm1, %vm2670_vm0  ;;  %vm3031_vm1 = vcmask 195712  }
 0x7c1   :  { %v2665_v14 = vmul.f32 %v4334_v12, %v2664_v13 }
 0x7c3   :  { %v2666_v15 = vmul.f32 0.5, %v2665_v14 }
 0x7c5   :  { %v2667_v16 = vsub.f32 1.5, %v2666_v15 }
 0x7c7   :  { %v2668_v19 = vmul.f32 %v4334_v12, %v2667_v16 }
 0x7c9   :  { %v2672_v20 = vsel %vm2671_vm3, %v4334_v12, %v2668_v19  ;;  %vm3037_vm3 = vcmask 261312  }
 0x7ca   :  { %v2673_v10 = vmul.f32 %v2672_v20, %v2644_v18 }
 0x7cc   :  { %v2675_v21 = vperm.slane %v2673_v10, 0 }
 0x7ce   :  { %v2677_v24 = vmul.f32 %v2675_v21, %v2653_v60 }
 0x7d0   :  { %v2681_v25 = vadd.f32 %v4302_v22, %v2677_v24 }
 0x7d2   :  { %v2682_v26 = vmul.f32 0.01, %v2681_v25 }
 0x7d4   :  { %v2683_v28 = vmax.f32 %v2681_v25, %v2682_v26  ;;  %v4285_v25 = vld [vmem:[%s5929_s14 + $0x8] sm:$0xff] }
 0x7d5   :  { %2921 = vmatpush.bf16.msra.mxu2 %v4285_v25 }
 0x7d6   :  { %v2700_v30 = vpack.c.bf16 %v2683_v28, %v2683_v28 }
 0x7d8   :  { %2757 = vmatmul.bf16.vlgmr.msrb.gmra.mxu1 %v2700_v30  ;;  %v4284_v30 = vld [vmem:[%s5929_s14] sm:$0xff] }
 0x7d9   :  { %2922 = vmatpush.bf16.msra.mxu2 %v4284_v30 }
 0x855   :  { %v2758_v31 = vpop.f32.mrf.mxu1 }
 0x856   :  { %v2764_v33 = vsel %vm176_vm7, %v2758_v31, 0.0 }
 0x857   :  { %v2765_v29 = vrot.slane %v2764_v33, 4 }
 0x859   :  { %v2766_v36 = vadd.f32 %v2765_v29, %v2764_v33 }
 0x85b   :  { %v2767_v38 = vrot.slane %v2766_v36, 2 }
 0x85d   :  { %v2768_v39 = vadd.f32 %v2767_v38, %v2766_v36  ;;  %v2760_v40 = vpop.f32.mrf.mxu1 }
 0x85e   :  { %v2853_v40 = vld [vmem:[%s5916_s1 + $0x24] sm:$0x1] }
 0x85f   :  { %v2769_v17 = vrot.slane %v2768_v39, 1 }
 0x861   :  { %v2770_v35 = vadd.f32 %v2769_v17, %v2768_v39 }
 0x863   :  { %v2771_v42 = vmul.f32 %v2770_v35, %v4449_v23 }
 0x865   :  { %v2772_v41 = vsub.f32 %v2758_v31, %v2771_v42 }
 0x867   :  { %v2773_v44 = vmul.f32 %v2772_v41, %v2772_v41 }
 0x869   :  { %v2774_v32 = vsel %vm176_vm7, %v2773_v44, 0.0  ;;  %v4304_v44 = vld [vmem:[%s5916_s1 + $0x25] ss:$0 sm:$0xff] }
 0x86a   :  { %v2775_v43 = vrot.slane %v2774_v32, 4 }
 0x86c   :  { %v2776_v47 = vadd.f32 %v2775_v43, %v2774_v32 }
 0x86e   :  { %v2777_v50 = vrot.slane %v2776_v47, 2 }
 0x870   :  { %v2778_v52 = vadd.f32 %v2777_v50, %v2776_v47 }
 0x872   :  { %v2779_v53 = vrot.slane %v2778_v52, 1 }
 0x874   :  { %v2780_v54 = vadd.f32 %v2779_v53, %v2778_v52 }
 0x876   :  { %v2781_v55 = vmul.f32 %v2780_v54, %v4449_v23 }
 0x878   :  { %v2782_v45 = vadd.f32 1e-05, %v2781_v55 }
 0x87a   :  { %4335 = vrsqrt.f32 %v2782_v45  ;;  %vm2789_vm5 = vweird.f32 %v2782_v45 }
 0x880   :  { %v4336_v56 = vpop.eup %4335 }
 0x881   :  { %v2784_v37 = vmul.f32 %v4336_v56, %v2782_v45  ;;  %vm2790_vm4 = vweird.f32 %v4336_v56 }
 0x882   :  { %vm2791_vm6 = vmor %vm2789_vm5, %vm2790_vm4 }
 0x883   :  { %v2785_v57 = vmul.f32 %v4336_v56, %v2784_v37 }
 0x885   :  { %v2786_v58 = vmul.f32 0.5, %v2785_v57 }
 0x887   :  { %v2787_v59 = vsub.f32 1.5, %v2786_v58 }
 0x889   :  { %v2788_v62 = vmul.f32 %v4336_v56, %v2787_v59 }
 0x88b   :  { %v2792_v60 = vsel %vm2791_vm6, %v4336_v56, %v2788_v62 }
 0x88c   :  { %v2793_v63 = vmul.f32 %v2792_v60, %v2762_v61 }
 0x88e   :  { %v2795_v0 = vperm.slane %v2793_v63, 0 }
 0x890   :  { %v2797_v5 = vmul.f32 %v2795_v0, %v2772_v41 }
 0x892   :  { %v2801_v6 = vadd.f32 %v4303_v3, %v2797_v5  ;;  %v4287_v3 = vld [vmem:[%s5930_s15 + $0x8] sm:$0xff] }
 0x893   :  { %3000 = vmatpush.bf16.msra.mxu3 %v4287_v3 }
 0x894   :  { %v2802_v7 = vmul.f32 0.01, %v2801_v6 }
 0x896   :  { %v2803_v27 = vmax.f32 %v2801_v6, %v2802_v7  ;;  %v4286_v7 = vld [vmem:[%s5930_s15] sm:$0xff] }
 0x897   :  { %3001 = vmatpush.bf16.msra.mxu3 %v4286_v7 }
 0x898   :  { %v2812_v2 = vpack.c.bf16 %v2803_v27, %v2803_v27 }
 0x89a   :  { %4022 = vmatmul.msk.bf16.vlgmr.msrb.gmra.mxu2 %vm176_vm7, %v2812_v2 }
 0x91d   :  { %v2849_v4 = vpop.f32.mrf.mxu2 }
 0x91e   :  { %v2855_v49 = vsel %vm93_vm2, %v2849_v4, 0.0 }
 0x91f   :  { %v2856_v1 = vrot.slane %v2855_v49, 4 }
 0x921   :  { %v2857_v8 = vadd.f32 %v2856_v1, %v2855_v49 }
 0x923   :  { %v2858_v9 = vrot.slane %v2857_v8, 2 }
 0x925   :  { %v2859_v11 = vadd.f32 %v2858_v9, %v2857_v8  ;;  %v2851_v12 = vpop.f32.mrf.mxu2  ;;  %v2928_v9 = vld [vmem:[%s5916_s1 + $0x26] sm:$0x1] }
 0x927   :  { %v2860_v13 = vrot.slane %v2859_v11, 1 }
 0x929   :  { %v2861_v14 = vadd.f32 %v2860_v13, %v2859_v11 }
 0x92b   :  { %v2862_v15 = vmul.f32 %v2861_v14, %v4449_v23  ;;  %v4305_v14 = vld [vmem:[%s5916_s1 + $0x27] ss:$0 sm:$0xff] }
 0x92d   :  { %v2863_v16 = vsub.f32 %v2849_v4, %v2862_v15 }
 0x92f   :  { %v2864_v18 = vmul.f32 %v2863_v16, %v2863_v16 }
 0x931   :  { %v2865_v19 = vsel %vm93_vm2, %v2864_v18, 0.0 }
 0x932   :  { %v2866_v20 = vrot.slane %v2865_v19, 4 }
 0x934   :  { %v2867_v10 = vadd.f32 %v2866_v20, %v2865_v19 }
 0x936   :  { %v2868_v21 = vrot.slane %v2867_v10, 2 }
 0x938   :  { %v2869_v22 = vadd.f32 %v2868_v21, %v2867_v10  ;;  %v4306_v10 = vld [vmem:[%s5916_s1 + $0x28] ss:$0 sm:$0xff] }
 0x93a   :  { %v2870_v24 = vrot.slane %v2869_v22, 1 }
 0x93c   :  { %v2871_v26 = vadd.f32 %v2870_v24, %v2869_v22 }
 0x93e   :  { %v2872_v28 = vmul.f32 %v2871_v26, %v4449_v23 }
 0x940   :  { %v2873_v31 = vadd.f32 1e-05, %v2872_v28 }
 0x942   :  { %4337 = vrsqrt.f32 %v2873_v31  ;;  %vm2880_vm8 = vweird.f32 %v2873_v31 }
 0x948   :  { %v4338_v33 = vpop.eup %4337 }
 0x949   :  { %v2875_v29 = vmul.f32 %v4338_v33, %v2873_v31  ;;  %vm2881_vm7 = vweird.f32 %v4338_v33 }
 0x94a   :  { %vm2882_vm9 = vmor %vm2880_vm8, %vm2881_vm7 }
 0x94b   :  { %v2876_v36 = vmul.f32 %v4338_v33, %v2875_v29 }
 0x94d   :  { %v2877_v38 = vmul.f32 0.5, %v2876_v36  ;;  %v3029_v36 = vpop.permute.xlu2 %3028 }
 0x94f   :  { %v2878_v39 = vsub.f32 1.5, %v2877_v38 }
 0x951   :  { %v2879_v17 = vmul.f32 %v4338_v33, %v2878_v39 }
 0x953   :  { %v2883_v35 = vsel %vm2882_vm9, %v4338_v33, %v2879_v17 }
 0x954   :  { %v2884_v42 = vmul.f32 %v2883_v35, %v2853_v40 }
 0x956   :  { %v2886_v41 = vperm.slane %v2884_v42, 0 }
 0x958   :  { %v2888_v32 = vmul.f32 %v2886_v41, %v2863_v16 }
 0x95a   :  { %v2892_v43 = vadd.f32 %v4304_v44, %v2888_v32  ;;  %v3035_v44 = vpop.permute.xlu2 %3034 }
 0x95c   :  { %v2893_v46 = vmul.f32 0.01, %v2892_v43 }
 0x95e   :  { %v2894_v47 = vmax.f32 %v2892_v43, %v2893_v46 }
 0x960   :  { %v2899_v50 = vpack.c.bf16 %v2894_v47, %v2894_v47 }
 0x962   :  { %4031 = vmatmul.msk.bf16.vlgmr.msra.gmra.mxu2 %vm93_vm2, %v2899_v50 }
 0x9e5   :  { %v2924_v51 = vpop.f32.mrf.mxu2 }
 0x9e6   :  { %v2930_v52 = vsel %vm93_vm2, %v2924_v51, 0.0 }
 0x9e7   :  { %v2931_v53 = vrot.slane %v2930_v52, 4 }
 0x9e9   :  { %v2932_v48 = vadd.f32 %v2931_v53, %v2930_v52 }
 0x9eb   :  { %v2933_v54 = vrot.slane %v2932_v48, 2 }
 0x9ed   :  { %v2934_v55 = vadd.f32 %v2933_v54, %v2932_v48  ;;  %v2926_v34 = vpop.f32.mrf.mxu2 }
 0x9ef   :  { %v2935_v45 = vrot.slane %v2934_v55, 1 }
 0x9f1   :  { %v2936_v56 = vadd.f32 %v2935_v45, %v2934_v55 }
 0x9f3   :  { %v2937_v37 = vmul.f32 %v2936_v56, %v4449_v23 }
 0x9f5   :  { %v2938_v57 = vsub.f32 %v2924_v51, %v2937_v37 }
 0x9f7   :  { %v2939_v58 = vmul.f32 %v2938_v57, %v2938_v57 }
 0x9f9   :  { %v2940_v59 = vsel %vm93_vm2, %v2939_v58, 0.0 }
 0x9fa   :  { %v2941_v61 = vrot.slane %v2940_v59, 4 }
 0x9fc   :  { %v2942_v62 = vadd.f32 %v2941_v61, %v2940_v59 }
 0x9fe   :  { %v2943_v60 = vrot.slane %v2942_v62, 2 }
 0xa00   :  { %v2944_v63 = vadd.f32 %v2943_v60, %v2942_v62 }
 0xa02   :  { %v2945_v0 = vrot.slane %v2944_v63, 1 }
 0xa04   :  { %v2946_v5 = vadd.f32 %v2945_v0, %v2944_v63 }
 0xa06   :  { %v2947_v6 = vmul.f32 %v2946_v5, %v4449_v23 }
 0xa08   :  { %v2948_v27 = vadd.f32 1e-05, %v2947_v6 }
 0xa0a   :  { %4339 = vrsqrt.f32 %v2948_v27  ;;  %vm2955_vm11 = vweird.f32 %v2948_v27 }
 0xa10   :  { %v4340_v2 = vpop.eup %4339 }
 0xa11   :  { %v2950_v4 = vmul.f32 %v4340_v2, %v2948_v27  ;;  %vm2956_vm10 = vweird.f32 %v4340_v2 }
 0xa12   :  { %vm2957_vm12 = vmor %vm2955_vm11, %vm2956_vm10 }
 0xa13   :  { %v2951_v49 = vmul.f32 %v4340_v2, %v2950_v4 }
 0xa15   :  { %v2952_v1 = vmul.f32 0.5, %v2951_v49 }
 0xa17   :  { %v2953_v8 = vsub.f32 1.5, %v2952_v1 }
 0xa19   :  { %v2954_v11 = vmul.f32 %v4340_v2, %v2953_v8 }
 0xa1b   :  { %v2958_v23 = vsel %vm2957_vm12, %v4340_v2, %v2954_v11 }
 0xa1c   :  { %v2959_v12 = vmul.f32 %v2958_v23, %v2928_v9 }
 0xa1e   :  { %v2961_v13 = vperm.slane %v2959_v12, 0 }
 0xa20   :  { %v2963_v15 = vmul.f32 %v2961_v13, %v2938_v57 }
 0xa22   :  { %v2967_v16 = vadd.f32 %v4305_v14, %v2963_v15 }
 0xa24   :  { %v2968_v18 = vmul.f32 0.01, %v2967_v16 }
 0xa26   :  { %v2969_v19 = vmax.f32 %v2967_v16, %v2968_v18 }
 0xa28   :  { %v2974_v20 = vpack.c.bf16 %v2969_v19, %v2969_v19 }
 0xa2a   :  { %4040 = vmatmul.msk.bf16.vlgmr.msra.gmra.mxu3 %vm93_vm2, %v2974_v20 }
 0xaad   :  { %v3003_v21 = vpop.f32.mrf.mxu3 }
 0xaae   :  { %v3004_v22 = vadd.f32 %v4306_v10, %v3003_v21 }
 0xab0   :  { %v3007_v24 = vsub.f32 0.0, %v3004_v22 }
 0xab2   :  { %v3008_v25 = vmul.f32 1.442695, %v3007_v24 }
 0xab4   :  { %4341 = vpow2.f32 %v3008_v25 }
 0xab5   :  { %v3005_v26 = vpop.f32.mrf.mxu3 }
 0xaba   :  { %v4342_v28 = vpop.eup %4341 }
 0xabb   :  { %v3010_v30 = vadd.f32 1.0, %v4342_v28 }
 0xabd   :  { %4343 = vrcp.f32 %v3010_v30  ;;  %v3022_v38 = vand.u32 2147483648, %v3010_v30  ;;  %v3020_v40 = vand.u32 2147483647, %v3010_v30  ;;  %vm3016_vm13 = vweird.f32 %v3010_v30 }
 0xabf   :  { %v3023_v35 = vor.u32 1.1754944e-38, %v3022_v38  ;;  %vm3021_vm0 = vcmp.eq.f32.partialorder %v3020_v40, 8.507059e+37 }
 0xac3   :  { %v4344_v31 = vpop.eup %4343 }
 0xac4   :  { %v3012_v33 = vmul.f32 %v4344_v31, %v3010_v30  ;;  %vm3017_vm2 = vweird.f32 %v4344_v31 }
 0xac5   :  { %vm3018_vm14 = vmor %vm3016_vm13, %vm3017_vm2 }
 0xac6   :  { %v3013_v29 = vsub.f32 1.0, %v3012_v33 }
 0xac8   :  { %v3014_v39 = vmul.f32 %v4344_v31, %v3013_v29 }
 0xaca   :  { %v3015_v17 = vadd.f32 %v4344_v31, %v3014_v39 }
 0xacc   :  { %v3019_v42 = vsel %vm3018_vm14, %v4344_v31, %v3015_v17 }
 0xacd   :  { %v3024_v41 = vsel %vm3021_vm0, %v3023_v35, %v3019_v42 }
 0xace   :  { %3027 = vst.msk [vmem:[%s5931_s16] sm:$0xff] %vm3026_vm15, %v3024_v41 }
 0xacf   :  { %3032 = vst.msk [vmem:[%s5931_s16] sm:$0xff] %vm3031_vm1, %v3029_v36 }
 0xad0   :  { %3038 = vst.msk [vmem:[%s5931_s16] sm:$0xff] %vm3037_vm3, %v3035_v44 }

</bundles_post_ra>
